<compile_context>
chip_gen: v5e
topology: v5e:2x2
jax: 0.10.0
libtpu: 0.0.40
codegen_flags: <defaults>
</compile_context>

<pallas_src>
import functools
import math

import jax
import jax.numpy as jnp
from jax import lax
from jax.experimental import pallas as pl
from jax.experimental.pallas import tpu as pltpu

VMEM_LIMIT = 32 * 1024 * 1024  # safe on v5e/v6e (128 MiB) and v7x (64 MiB)


# ----------------------------- in-kernel helpers -----------------------------


def _ln_rows(x, g, b, eps):
    # Annotated-Transformer LayerNorm: a_2 * (x - mean) / (std + eps) + b_2
    # with torch's unbiased std (N-1). f32 math.
    d = x.shape[-1]
    mean = jnp.mean(x, axis=-1, keepdims=True)
    var = jnp.sum((x - mean) ** 2, axis=-1, keepdims=True) * (1.0 / (d - 1))
    std = jnp.sqrt(var)
    inv = pl.reciprocal(std + eps, approx=False)  # EUP slot, exact
    return g * (x - mean) * inv + b


# ----------------------------- fused attention sublayer -----------------------------


def _attn_sublayer_kernel(x_ref, kv_ref, g_ref, b_ref, wqkv_ref, bqkv_ref,
                          wo_ref, bo_ref, m_ref, o_ref, *, n_heads, is_self, eps):
    f32, bf16 = jnp.float32, jnp.bfloat16
    x = x_ref[0].astype(f32)                      # (Tq, D) residual / query source
    Tq, D = x.shape
    dk = D // n_heads
    scale = 1.0 / math.sqrt(dk)

    xn = _ln_rows(x, g_ref[...], b_ref[...], eps)  # pre-norm, f32
    wqkv = wqkv_ref[...]                           # (D, 3D) bf16
    bqkv = bqkv_ref[...]                           # (1, 3D) f32

    if is_self:
        # single fused QKV matmul on the MXU
        qkv = jnp.dot(xn.astype(bf16), wqkv, preferred_element_type=f32) + bqkv
        q = qkv[:, :D]
        k = qkv[:, D:2 * D]
        v = qkv[:, 2 * D:]
    else:
        # cross-attention: query from normed x, key/value from memory (as-is)
        kv_src = kv_ref[0].astype(bf16)            # (Tk, D)
        q = jnp.dot(xn.astype(bf16), wqkv[:, :D], preferred_element_type=f32) + bqkv[:, :D]
        kv = jnp.dot(kv_src, wqkv[:, D:], preferred_element_type=f32) + bqkv[:, D:]
        k = kv[:, :D]
        v = kv[:, D:]

    m = m_ref[0]                                   # (Mq, Tk) float, broadcast over Tq/heads
    wo = wo_ref[...]                               # (D, D) bf16

    # Per-head attention + fused output projection:  out = sum_h (softmax(q_h k_h^T) v_h) @ Wo_h
    # TODO(synk): for long sequences convert this to a flash-style online softmax over kv tiles.
    acc = jnp.zeros((Tq, D), f32)
    for h in range(n_heads):                       # static unroll (n_heads is small)
        sl = slice(h * dk, (h + 1) * dk)
        qh = q[:, sl].astype(bf16)                 # (Tq, dk)
        kh = k[:, sl].astype(bf16)                 # (Tk, dk)
        vh = v[:, sl].astype(bf16)                 # (Tk, dk)
        s = lax.dot_general(qh, kh, (((1,), (1,)), ((), ())),
                            preferred_element_type=f32) * scale        # (Tq, Tk)
        s = jnp.where(m > 0, s, -1e9)              # masked_fill(mask==0, -1e9)
        s = s - jnp.max(s, axis=-1, keepdims=True)
        p = jnp.exp(s)
        p = p * pl.reciprocal(jnp.sum(p, axis=-1, keepdims=True), approx=False)
        oh = jnp.dot(p.astype(bf16), vh, preferred_element_type=f32)   # (Tq, dk)
        acc = acc + jnp.dot(oh.astype(bf16), wo[sl, :], preferred_element_type=f32)

    out = acc + bo_ref[...]
    o_ref[0] = (x + out).astype(o_ref.dtype)       # fused residual add


def attn_sublayer(x, kv, mask, ln_p, attn_p, n_heads, is_self, eps=1e-6):
    B, Tq, D = x.shape
    Tk = kv.shape[1]
    Mq = mask.shape[1]  # 1 (padding mask) or Tq (causal mask)
    kernel = functools.partial(_attn_sublayer_kernel,
                               n_heads=n_heads, is_self=is_self, eps=eps)
    return pl.pallas_call(
        kernel,
        out_shape=jax.ShapeDtypeStruct((B, Tq, D), jnp.float32),
        grid=(B,),
        in_specs=[
            pl.BlockSpec((1, Tq, D), lambda b: (b, 0, 0)),   # x (residual + query)
            pl.BlockSpec((1, Tk, D), lambda b: (b, 0, 0)),   # kv source (x or memory)
            pl.BlockSpec((1, D), lambda b: (0, 0)),          # LN gamma
            pl.BlockSpec((1, D), lambda b: (0, 0)),          # LN beta
            pl.BlockSpec((D, 3 * D), lambda b: (0, 0)),      # Wqkv (bf16)
            pl.BlockSpec((1, 3 * D), lambda b: (0, 0)),      # bqkv
            pl.BlockSpec((D, D), lambda b: (0, 0)),          # Wo (bf16)
            pl.BlockSpec((1, D), lambda b: (0, 0)),          # bo
            pl.BlockSpec((1, Mq, Tk), lambda b: (b, 0, 0)),  # mask, reused across heads
        ],
        out_specs=pl.BlockSpec((1, Tq, D), lambda b: (b, 0, 0)),
        compiler_params=pltpu.CompilerParams(
            dimension_semantics=("parallel",), vmem_limit_bytes=VMEM_LIMIT),
    )(x, kv, ln_p["g"], ln_p["b"], attn_p["wqkv"], attn_p["bqkv"],
      attn_p["wo"], attn_p["bo"], mask)


# ----------------------------- fused FFN sublayer -----------------------------


def _ffn_kernel(x_ref, g_ref, b_ref, w1_ref, b1_ref, w2_ref, b2_ref, o_ref, *, eps):
    f32, bf16 = jnp.float32, jnp.bfloat16
    x = x_ref[...].astype(f32)                                   # (tm, D)
    xn = _ln_rows(x, g_ref[...], b_ref[...], eps)
    h = jnp.dot(xn.astype(bf16), w1_ref[...], preferred_element_type=f32) + b1_ref[...]
    h = jnp.maximum(h, 0.0)                                      # ReLU
    y = jnp.dot(h.astype(bf16), w2_ref[...], preferred_element_type=f32) + b2_ref[...]
    o_ref[...] = (x + y).astype(o_ref.dtype)                     # fused residual add


def _row_tile(M):
    # biggest convenient sublane-aligned row tile (bigger tiles amortize grid-step overhead)
    for t in (512, 256, 128, 64, 32, 16, 8):
        if M % t == 0 and t < M:
            return t
    return M


def ffn_sublayer(x, ln_p, ff_p, eps=1e-6):
    B, T, D = x.shape
    Dff = ff_p["w1"].shape[1]
    M = B * T
    tm = _row_tile(M)
    # TODO(synk): at real d_ff sizes also tile the weight N/K dims (<=512) to fit v7x's 64 MiB VMEM.
    out = pl.pallas_call(
        functools.partial(_ffn_kernel, eps=eps),
        out_shape=jax.ShapeDtypeStruct((M, D), jnp.float32),
        grid=(M // tm,),
        in_specs=[
            pl.BlockSpec((tm, D), lambda i: (i, 0)),
            pl.BlockSpec((1, D), lambda i: (0, 0)),
            pl.BlockSpec((1, D), lambda i: (0, 0)),
            pl.BlockSpec((D, Dff), lambda i: (0, 0)),
            pl.BlockSpec((1, Dff), lambda i: (0, 0)),
            pl.BlockSpec((Dff, D), lambda i: (0, 0)),
            pl.BlockSpec((1, D), lambda i: (0, 0)),
        ],
        out_specs=pl.BlockSpec((tm, D), lambda i: (i, 0)),
        compiler_params=pltpu.CompilerParams(
            dimension_semantics=("parallel",), vmem_limit_bytes=VMEM_LIMIT),
    )(x.reshape(M, D), ln_p["g"], ln_p["b"],
      ff_p["w1"], ff_p["b1"], ff_p["w2"], ff_p["b2"])
    return out.reshape(B, T, D)


# ----------------------------- final LayerNorm -----------------------------


def _ln_kernel(x_ref, g_ref, b_ref, o_ref, *, eps):
    x = x_ref[...].astype(jnp.float32)
    o_ref[...] = _ln_rows(x, g_ref[...], b_ref[...], eps).astype(o_ref.dtype)


def layer_norm(x, ln_p, eps=1e-6):
    B, T, D = x.shape
    M = B * T
    tm = _row_tile(M)
    out = pl.pallas_call(
        functools.partial(_ln_kernel, eps=eps),
        out_shape=jax.ShapeDtypeStruct((M, D), jnp.float32),
        grid=(M // tm,),
        in_specs=[
            pl.BlockSpec((tm, D), lambda i: (i, 0)),
            pl.BlockSpec((1, D), lambda i: (0, 0)),
            pl.BlockSpec((1, D), lambda i: (0, 0)),
        ],
        out_specs=pl.BlockSpec((tm, D), lambda i: (i, 0)),
        compiler_params=pltpu.CompilerParams(
            dimension_semantics=("parallel",), vmem_limit_bytes=VMEM_LIMIT),
    )(x.reshape(M, D), ln_p["g"], ln_p["b"])
    return out.reshape(B, T, D)


# ----------------------------- model glue -----------------------------


def encoder_layer(p, x, src_mask, n_heads):
    x = attn_sublayer(x, x, src_mask, p["ln1"], p["self_attn"], n_heads, is_self=True)
    x = ffn_sublayer(x, p["ln2"], p["ff"])
    return x


def decoder_layer(p, x, memory, src_mask, tgt_mask, n_heads):
    x = attn_sublayer(x, x, tgt_mask, p["ln1"], p["self_attn"], n_heads, is_self=True)
    x = attn_sublayer(x, memory, src_mask, p["ln2"], p["src_attn"], n_heads, is_self=False)
    x = ffn_sublayer(x, p["ln3"], p["ff"])
    return x


def positional_encoding(max_len, d_model):
    pos = jnp.arange(max_len, dtype=jnp.float32)[:, None]
    div = jnp.exp(
        jnp.arange(0, d_model, 2, dtype=jnp.float32) * (-math.log(10000.0) / d_model)
    )
    pe = jnp.zeros((max_len, d_model), jnp.float32)
    pe = pe.at[:, 0::2].set(jnp.sin(pos * div))
    pe = pe.at[:, 1::2].set(jnp.cos(pos * div))
    return pe


def embed(table, tokens, pe):
    # pure row gather + scale + PE add (no one-hot matmul).
    # TODO(synk): at real vocab sizes implement this as a Pallas scalar-prefetch
    #             row-gather kernel (pl.Element on the vocab axis) fused with scale+PE.
    D = table.shape[1]
    T = tokens.shape[1]
    x = jnp.take(table, tokens, axis=0) * math.sqrt(D)
    return x + pe[None, :T, :]


def transformer_forward(params, src, tgt, src_mask, tgt_mask, n_heads):
    pe = params["pe"]
    src_mask = src_mask.astype(jnp.float32)
    tgt_mask = tgt_mask.astype(jnp.float32)
    # encode
    x = embed(params["src_emb"], src, pe)
    for lp in params["encoder"]["layers"]:
        x = encoder_layer(lp, x, src_mask, n_heads)
    memory = layer_norm(x, params["encoder"]["norm"])
    # decode
    y = embed(params["tgt_emb"], tgt, pe)
    for lp in params["decoder"]["layers"]:
        y = decoder_layer(lp, y, memory, src_mask, tgt_mask, n_heads)
    return layer_norm(y, params["decoder"]["norm"])


# ----------------------------- parameter init -----------------------------


def make_params(key, src_vocab, tgt_vocab, d_model, d_ff, n_heads, n_layers, max_len):
    keys = iter(jax.random.split(key, 512))

    def dense(in_d, out_d):
        w = jax.random.normal(next(keys), (in_d, out_d), jnp.float32) / math.sqrt(in_d)
        return w.astype(jnp.bfloat16), jnp.zeros((1, out_d), jnp.float32)

    def attn():
        wq, bq = dense(d_model, d_model)
        wk, bk = dense(d_model, d_model)
        wv, bv = dense(d_model, d_model)
        wo, bo = dense(d_model, d_model)
        return {
            "wqkv": jnp.concatenate([wq, wk, wv], axis=1),   # (D, 3D) bf16
            "bqkv": jnp.concatenate([bq, bk, bv], axis=1),   # (1, 3D) f32
            "wo": wo,                                        # (D, D) bf16
            "bo": bo,                                        # (1, D) f32
        }

    def ln():
        return {"g": jnp.ones((1, d_model), jnp.float32),
                "b": jnp.zeros((1, d_model), jnp.float32)}

    def ff():
        w1, b1 = dense(d_model, d_ff)
        w2, b2 = dense(d_ff, d_model)
        return {"w1": w1, "b1": b1, "w2": w2, "b2": b2}

    enc_layers = [
        {"self_attn": attn(), "ff": ff(), "ln1": ln(), "ln2": ln()}
        for _ in range(n_layers)
    ]
    dec_layers = [
        {"self_attn": attn(), "src_attn": attn(), "ff": ff(),
         "ln1": ln(), "ln2": ln(), "ln3": ln()}
        for _ in range(n_layers)
    ]
    return {
        "pe": positional_encoding(max_len, d_model),
        "src_emb": jax.random.normal(next(keys), (src_vocab, d_model), jnp.float32) * 0.1,
        "tgt_emb": jax.random.normal(next(keys), (tgt_vocab, d_model), jnp.float32) * 0.1,
        "encoder": {"layers": enc_layers, "norm": ln()},
        "decoder": {"layers": dec_layers, "norm": ln()},
        # generator (d_model -> tgt_vocab) exists in the PyTorch module but is
        # not applied in forward(); omitted from the hot path.
    }


# ----------------------------- main -----------------------------

if __name__ == "__main__":
    B, Ts, Tt = 2, 8, 8
    d_model, d_ff, n_heads, n_layers = 32, 64, 4, 2
    vocab = 16

    key = jax.random.PRNGKey(0)
    pkey, skey, tkey = jax.random.split(key, 3)
    params = make_params(pkey, vocab, vocab, d_model, d_ff, n_heads, n_layers, max_len=64)

    src = jax.random.randint(skey, (B, Ts), 0, vocab)
    tgt = jax.random.randint(tkey, (B, Tt), 0, vocab)
    src_mask = jnp.ones((B, 1, Ts), jnp.float32)                      # no padding
    tgt_mask = jnp.broadcast_to(
        jnp.tril(jnp.ones((Tt, Tt), jnp.float32))[None], (B, Tt, Tt)
    )                                                                 # causal mask

    fwd = jax.jit(
        lambda s, t, sm, tm_: transformer_forward(params, s, t, sm, tm_, n_heads)
    )
    out = fwd(src, tgt, src_mask, tgt_mask)
    jax.block_until_ready(out)
    assert out.shape == (B, Tt, d_model)
    assert bool(jnp.all(jnp.isfinite(out)))
    print("KERNEL_OK")
</pallas_src>

<mosaic_0001>
module attributes {stable_mosaic.version = 11 : i64} {
  func.func @_ffn_kernel(%arg0: i32, %arg1: memref<8x32xf32, #tpu.memory_space<vmem>>, %arg2: memref<1x32xf32, #tpu.memory_space<vmem>>, %arg3: memref<1x32xf32, #tpu.memory_space<vmem>>, %arg4: memref<32x64xbf16, #tpu.memory_space<vmem>>, %arg5: memref<1x64xf32, #tpu.memory_space<vmem>>, %arg6: memref<64x32xbf16, #tpu.memory_space<vmem>>, %arg7: memref<1x32xf32, #tpu.memory_space<vmem>>, %arg8: memref<8x32xf32, #tpu.memory_space<vmem>>) attributes {dimension_semantics = [#tpu.dimension_semantics<parallel>], iteration_bounds = array<i64: 2>, scalar_prefetch = 0 : i64, scratch_operands = 0 : i64, tpu.core_type = #tpu.core_type<tc>, window_params = [{transform_indices = @transform_0, window_bounds = array<i64: 8, 32>}, {pipeline_mode = #tpu.pipeline_mode<synchronous>, transform_indices = @transform_1, window_bounds = array<i64: 1, 32>}, {pipeline_mode = #tpu.pipeline_mode<synchronous>, transform_indices = @transform_2, window_bounds = array<i64: 1, 32>}, {pipeline_mode = #tpu.pipeline_mode<synchronous>, transform_indices = @transform_3, window_bounds = array<i64: 32, 64>}, {pipeline_mode = #tpu.pipeline_mode<synchronous>, transform_indices = @transform_4, window_bounds = array<i64: 1, 64>}, {pipeline_mode = #tpu.pipeline_mode<synchronous>, transform_indices = @transform_5, window_bounds = array<i64: 64, 32>}, {pipeline_mode = #tpu.pipeline_mode<synchronous>, transform_indices = @transform_6, window_bounds = array<i64: 1, 32>}, {transform_indices = @transform_7, window_bounds = array<i64: 8, 32>}]} {
    %c0 = arith.constant 0 : index
    %c0_0 = arith.constant 0 : index
    %0 = vector.load %arg1[%c0, %c0_0] : memref<8x32xf32, #tpu.memory_space<vmem>>, vector<8x32xf32>
    %c0_1 = arith.constant 0 : index
    %c0_2 = arith.constant 0 : index
    %1 = vector.load %arg2[%c0_1, %c0_2] : memref<1x32xf32, #tpu.memory_space<vmem>>, vector<1x32xf32>
    %c0_3 = arith.constant 0 : index
    %c0_4 = arith.constant 0 : index
    %2 = vector.load %arg3[%c0_3, %c0_4] : memref<1x32xf32, #tpu.memory_space<vmem>>, vector<1x32xf32>
    %cst = arith.constant dense<0.000000e+00> : vector<8xf32>
    %3 = vector.multi_reduction <add>, %0, %cst [1] : vector<8x32xf32> to vector<8xf32>
    %4 = vector.shape_cast %3 : vector<8xf32> to vector<8x1xf32>
    %cst_5 = arith.constant 3.200000e+01 : f32
    %5 = vector.broadcast %cst_5 : f32 to vector<8x1xf32>
    %6 = arith.divf %4, %5 : vector<8x1xf32>
    %7 = vector.broadcast %6 : vector<8x1xf32> to vector<8x32xf32>
    %8 = arith.subf %0, %7 : vector<8x32xf32>
    %9 = arith.mulf %8, %8 : vector<8x32xf32>
    %cst_6 = arith.constant dense<0.000000e+00> : vector<8xf32>
    %10 = vector.multi_reduction <add>, %9, %cst_6 [1] : vector<8x32xf32> to vector<8xf32>
    %11 = vector.shape_cast %10 : vector<8xf32> to vector<8x1xf32>
    %cst_7 = arith.constant 0.0322580636 : f32
    %12 = vector.broadcast %cst_7 : f32 to vector<8x1xf32>
    %13 = arith.mulf %11, %12 : vector<8x1xf32>
    %14 = math.sqrt %13 : vector<8x1xf32>
    %cst_8 = arith.constant 9.99999997E-7 : f32
    %15 = vector.broadcast %cst_8 : f32 to vector<8x1xf32>
    %16 = arith.addf %14, %15 : vector<8x1xf32>
    %17 = tpu.reciprocal %16 : vector<8x1xf32> -> vector<8x1xf32>
    %18 = vector.broadcast %6 : vector<8x1xf32> to vector<8x32xf32>
    %19 = arith.subf %0, %18 : vector<8x32xf32>
    %20 = vector.broadcast %1 : vector<1x32xf32> to vector<8x32xf32>
    %21 = arith.mulf %20, %19 : vector<8x32xf32>
    %22 = vector.broadcast %17 : vector<8x1xf32> to vector<8x32xf32>
    %23 = arith.mulf %21, %22 : vector<8x32xf32>
    %24 = vector.broadcast %2 : vector<1x32xf32> to vector<8x32xf32>
    %25 = arith.addf %23, %24 : vector<8x32xf32>
    %26 = arith.truncf %25 : vector<8x32xf32> to vector<8x32xbf16>
    %c0_9 = arith.constant 0 : index
    %c0_10 = arith.constant 0 : index
    %27 = vector.load %arg4[%c0_9, %c0_10] : memref<32x64xbf16, #tpu.memory_space<vmem>>, vector<32x64xbf16>
    %cst_11 = arith.constant dense<0.000000e+00> : vector<8x64xf32>
    %28 = tpu.matmul %26, %27, %cst_11 {dimension_numbers = #tpu.dot_dimension_numbers<[1], [0], [0], [1], [0, 0, 1, 1], [], []>} : vector<8x32xbf16>, vector<32x64xbf16>, vector<8x64xf32> -> vector<8x64xf32>
    %c0_12 = arith.constant 0 : index
    %c0_13 = arith.constant 0 : index
    %29 = vector.load %arg5[%c0_12, %c0_13] : memref<1x64xf32, #tpu.memory_space<vmem>>, vector<1x64xf32>
    %30 = vector.broadcast %29 : vector<1x64xf32> to vector<8x64xf32>
    %31 = arith.addf %28, %30 : vector<8x64xf32>
    %cst_14 = arith.constant 0.000000e+00 : f32
    %32 = vector.broadcast %cst_14 : f32 to vector<8x64xf32>
    %33 = arith.maximumf %31, %32 : vector<8x64xf32>
    %34 = arith.truncf %33 : vector<8x64xf32> to vector<8x64xbf16>
    %c0_15 = arith.constant 0 : index
    %c0_16 = arith.constant 0 : index
    %35 = vector.load %arg6[%c0_15, %c0_16] : memref<64x32xbf16, #tpu.memory_space<vmem>>, vector<64x32xbf16>
    %cst_17 = arith.constant dense<0.000000e+00> : vector<8x32xf32>
    %36 = tpu.matmul %34, %35, %cst_17 {dimension_numbers = #tpu.dot_dimension_numbers<[1], [0], [0], [1], [0, 0, 1, 1], [], []>} : vector<8x64xbf16>, vector<64x32xbf16>, vector<8x32xf32> -> vector<8x32xf32>
    %c0_18 = arith.constant 0 : index
    %c0_19 = arith.constant 0 : index
    %37 = vector.load %arg7[%c0_18, %c0_19] : memref<1x32xf32, #tpu.memory_space<vmem>>, vector<1x32xf32>
    %38 = vector.broadcast %37 : vector<1x32xf32> to vector<8x32xf32>
    %39 = arith.addf %36, %38 : vector<8x32xf32>
    %40 = arith.addf %0, %39 : vector<8x32xf32>
    %c0_20 = arith.constant 0 : index
    %c0_21 = arith.constant 0 : index
    %41 = vector.load %arg8[%c0_20, %c0_21] : memref<8x32xf32, #tpu.memory_space<vmem>>, vector<8x32xf32>
    tpu.vector_store %arg8[%c0_20, %c0_21], %40 {strides = array<i32>} : memref<8x32xf32, #tpu.memory_space<vmem>>, vector<8x32xf32>,
    return
  }
  func.func @transform_0(%arg0: i32) -> (i32, i32) {
    %c0_i32 = arith.constant 0 : i32
    %c0_i32_0 = arith.constant 0 : i32
    return %arg0, %c0_i32 : i32, i32
  }
  func.func @transform_1(%arg0: i32) -> (i32, i32) {
    %c0_i32 = arith.constant 0 : i32
    %c0_i32_0 = arith.constant 0 : i32
    %c0_i32_1 = arith.constant 0 : i32
    return %c0_i32, %c0_i32_0 : i32, i32
  }
  func.func @transform_2(%arg0: i32) -> (i32, i32) {
    %c0_i32 = arith.constant 0 : i32
    %c0_i32_0 = arith.constant 0 : i32
    %c0_i32_1 = arith.constant 0 : i32
    return %c0_i32, %c0_i32_0 : i32, i32
  }
  func.func @transform_3(%arg0: i32) -> (i32, i32) {
    %c0_i32 = arith.constant 0 : i32
    %c0_i32_0 = arith.constant 0 : i32
    %c0_i32_1 = arith.constant 0 : i32
    return %c0_i32, %c0_i32_0 : i32, i32
  }
  func.func @transform_4(%arg0: i32) -> (i32, i32) {
    %c0_i32 = arith.constant 0 : i32
    %c0_i32_0 = arith.constant 0 : i32
    %c0_i32_1 = arith.constant 0 : i32
    return %c0_i32, %c0_i32_0 : i32, i32
  }
  func.func @transform_5(%arg0: i32) -> (i32, i32) {
    %c0_i32 = arith.constant 0 : i32
    %c0_i32_0 = arith.constant 0 : i32
    %c0_i32_1 = arith.constant 0 : i32
    return %c0_i32, %c0_i32_0 : i32, i32
  }
  func.func @transform_6(%arg0: i32) -> (i32, i32) {
    %c0_i32 = arith.constant 0 : i32
    %c0_i32_0 = arith.constant 0 : i32
    %c0_i32_1 = arith.constant 0 : i32
    return %c0_i32, %c0_i32_0 : i32, i32
  }
  func.func @transform_7(%arg0: i32) -> (i32, i32) {
    %c0_i32 = arith.constant 0 : i32
    %c0_i32_0 = arith.constant 0 : i32
    return %arg0, %c0_i32 : i32, i32
  }
}

module attributes {stable_mosaic.version = 11 : i64} {
  func.func @_attn_sublayer_kernel(%arg0: i32, %arg1: memref<1x8x32xf32, #tpu.memory_space<vmem>>, %arg2: memref<1x8x32xf32, #tpu.memory_space<vmem>>, %arg3: memref<1x32xf32, #tpu.memory_space<vmem>>, %arg4: memref<1x32xf32, #tpu.memory_space<vmem>>, %arg5: memref<32x96xbf16, #tpu.memory_space<vmem>>, %arg6: memref<1x96xf32, #tpu.memory_space<vmem>>, %arg7: memref<32x32xbf16, #tpu.memory_space<vmem>>, %arg8: memref<1x32xf32, #tpu.memory_space<vmem>>, %arg9: memref<1x1x8xf32, #tpu.memory_space<vmem>>, %arg10: memref<1x8x32xf32, #tpu.memory_space<vmem>>) attributes {dimension_semantics = [#tpu.dimension_semantics<parallel>], iteration_bounds = array<i64: 2>, scalar_prefetch = 0 : i64, scratch_operands = 0 : i64, tpu.core_type = #tpu.core_type<tc>, window_params = [{transform_indices = @transform_0, window_bounds = array<i64: 1, 8, 32>}, {transform_indices = @transform_1, window_bounds = array<i64: 1, 8, 32>}, {pipeline_mode = #tpu.pipeline_mode<synchronous>, transform_indices = @transform_2, window_bounds = array<i64: 1, 32>}, {pipeline_mode = #tpu.pipeline_mode<synchronous>, transform_indices = @transform_3, window_bounds = array<i64: 1, 32>}, {pipeline_mode = #tpu.pipeline_mode<synchronous>, transform_indices = @transform_4, window_bounds = array<i64: 32, 96>}, {pipeline_mode = #tpu.pipeline_mode<synchronous>, transform_indices = @transform_5, window_bounds = array<i64: 1, 96>}, {pipeline_mode = #tpu.pipeline_mode<synchronous>, transform_indices = @transform_6, window_bounds = array<i64: 32, 32>}, {pipeline_mode = #tpu.pipeline_mode<synchronous>, transform_indices = @transform_7, window_bounds = array<i64: 1, 32>}, {transform_indices = @transform_8, window_bounds = array<i64: 1, 1, 8>}, {transform_indices = @transform_9, window_bounds = array<i64: 1, 8, 32>}]} {
    %c0 = arith.constant 0 : index
    %c0_0 = arith.constant 0 : index
    %c0_1 = arith.constant 0 : index
    %0 = vector.load %arg1[%c0, %c0_0, %c0_1] : memref<1x8x32xf32, #tpu.memory_space<vmem>>, vector<1x8x32xf32>
    %1 = vector.shape_cast %0 : vector<1x8x32xf32> to vector<8x32xf32>
    %c0_2 = arith.constant 0 : index
    %c0_3 = arith.constant 0 : index
    %2 = vector.load %arg3[%c0_2, %c0_3] : memref<1x32xf32, #tpu.memory_space<vmem>>, vector<1x32xf32>
    %c0_4 = arith.constant 0 : index
    %c0_5 = arith.constant 0 : index
    %3 = vector.load %arg4[%c0_4, %c0_5] : memref<1x32xf32, #tpu.memory_space<vmem>>, vector<1x32xf32>
    %cst = arith.constant dense<0.000000e+00> : vector<8xf32>
    %4 = vector.multi_reduction <add>, %1, %cst [1] : vector<8x32xf32> to vector<8xf32>
    %5 = vector.shape_cast %4 : vector<8xf32> to vector<8x1xf32>
    %cst_6 = arith.constant 3.200000e+01 : f32
    %6 = vector.broadcast %cst_6 : f32 to vector<8x1xf32>
    %7 = arith.divf %5, %6 : vector<8x1xf32>
    %8 = vector.broadcast %7 : vector<8x1xf32> to vector<8x32xf32>
    %9 = arith.subf %1, %8 : vector<8x32xf32>
    %10 = arith.mulf %9, %9 : vector<8x32xf32>
    %cst_7 = arith.constant dense<0.000000e+00> : vector<8xf32>
    %11 = vector.multi_reduction <add>, %10, %cst_7 [1] : vector<8x32xf32> to vector<8xf32>
    %12 = vector.shape_cast %11 : vector<8xf32> to vector<8x1xf32>
    %cst_8 = arith.constant 0.0322580636 : f32
    %13 = vector.broadcast %cst_8 : f32 to vector<8x1xf32>
    %14 = arith.mulf %12, %13 : vector<8x1xf32>
    %15 = math.sqrt %14 : vector<8x1xf32>
    %cst_9 = arith.constant 9.99999997E-7 : f32
    %16 = vector.broadcast %cst_9 : f32 to vector<8x1xf32>
    %17 = arith.addf %15, %16 : vector<8x1xf32>
    %18 = tpu.reciprocal %17 : vector<8x1xf32> -> vector<8x1xf32>
    %19 = vector.broadcast %7 : vector<8x1xf32> to vector<8x32xf32>
    %20 = arith.subf %1, %19 : vector<8x32xf32>
    %21 = vector.broadcast %2 : vector<1x32xf32> to vector<8x32xf32>
    %22 = arith.mulf %21, %20 : vector<8x32xf32>
    %23 = vector.broadcast %18 : vector<8x1xf32> to vector<8x32xf32>
    %24 = arith.mulf %22, %23 : vector<8x32xf32>
    %25 = vector.broadcast %3 : vector<1x32xf32> to vector<8x32xf32>
    %26 = arith.addf %24, %25 : vector<8x32xf32>
    %c0_10 = arith.constant 0 : index
    %c0_11 = arith.constant 0 : index
    %27 = vector.load %arg5[%c0_10, %c0_11] : memref<32x96xbf16, #tpu.memory_space<vmem>>, vector<32x96xbf16>
    %c0_12 = arith.constant 0 : index
    %c0_13 = arith.constant 0 : index
    %28 = vector.load %arg6[%c0_12, %c0_13] : memref<1x96xf32, #tpu.memory_space<vmem>>, vector<1x96xf32>
    %29 = arith.truncf %26 : vector<8x32xf32> to vector<8x32xbf16>
    %cst_14 = arith.constant dense<0.000000e+00> : vector<8x96xf32>
    %30 = tpu.matmul %29, %27, %cst_14 {dimension_numbers = #tpu.dot_dimension_numbers<[1], [0], [0], [1], [0, 0, 1, 1], [], []>} : vector<8x32xbf16>, vector<32x96xbf16>, vector<8x96xf32> -> vector<8x96xf32>
    %31 = vector.broadcast %28 : vector<1x96xf32> to vector<8x96xf32>
    %32 = arith.addf %30, %31 : vector<8x96xf32>
    %33 = vector.extract_strided_slice %32 {offsets = [0, 0], sizes = [8, 32], strides = [1, 1]} : vector<8x96xf32> to vector<8x32xf32>
    %34 = vector.extract_strided_slice %32 {offsets = [0, 32], sizes = [8, 32], strides = [1, 1]} : vector<8x96xf32> to vector<8x32xf32>
    %35 = vector.extract_strided_slice %32 {offsets = [0, 64], sizes = [8, 32], strides = [1, 1]} : vector<8x96xf32> to vector<8x32xf32>
    %c0_15 = arith.constant 0 : index
    %c0_16 = arith.constant 0 : index
    %c0_17 = arith.constant 0 : index
    %36 = vector.load %arg9[%c0_15, %c0_16, %c0_17] : memref<1x1x8xf32, #tpu.memory_space<vmem>>, vector<1x1x8xf32>
    %37 = vector.shape_cast %36 : vector<1x1x8xf32> to vector<1x8xf32>
    %c0_18 = arith.constant 0 : index
    %c0_19 = arith.constant 0 : index
    %38 = vector.load %arg7[%c0_18, %c0_19] : memref<32x32xbf16, #tpu.memory_space<vmem>>, vector<32x32xbf16>
    %cst_20 = arith.constant 0.000000e+00 : f32
    %39 = vector.broadcast %cst_20 : f32 to vector<8x32xf32>
    %40 = vector.extract_strided_slice %33 {offsets = [0, 0], sizes = [8, 8], strides = [1, 1]} : vector<8x32xf32> to vector<8x8xf32>
    %41 = arith.truncf %40 : vector<8x8xf32> to vector<8x8xbf16>
    %42 = vector.extract_strided_slice %34 {offsets = [0, 0], sizes = [8, 8], strides = [1, 1]} : vector<8x32xf32> to vector<8x8xf32>
    %43 = arith.truncf %42 : vector<8x8xf32> to vector<8x8xbf16>
    %44 = vector.extract_strided_slice %35 {offsets = [0, 0], sizes = [8, 8], strides = [1, 1]} : vector<8x32xf32> to vector<8x8xf32>
    %45 = arith.truncf %44 : vector<8x8xf32> to vector<8x8xbf16>
    %cst_21 = arith.constant dense<0.000000e+00> : vector<8x8xf32>
    %46 = tpu.matmul %41, %43, %cst_21 {dimension_numbers = #tpu.dot_dimension_numbers<[1], [1], [0], [0], [0, 0, 1, 0], [], []>} : vector<8x8xbf16>, vector<8x8xbf16>, vector<8x8xf32> -> vector<8x8xf32>
    %cst_22 = arith.constant 0.353553385 : f32
    %47 = vector.broadcast %cst_22 : f32 to vector<8x8xf32>
    %48 = arith.mulf %46, %47 : vector<8x8xf32>
    %cst_23 = arith.constant 0.000000e+00 : f32
    %49 = vector.broadcast %cst_23 : f32 to vector<1x8xf32>
    %50 = arith.cmpf ogt, %37, %49 : vector<1x8xf32>
    %cst_24 = arith.constant -1.000000e+09 : f32
    %51 = vector.shape_cast %50 : vector<1x8xi1> to vector<1x8xi1>
    %52 = vector.broadcast %51 : vector<1x8xi1> to vector<8x8xi1>
    %53 = vector.broadcast %cst_24 : f32 to vector<8x8xf32>
    %54 = arith.select %52, %48, %53 : vector<8x8xi1>, vector<8x8xf32>
    %cst_25 = arith.constant dense<0xFF800000> : vector<8xf32>
    %55 = vector.multi_reduction <maximumf>, %54, %cst_25 [1] : vector<8x8xf32> to vector<8xf32>
    %56 = vector.shape_cast %55 : vector<8xf32> to vector<8x1xf32>
    %57 = vector.broadcast %56 : vector<8x1xf32> to vector<8x8xf32>
    %58 = arith.subf %54, %57 : vector<8x8xf32>
    %59 = math.exp %58 : vector<8x8xf32>
    %cst_26 = arith.constant dense<0.000000e+00> : vector<8xf32>
    %60 = vector.multi_reduction <add>, %59, %cst_26 [1] : vector<8x8xf32> to vector<8xf32>
    %61 = vector.shape_cast %60 : vector<8xf32> to vector<8x1xf32>
    %62 = tpu.reciprocal %61 : vector<8x1xf32> -> vector<8x1xf32>
    %63 = vector.broadcast %62 : vector<8x1xf32> to vector<8x8xf32>
    %64 = arith.mulf %59, %63 : vector<8x8xf32>
    %65 = arith.truncf %64 : vector<8x8xf32> to vector<8x8xbf16>
    %cst_27 = arith.constant dense<0.000000e+00> : vector<8x8xf32>
    %66 = tpu.matmul %65, %45, %cst_27 {dimension_numbers = #tpu.dot_dimension_numbers<[1], [0], [0], [1], [0, 0, 1, 1], [], []>} : vector<8x8xbf16>, vector<8x8xbf16>, vector<8x8xf32> -> vector<8x8xf32>
    %67 = arith.truncf %66 : vector<8x8xf32> to vector<8x8xbf16>
    %68 = vector.extract_strided_slice %38 {offsets = [0, 0], sizes = [8, 32], strides = [1, 1]} : vector<32x32xbf16> to vector<8x32xbf16>
    %cst_28 = arith.constant dense<0.000000e+00> : vector<8x32xf32>
    %69 = tpu.matmul %67, %68, %cst_28 {dimension_numbers = #tpu.dot_dimension_numbers<[1], [0], [0], [1], [0, 0, 1, 1], [], []>} : vector<8x8xbf16>, vector<8x32xbf16>, vector<8x32xf32> -> vector<8x32xf32>
    %70 = arith.addf %39, %69 : vector<8x32xf32>
    %71 = vector.extract_strided_slice %33 {offsets = [0, 8], sizes = [8, 8], strides = [1, 1]} : vector<8x32xf32> to vector<8x8xf32>
    %72 = arith.truncf %71 : vector<8x8xf32> to vector<8x8xbf16>
    %73 = vector.extract_strided_slice %34 {offsets = [0, 8], sizes = [8, 8], strides = [1, 1]} : vector<8x32xf32> to vector<8x8xf32>
    %74 = arith.truncf %73 : vector<8x8xf32> to vector<8x8xbf16>
    %75 = vector.extract_strided_slice %35 {offsets = [0, 8], sizes = [8, 8], strides = [1, 1]} : vector<8x32xf32> to vector<8x8xf32>
    %76 = arith.truncf %75 : vector<8x8xf32> to vector<8x8xbf16>
    %cst_29 = arith.constant dense<0.000000e+00> : vector<8x8xf32>
    %77 = tpu.matmul %72, %74, %cst_29 {dimension_numbers = #tpu.dot_dimension_numbers<[1], [1], [0], [0], [0, 0, 1, 0], [], []>} : vector<8x8xbf16>, vector<8x8xbf16>, vector<8x8xf32> -> vector<8x8xf32>
    %cst_30 = arith.constant 0.353553385 : f32
    %78 = vector.broadcast %cst_30 : f32 to vector<8x8xf32>
    %79 = arith.mulf %77, %78 : vector<8x8xf32>
    %cst_31 = arith.constant 0.000000e+00 : f32
    %80 = vector.broadcast %cst_31 : f32 to vector<1x8xf32>
    %81 = arith.cmpf ogt, %37, %80 : vector<1x8xf32>
    %cst_32 = arith.constant -1.000000e+09 : f32
    %82 = vector.shape_cast %81 : vector<1x8xi1> to vector<1x8xi1>
    %83 = vector.broadcast %82 : vector<1x8xi1> to vector<8x8xi1>
    %84 = vector.broadcast %cst_32 : f32 to vector<8x8xf32>
    %85 = arith.select %83, %79, %84 : vector<8x8xi1>, vector<8x8xf32>
    %cst_33 = arith.constant dense<0xFF800000> : vector<8xf32>
    %86 = vector.multi_reduction <maximumf>, %85, %cst_33 [1] : vector<8x8xf32> to vector<8xf32>
    %87 = vector.shape_cast %86 : vector<8xf32> to vector<8x1xf32>
    %88 = vector.broadcast %87 : vector<8x1xf32> to vector<8x8xf32>
    %89 = arith.subf %85, %88 : vector<8x8xf32>
    %90 = math.exp %89 : vector<8x8xf32>
    %cst_34 = arith.constant dense<0.000000e+00> : vector<8xf32>
    %91 = vector.multi_reduction <add>, %90, %cst_34 [1] : vector<8x8xf32> to vector<8xf32>
    %92 = vector.shape_cast %91 : vector<8xf32> to vector<8x1xf32>
    %93 = tpu.reciprocal %92 : vector<8x1xf32> -> vector<8x1xf32>
    %94 = vector.broadcast %93 : vector<8x1xf32> to vector<8x8xf32>
    %95 = arith.mulf %90, %94 : vector<8x8xf32>
    %96 = arith.truncf %95 : vector<8x8xf32> to vector<8x8xbf16>
    %cst_35 = arith.constant dense<0.000000e+00> : vector<8x8xf32>
    %97 = tpu.matmul %96, %76, %cst_35 {dimension_numbers = #tpu.dot_dimension_numbers<[1], [0], [0], [1], [0, 0, 1, 1], [], []>} : vector<8x8xbf16>, vector<8x8xbf16>, vector<8x8xf32> -> vector<8x8xf32>
    %98 = arith.truncf %97 : vector<8x8xf32> to vector<8x8xbf16>
    %99 = vector.extract_strided_slice %38 {offsets = [8, 0], sizes = [8, 32], strides = [1, 1]} : vector<32x32xbf16> to vector<8x32xbf16>
    %cst_36 = arith.constant dense<0.000000e+00> : vector<8x32xf32>
    %100 = tpu.matmul %98, %99, %cst_36 {dimension_numbers = #tpu.dot_dimension_numbers<[1], [0], [0], [1], [0, 0, 1, 1], [], []>} : vector<8x8xbf16>, vector<8x32xbf16>, vector<8x32xf32> -> vector<8x32xf32>
    %101 = arith.addf %70, %100 : vector<8x32xf32>
    %102 = vector.extract_strided_slice %33 {offsets = [0, 16], sizes = [8, 8], strides = [1, 1]} : vector<8x32xf32> to vector<8x8xf32>
    %103 = arith.truncf %102 : vector<8x8xf32> to vector<8x8xbf16>
    %104 = vector.extract_strided_slice %34 {offsets = [0, 16], sizes = [8, 8], strides = [1, 1]} : vector<8x32xf32> to vector<8x8xf32>
    %105 = arith.truncf %104 : vector<8x8xf32> to vector<8x8xbf16>
    %106 = vector.extract_strided_slice %35 {offsets = [0, 16], sizes = [8, 8], strides = [1, 1]} : vector<8x32xf32> to vector<8x8xf32>
    %107 = arith.truncf %106 : vector<8x8xf32> to vector<8x8xbf16>
    %cst_37 = arith.constant dense<0.000000e+00> : vector<8x8xf32>
    %108 = tpu.matmul %103, %105, %cst_37 {dimension_numbers = #tpu.dot_dimension_numbers<[1], [1], [0], [0], [0, 0, 1, 0], [], []>} : vector<8x8xbf16>, vector<8x8xbf16>, vector<8x8xf32> -> vector<8x8xf32>
    %cst_38 = arith.constant 0.353553385 : f32
    %109 = vector.broadcast %cst_38 : f32 to vector<8x8xf32>
    %110 = arith.mulf %108, %109 : vector<8x8xf32>
    %cst_39 = arith.constant 0.000000e+00 : f32
    %111 = vector.broadcast %cst_39 : f32 to vector<1x8xf32>
    %112 = arith.cmpf ogt, %37, %111 : vector<1x8xf32>
    %cst_40 = arith.constant -1.000000e+09 : f32
    %113 = vector.shape_cast %112 : vector<1x8xi1> to vector<1x8xi1>
    %114 = vector.broadcast %113 : vector<1x8xi1> to vector<8x8xi1>
    %115 = vector.broadcast %cst_40 : f32 to vector<8x8xf32>
    %116 = arith.select %114, %110, %115 : vector<8x8xi1>, vector<8x8xf32>
    %cst_41 = arith.constant dense<0xFF800000> : vector<8xf32>
    %117 = vector.multi_reduction <maximumf>, %116, %cst_41 [1] : vector<8x8xf32> to vector<8xf32>
    %118 = vector.shape_cast %117 : vector<8xf32> to vector<8x1xf32>
    %119 = vector.broadcast %118 : vector<8x1xf32> to vector<8x8xf32>
    %120 = arith.subf %116, %119 : vector<8x8xf32>
    %121 = math.exp %120 : vector<8x8xf32>
    %cst_42 = arith.constant dense<0.000000e+00> : vector<8xf32>
    %122 = vector.multi_reduction <add>, %121, %cst_42 [1] : vector<8x8xf32> to vector<8xf32>
    %123 = vector.shape_cast %122 : vector<8xf32> to vector<8x1xf32>
    %124 = tpu.reciprocal %123 : vector<8x1xf32> -> vector<8x1xf32>
    %125 = vector.broadcast %124 : vector<8x1xf32> to vector<8x8xf32>
    %126 = arith.mulf %121, %125 : vector<8x8xf32>
    %127 = arith.truncf %126 : vector<8x8xf32> to vector<8x8xbf16>
    %cst_43 = arith.constant dense<0.000000e+00> : vector<8x8xf32>
    %128 = tpu.matmul %127, %107, %cst_43 {dimension_numbers = #tpu.dot_dimension_numbers<[1], [0], [0], [1], [0, 0, 1, 1], [], []>} : vector<8x8xbf16>, vector<8x8xbf16>, vector<8x8xf32> -> vector<8x8xf32>
    %129 = arith.truncf %128 : vector<8x8xf32> to vector<8x8xbf16>
    %130 = vector.extract_strided_slice %38 {offsets = [16, 0], sizes = [8, 32], strides = [1, 1]} : vector<32x32xbf16> to vector<8x32xbf16>
    %cst_44 = arith.constant dense<0.000000e+00> : vector<8x32xf32>
    %131 = tpu.matmul %129, %130, %cst_44 {dimension_numbers = #tpu.dot_dimension_numbers<[1], [0], [0], [1], [0, 0, 1, 1], [], []>} : vector<8x8xbf16>, vector<8x32xbf16>, vector<8x32xf32> -> vector<8x32xf32>
    %132 = arith.addf %101, %131 : vector<8x32xf32>
    %133 = vector.extract_strided_slice %33 {offsets = [0, 24], sizes = [8, 8], strides = [1, 1]} : vector<8x32xf32> to vector<8x8xf32>
    %134 = arith.truncf %133 : vector<8x8xf32> to vector<8x8xbf16>
    %135 = vector.extract_strided_slice %34 {offsets = [0, 24], sizes = [8, 8], strides = [1, 1]} : vector<8x32xf32> to vector<8x8xf32>
    %136 = arith.truncf %135 : vector<8x8xf32> to vector<8x8xbf16>
    %137 = vector.extract_strided_slice %35 {offsets = [0, 24], sizes = [8, 8], strides = [1, 1]} : vector<8x32xf32> to vector<8x8xf32>
    %138 = arith.truncf %137 : vector<8x8xf32> to vector<8x8xbf16>
    %cst_45 = arith.constant dense<0.000000e+00> : vector<8x8xf32>
    %139 = tpu.matmul %134, %136, %cst_45 {dimension_numbers = #tpu.dot_dimension_numbers<[1], [1], [0], [0], [0, 0, 1, 0], [], []>} : vector<8x8xbf16>, vector<8x8xbf16>, vector<8x8xf32> -> vector<8x8xf32>
    %cst_46 = arith.constant 0.353553385 : f32
    %140 = vector.broadcast %cst_46 : f32 to vector<8x8xf32>
    %141 = arith.mulf %139, %140 : vector<8x8xf32>
    %cst_47 = arith.constant 0.000000e+00 : f32
    %142 = vector.broadcast %cst_47 : f32 to vector<1x8xf32>
    %143 = arith.cmpf ogt, %37, %142 : vector<1x8xf32>
    %cst_48 = arith.constant -1.000000e+09 : f32
    %144 = vector.shape_cast %143 : vector<1x8xi1> to vector<1x8xi1>
    %145 = vector.broadcast %144 : vector<1x8xi1> to vector<8x8xi1>
    %146 = vector.broadcast %cst_48 : f32 to vector<8x8xf32>
    %147 = arith.select %145, %141, %146 : vector<8x8xi1>, vector<8x8xf32>
    %cst_49 = arith.constant dense<0xFF800000> : vector<8xf32>
    %148 = vector.multi_reduction <maximumf>, %147, %cst_49 [1] : vector<8x8xf32> to vector<8xf32>
    %149 = vector.shape_cast %148 : vector<8xf32> to vector<8x1xf32>
    %150 = vector.broadcast %149 : vector<8x1xf32> to vector<8x8xf32>
    %151 = arith.subf %147, %150 : vector<8x8xf32>
    %152 = math.exp %151 : vector<8x8xf32>
    %cst_50 = arith.constant dense<0.000000e+00> : vector<8xf32>
    %153 = vector.multi_reduction <add>, %152, %cst_50 [1] : vector<8x8xf32> to vector<8xf32>
    %154 = vector.shape_cast %153 : vector<8xf32> to vector<8x1xf32>
    %155 = tpu.reciprocal %154 : vector<8x1xf32> -> vector<8x1xf32>
    %156 = vector.broadcast %155 : vector<8x1xf32> to vector<8x8xf32>
    %157 = arith.mulf %152, %156 : vector<8x8xf32>
    %158 = arith.truncf %157 : vector<8x8xf32> to vector<8x8xbf16>
    %cst_51 = arith.constant dense<0.000000e+00> : vector<8x8xf32>
    %159 = tpu.matmul %158, %138, %cst_51 {dimension_numbers = #tpu.dot_dimension_numbers<[1], [0], [0], [1], [0, 0, 1, 1], [], []>} : vector<8x8xbf16>, vector<8x8xbf16>, vector<8x8xf32> -> vector<8x8xf32>
    %160 = arith.truncf %159 : vector<8x8xf32> to vector<8x8xbf16>
    %161 = vector.extract_strided_slice %38 {offsets = [24, 0], sizes = [8, 32], strides = [1, 1]} : vector<32x32xbf16> to vector<8x32xbf16>
    %cst_52 = arith.constant dense<0.000000e+00> : vector<8x32xf32>
    %162 = tpu.matmul %160, %161, %cst_52 {dimension_numbers = #tpu.dot_dimension_numbers<[1], [0], [0], [1], [0, 0, 1, 1], [], []>} : vector<8x8xbf16>, vector<8x32xbf16>, vector<8x32xf32> -> vector<8x32xf32>
    %163 = arith.addf %132, %162 : vector<8x32xf32>
    %c0_53 = arith.constant 0 : index
    %c0_54 = arith.constant 0 : index
    %164 = vector.load %arg8[%c0_53, %c0_54] : memref<1x32xf32, #tpu.memory_space<vmem>>, vector<1x32xf32>
    %165 = vector.broadcast %164 : vector<1x32xf32> to vector<8x32xf32>
    %166 = arith.addf %163, %165 : vector<8x32xf32>
    %167 = arith.addf %1, %166 : vector<8x32xf32>
    %c0_55 = arith.constant 0 : index
    %c0_56 = arith.constant 0 : index
    %c0_57 = arith.constant 0 : index
    %168 = vector.load %arg10[%c0_55, %c0_56, %c0_57] : memref<1x8x32xf32, #tpu.memory_space<vmem>>, vector<1x8x32xf32>
    %169 = vector.shape_cast %168 : vector<1x8x32xf32> to vector<8x32xf32>
    %170 = vector.shape_cast %167 : vector<8x32xf32> to vector<1x8x32xf32>
    tpu.vector_store %arg10[%c0_55, %c0_56, %c0_57], %170 {strides = array<i32>} : memref<1x8x32xf32, #tpu.memory_space<vmem>>, vector<1x8x32xf32>,
    return
  }
  func.func @transform_0(%arg0: i32) -> (i32, i32, i32) {
    %c0_i32 = arith.constant 0 : i32
    %c0_i32_0 = arith.constant 0 : i32
    %c0_i32_1 = arith.constant 0 : i32
    return %arg0, %c0_i32, %c0_i32_0 : i32, i32, i32
  }
  func.func @transform_1(%arg0: i32) -> (i32, i32, i32) {
    %c0_i32 = arith.constant 0 : i32
    %c0_i32_0 = arith.constant 0 : i32
    %c0_i32_1 = arith.constant 0 : i32
    return %arg0, %c0_i32, %c0_i32_0 : i32, i32, i32
  }
  func.func @transform_2(%arg0: i32) -> (i32, i32) {
    %c0_i32 = arith.constant 0 : i32
    %c0_i32_0 = arith.constant 0 : i32
    %c0_i32_1 = arith.constant 0 : i32
    return %c0_i32, %c0_i32_0 : i32, i32
  }
  func.func @transform_3(%arg0: i32) -> (i32, i32) {
    %c0_i32 = arith.constant 0 : i32
    %c0_i32_0 = arith.constant 0 : i32
    %c0_i32_1 = arith.constant 0 : i32
    return %c0_i32, %c0_i32_0 : i32, i32
  }
  func.func @transform_4(%arg0: i32) -> (i32, i32) {
    %c0_i32 = arith.constant 0 : i32
    %c0_i32_0 = arith.constant 0 : i32
    %c0_i32_1 = arith.constant 0 : i32
    return %c0_i32, %c0_i32_0 : i32, i32
  }
  func.func @transform_5(%arg0: i32) -> (i32, i32) {
    %c0_i32 = arith.constant 0 : i32
    %c0_i32_0 = arith.constant 0 : i32
    %c0_i32_1 = arith.constant 0 : i32
    return %c0_i32, %c0_i32_0 : i32, i32
  }
  func.func @transform_6(%arg0: i32) -> (i32, i32) {
    %c0_i32 = arith.constant 0 : i32
    %c0_i32_0 = arith.constant 0 : i32
    %c0_i32_1 = arith.constant 0 : i32
    return %c0_i32, %c0_i32_0 : i32, i32
  }
  func.func @transform_7(%arg0: i32) -> (i32, i32) {
    %c0_i32 = arith.constant 0 : i32
    %c0_i32_0 = arith.constant 0 : i32
    %c0_i32_1 = arith.constant 0 : i32
    return %c0_i32, %c0_i32_0 : i32, i32
  }
  func.func @transform_8(%arg0: i32) -> (i32, i32, i32) {
    %c0_i32 = arith.constant 0 : i32
    %c0_i32_0 = arith.constant 0 : i32
    %c0_i32_1 = arith.constant 0 : i32
    return %arg0, %c0_i32, %c0_i32_0 : i32, i32, i32
  }
  func.func @transform_9(%arg0: i32) -> (i32, i32, i32) {
    %c0_i32 = arith.constant 0 : i32
    %c0_i32_0 = arith.constant 0 : i32
    %c0_i32_1 = arith.constant 0 : i32
    return %arg0, %c0_i32, %c0_i32_0 : i32, i32, i32
  }
}

module attributes {stable_mosaic.version = 11 : i64} {
  func.func @_attn_sublayer_kernel(%arg0: i32, %arg1: memref<1x8x32xf32, #tpu.memory_space<vmem>>, %arg2: memref<1x8x32xf32, #tpu.memory_space<vmem>>, %arg3: memref<1x32xf32, #tpu.memory_space<vmem>>, %arg4: memref<1x32xf32, #tpu.memory_space<vmem>>, %arg5: memref<32x96xbf16, #tpu.memory_space<vmem>>, %arg6: memref<1x96xf32, #tpu.memory_space<vmem>>, %arg7: memref<32x32xbf16, #tpu.memory_space<vmem>>, %arg8: memref<1x32xf32, #tpu.memory_space<vmem>>, %arg9: memref<1x8x8xf32, #tpu.memory_space<vmem>>, %arg10: memref<1x8x32xf32, #tpu.memory_space<vmem>>) attributes {dimension_semantics = [#tpu.dimension_semantics<parallel>], iteration_bounds = array<i64: 2>, scalar_prefetch = 0 : i64, scratch_operands = 0 : i64, tpu.core_type = #tpu.core_type<tc>, window_params = [{transform_indices = @transform_0, window_bounds = array<i64: 1, 8, 32>}, {transform_indices = @transform_1, window_bounds = array<i64: 1, 8, 32>}, {pipeline_mode = #tpu.pipeline_mode<synchronous>, transform_indices = @transform_2, window_bounds = array<i64: 1, 32>}, {pipeline_mode = #tpu.pipeline_mode<synchronous>, transform_indices = @transform_3, window_bounds = array<i64: 1, 32>}, {pipeline_mode = #tpu.pipeline_mode<synchronous>, transform_indices = @transform_4, window_bounds = array<i64: 32, 96>}, {pipeline_mode = #tpu.pipeline_mode<synchronous>, transform_indices = @transform_5, window_bounds = array<i64: 1, 96>}, {pipeline_mode = #tpu.pipeline_mode<synchronous>, transform_indices = @transform_6, window_bounds = array<i64: 32, 32>}, {pipeline_mode = #tpu.pipeline_mode<synchronous>, transform_indices = @transform_7, window_bounds = array<i64: 1, 32>}, {transform_indices = @transform_8, window_bounds = array<i64: 1, 8, 8>}, {transform_indices = @transform_9, window_bounds = array<i64: 1, 8, 32>}]} {
    %c0 = arith.constant 0 : index
    %c0_0 = arith.constant 0 : index
    %c0_1 = arith.constant 0 : index
    %0 = vector.load %arg1[%c0, %c0_0, %c0_1] : memref<1x8x32xf32, #tpu.memory_space<vmem>>, vector<1x8x32xf32>
    %1 = vector.shape_cast %0 : vector<1x8x32xf32> to vector<8x32xf32>
    %c0_2 = arith.constant 0 : index
    %c0_3 = arith.constant 0 : index
    %2 = vector.load %arg3[%c0_2, %c0_3] : memref<1x32xf32, #tpu.memory_space<vmem>>, vector<1x32xf32>
    %c0_4 = arith.constant 0 : index
    %c0_5 = arith.constant 0 : index
    %3 = vector.load %arg4[%c0_4, %c0_5] : memref<1x32xf32, #tpu.memory_space<vmem>>, vector<1x32xf32>
    %cst = arith.constant dense<0.000000e+00> : vector<8xf32>
    %4 = vector.multi_reduction <add>, %1, %cst [1] : vector<8x32xf32> to vector<8xf32>
    %5 = vector.shape_cast %4 : vector<8xf32> to vector<8x1xf32>
    %cst_6 = arith.constant 3.200000e+01 : f32
    %6 = vector.broadcast %cst_6 : f32 to vector<8x1xf32>
    %7 = arith.divf %5, %6 : vector<8x1xf32>
    %8 = vector.broadcast %7 : vector<8x1xf32> to vector<8x32xf32>
    %9 = arith.subf %1, %8 : vector<8x32xf32>
    %10 = arith.mulf %9, %9 : vector<8x32xf32>
    %cst_7 = arith.constant dense<0.000000e+00> : vector<8xf32>
    %11 = vector.multi_reduction <add>, %10, %cst_7 [1] : vector<8x32xf32> to vector<8xf32>
    %12 = vector.shape_cast %11 : vector<8xf32> to vector<8x1xf32>
    %cst_8 = arith.constant 0.0322580636 : f32
    %13 = vector.broadcast %cst_8 : f32 to vector<8x1xf32>
    %14 = arith.mulf %12, %13 : vector<8x1xf32>
    %15 = math.sqrt %14 : vector<8x1xf32>
    %cst_9 = arith.constant 9.99999997E-7 : f32
    %16 = vector.broadcast %cst_9 : f32 to vector<8x1xf32>
    %17 = arith.addf %15, %16 : vector<8x1xf32>
    %18 = tpu.reciprocal %17 : vector<8x1xf32> -> vector<8x1xf32>
    %19 = vector.broadcast %7 : vector<8x1xf32> to vector<8x32xf32>
    %20 = arith.subf %1, %19 : vector<8x32xf32>
    %21 = vector.broadcast %2 : vector<1x32xf32> to vector<8x32xf32>
    %22 = arith.mulf %21, %20 : vector<8x32xf32>
    %23 = vector.broadcast %18 : vector<8x1xf32> to vector<8x32xf32>
    %24 = arith.mulf %22, %23 : vector<8x32xf32>
    %25 = vector.broadcast %3 : vector<1x32xf32> to vector<8x32xf32>
    %26 = arith.addf %24, %25 : vector<8x32xf32>
    %c0_10 = arith.constant 0 : index
    %c0_11 = arith.constant 0 : index
    %27 = vector.load %arg5[%c0_10, %c0_11] : memref<32x96xbf16, #tpu.memory_space<vmem>>, vector<32x96xbf16>
    %c0_12 = arith.constant 0 : index
    %c0_13 = arith.constant 0 : index
    %28 = vector.load %arg6[%c0_12, %c0_13] : memref<1x96xf32, #tpu.memory_space<vmem>>, vector<1x96xf32>
    %29 = arith.truncf %26 : vector<8x32xf32> to vector<8x32xbf16>
    %cst_14 = arith.constant dense<0.000000e+00> : vector<8x96xf32>
    %30 = tpu.matmul %29, %27, %cst_14 {dimension_numbers = #tpu.dot_dimension_numbers<[1], [0], [0], [1], [0, 0, 1, 1], [], []>} : vector<8x32xbf16>, vector<32x96xbf16>, vector<8x96xf32> -> vector<8x96xf32>
    %31 = vector.broadcast %28 : vector<1x96xf32> to vector<8x96xf32>
    %32 = arith.addf %30, %31 : vector<8x96xf32>
    %33 = vector.extract_strided_slice %32 {offsets = [0, 0], sizes = [8, 32], strides = [1, 1]} : vector<8x96xf32> to vector<8x32xf32>
    %34 = vector.extract_strided_slice %32 {offsets = [0, 32], sizes = [8, 32], strides = [1, 1]} : vector<8x96xf32> to vector<8x32xf32>
    %35 = vector.extract_strided_slice %32 {offsets = [0, 64], sizes = [8, 32], strides = [1, 1]} : vector<8x96xf32> to vector<8x32xf32>
    %c0_15 = arith.constant 0 : index
    %c0_16 = arith.constant 0 : index
    %c0_17 = arith.constant 0 : index
    %36 = vector.load %arg9[%c0_15, %c0_16, %c0_17] : memref<1x8x8xf32, #tpu.memory_space<vmem>>, vector<1x8x8xf32>
    %37 = vector.shape_cast %36 : vector<1x8x8xf32> to vector<8x8xf32>
    %c0_18 = arith.constant 0 : index
    %c0_19 = arith.constant 0 : index
    %38 = vector.load %arg7[%c0_18, %c0_19] : memref<32x32xbf16, #tpu.memory_space<vmem>>, vector<32x32xbf16>
    %cst_20 = arith.constant 0.000000e+00 : f32
    %39 = vector.broadcast %cst_20 : f32 to vector<8x32xf32>
    %40 = vector.extract_strided_slice %33 {offsets = [0, 0], sizes = [8, 8], strides = [1, 1]} : vector<8x32xf32> to vector<8x8xf32>
    %41 = arith.truncf %40 : vector<8x8xf32> to vector<8x8xbf16>
    %42 = vector.extract_strided_slice %34 {offsets = [0, 0], sizes = [8, 8], strides = [1, 1]} : vector<8x32xf32> to vector<8x8xf32>
    %43 = arith.truncf %42 : vector<8x8xf32> to vector<8x8xbf16>
    %44 = vector.extract_strided_slice %35 {offsets = [0, 0], sizes = [8, 8], strides = [1, 1]} : vector<8x32xf32> to vector<8x8xf32>
    %45 = arith.truncf %44 : vector<8x8xf32> to vector<8x8xbf16>
    %cst_21 = arith.constant dense<0.000000e+00> : vector<8x8xf32>
    %46 = tpu.matmul %41, %43, %cst_21 {dimension_numbers = #tpu.dot_dimension_numbers<[1], [1], [0], [0], [0, 0, 1, 0], [], []>} : vector<8x8xbf16>, vector<8x8xbf16>, vector<8x8xf32> -> vector<8x8xf32>
    %cst_22 = arith.constant 0.353553385 : f32
    %47 = vector.broadcast %cst_22 : f32 to vector<8x8xf32>
    %48 = arith.mulf %46, %47 : vector<8x8xf32>
    %cst_23 = arith.constant 0.000000e+00 : f32
    %49 = vector.broadcast %cst_23 : f32 to vector<8x8xf32>
    %50 = arith.cmpf ogt, %37, %49 : vector<8x8xf32>
    %cst_24 = arith.constant -1.000000e+09 : f32
    %51 = vector.broadcast %cst_24 : f32 to vector<8x8xf32>
    %52 = arith.select %50, %48, %51 : vector<8x8xi1>, vector<8x8xf32>
    %cst_25 = arith.constant dense<0xFF800000> : vector<8xf32>
    %53 = vector.multi_reduction <maximumf>, %52, %cst_25 [1] : vector<8x8xf32> to vector<8xf32>
    %54 = vector.shape_cast %53 : vector<8xf32> to vector<8x1xf32>
    %55 = vector.broadcast %54 : vector<8x1xf32> to vector<8x8xf32>
    %56 = arith.subf %52, %55 : vector<8x8xf32>
    %57 = math.exp %56 : vector<8x8xf32>
    %cst_26 = arith.constant dense<0.000000e+00> : vector<8xf32>
    %58 = vector.multi_reduction <add>, %57, %cst_26 [1] : vector<8x8xf32> to vector<8xf32>
    %59 = vector.shape_cast %58 : vector<8xf32> to vector<8x1xf32>
    %60 = tpu.reciprocal %59 : vector<8x1xf32> -> vector<8x1xf32>
    %61 = vector.broadcast %60 : vector<8x1xf32> to vector<8x8xf32>
    %62 = arith.mulf %57, %61 : vector<8x8xf32>
    %63 = arith.truncf %62 : vector<8x8xf32> to vector<8x8xbf16>
    %cst_27 = arith.constant dense<0.000000e+00> : vector<8x8xf32>
    %64 = tpu.matmul %63, %45, %cst_27 {dimension_numbers = #tpu.dot_dimension_numbers<[1], [0], [0], [1], [0, 0, 1, 1], [], []>} : vector<8x8xbf16>, vector<8x8xbf16>, vector<8x8xf32> -> vector<8x8xf32>
    %65 = arith.truncf %64 : vector<8x8xf32> to vector<8x8xbf16>
    %66 = vector.extract_strided_slice %38 {offsets = [0, 0], sizes = [8, 32], strides = [1, 1]} : vector<32x32xbf16> to vector<8x32xbf16>
    %cst_28 = arith.constant dense<0.000000e+00> : vector<8x32xf32>
    %67 = tpu.matmul %65, %66, %cst_28 {dimension_numbers = #tpu.dot_dimension_numbers<[1], [0], [0], [1], [0, 0, 1, 1], [], []>} : vector<8x8xbf16>, vector<8x32xbf16>, vector<8x32xf32> -> vector<8x32xf32>
    %68 = arith.addf %39, %67 : vector<8x32xf32>
    %69 = vector.extract_strided_slice %33 {offsets = [0, 8], sizes = [8, 8], strides = [1, 1]} : vector<8x32xf32> to vector<8x8xf32>
    %70 = arith.truncf %69 : vector<8x8xf32> to vector<8x8xbf16>
    %71 = vector.extract_strided_slice %34 {offsets = [0, 8], sizes = [8, 8], strides = [1, 1]} : vector<8x32xf32> to vector<8x8xf32>
    %72 = arith.truncf %71 : vector<8x8xf32> to vector<8x8xbf16>
    %73 = vector.extract_strided_slice %35 {offsets = [0, 8], sizes = [8, 8], strides = [1, 1]} : vector<8x32xf32> to vector<8x8xf32>
    %74 = arith.truncf %73 : vector<8x8xf32> to vector<8x8xbf16>
    %cst_29 = arith.constant dense<0.000000e+00> : vector<8x8xf32>
    %75 = tpu.matmul %70, %72, %cst_29 {dimension_numbers = #tpu.dot_dimension_numbers<[1], [1], [0], [0], [0, 0, 1, 0], [], []>} : vector<8x8xbf16>, vector<8x8xbf16>, vector<8x8xf32> -> vector<8x8xf32>
    %cst_30 = arith.constant 0.353553385 : f32
    %76 = vector.broadcast %cst_30 : f32 to vector<8x8xf32>
    %77 = arith.mulf %75, %76 : vector<8x8xf32>
    %cst_31 = arith.constant 0.000000e+00 : f32
    %78 = vector.broadcast %cst_31 : f32 to vector<8x8xf32>
    %79 = arith.cmpf ogt, %37, %78 : vector<8x8xf32>
    %cst_32 = arith.constant -1.000000e+09 : f32
    %80 = vector.broadcast %cst_32 : f32 to vector<8x8xf32>
    %81 = arith.select %79, %77, %80 : vector<8x8xi1>, vector<8x8xf32>
    %cst_33 = arith.constant dense<0xFF800000> : vector<8xf32>
    %82 = vector.multi_reduction <maximumf>, %81, %cst_33 [1] : vector<8x8xf32> to vector<8xf32>
    %83 = vector.shape_cast %82 : vector<8xf32> to vector<8x1xf32>
    %84 = vector.broadcast %83 : vector<8x1xf32> to vector<8x8xf32>
    %85 = arith.subf %81, %84 : vector<8x8xf32>
    %86 = math.exp %85 : vector<8x8xf32>
    %cst_34 = arith.constant dense<0.000000e+00> : vector<8xf32>
    %87 = vector.multi_reduction <add>, %86, %cst_34 [1] : vector<8x8xf32> to vector<8xf32>
    %88 = vector.shape_cast %87 : vector<8xf32> to vector<8x1xf32>
    %89 = tpu.reciprocal %88 : vector<8x1xf32> -> vector<8x1xf32>
    %90 = vector.broadcast %89 : vector<8x1xf32> to vector<8x8xf32>
    %91 = arith.mulf %86, %90 : vector<8x8xf32>
    %92 = arith.truncf %91 : vector<8x8xf32> to vector<8x8xbf16>
    %cst_35 = arith.constant dense<0.000000e+00> : vector<8x8xf32>
    %93 = tpu.matmul %92, %74, %cst_35 {dimension_numbers = #tpu.dot_dimension_numbers<[1], [0], [0], [1], [0, 0, 1, 1], [], []>} : vector<8x8xbf16>, vector<8x8xbf16>, vector<8x8xf32> -> vector<8x8xf32>
    %94 = arith.truncf %93 : vector<8x8xf32> to vector<8x8xbf16>
    %95 = vector.extract_strided_slice %38 {offsets = [8, 0], sizes = [8, 32], strides = [1, 1]} : vector<32x32xbf16> to vector<8x32xbf16>
    %cst_36 = arith.constant dense<0.000000e+00> : vector<8x32xf32>
    %96 = tpu.matmul %94, %95, %cst_36 {dimension_numbers = #tpu.dot_dimension_numbers<[1], [0], [0], [1], [0, 0, 1, 1], [], []>} : vector<8x8xbf16>, vector<8x32xbf16>, vector<8x32xf32> -> vector<8x32xf32>
    %97 = arith.addf %68, %96 : vector<8x32xf32>
    %98 = vector.extract_strided_slice %33 {offsets = [0, 16], sizes = [8, 8], strides = [1, 1]} : vector<8x32xf32> to vector<8x8xf32>
    %99 = arith.truncf %98 : vector<8x8xf32> to vector<8x8xbf16>
    %100 = vector.extract_strided_slice %34 {offsets = [0, 16], sizes = [8, 8], strides = [1, 1]} : vector<8x32xf32> to vector<8x8xf32>
    %101 = arith.truncf %100 : vector<8x8xf32> to vector<8x8xbf16>
    %102 = vector.extract_strided_slice %35 {offsets = [0, 16], sizes = [8, 8], strides = [1, 1]} : vector<8x32xf32> to vector<8x8xf32>
    %103 = arith.truncf %102 : vector<8x8xf32> to vector<8x8xbf16>
    %cst_37 = arith.constant dense<0.000000e+00> : vector<8x8xf32>
    %104 = tpu.matmul %99, %101, %cst_37 {dimension_numbers = #tpu.dot_dimension_numbers<[1], [1], [0], [0], [0, 0, 1, 0], [], []>} : vector<8x8xbf16>, vector<8x8xbf16>, vector<8x8xf32> -> vector<8x8xf32>
    %cst_38 = arith.constant 0.353553385 : f32
    %105 = vector.broadcast %cst_38 : f32 to vector<8x8xf32>
    %106 = arith.mulf %104, %105 : vector<8x8xf32>
    %cst_39 = arith.constant 0.000000e+00 : f32
    %107 = vector.broadcast %cst_39 : f32 to vector<8x8xf32>
    %108 = arith.cmpf ogt, %37, %107 : vector<8x8xf32>
    %cst_40 = arith.constant -1.000000e+09 : f32
    %109 = vector.broadcast %cst_40 : f32 to vector<8x8xf32>
    %110 = arith.select %108, %106, %109 : vector<8x8xi1>, vector<8x8xf32>
    %cst_41 = arith.constant dense<0xFF800000> : vector<8xf32>
    %111 = vector.multi_reduction <maximumf>, %110, %cst_41 [1] : vector<8x8xf32> to vector<8xf32>
    %112 = vector.shape_cast %111 : vector<8xf32> to vector<8x1xf32>
    %113 = vector.broadcast %112 : vector<8x1xf32> to vector<8x8xf32>
    %114 = arith.subf %110, %113 : vector<8x8xf32>
    %115 = math.exp %114 : vector<8x8xf32>
    %cst_42 = arith.constant dense<0.000000e+00> : vector<8xf32>
    %116 = vector.multi_reduction <add>, %115, %cst_42 [1] : vector<8x8xf32> to vector<8xf32>
    %117 = vector.shape_cast %116 : vector<8xf32> to vector<8x1xf32>
    %118 = tpu.reciprocal %117 : vector<8x1xf32> -> vector<8x1xf32>
    %119 = vector.broadcast %118 : vector<8x1xf32> to vector<8x8xf32>
    %120 = arith.mulf %115, %119 : vector<8x8xf32>
    %121 = arith.truncf %120 : vector<8x8xf32> to vector<8x8xbf16>
    %cst_43 = arith.constant dense<0.000000e+00> : vector<8x8xf32>
    %122 = tpu.matmul %121, %103, %cst_43 {dimension_numbers = #tpu.dot_dimension_numbers<[1], [0], [0], [1], [0, 0, 1, 1], [], []>} : vector<8x8xbf16>, vector<8x8xbf16>, vector<8x8xf32> -> vector<8x8xf32>
    %123 = arith.truncf %122 : vector<8x8xf32> to vector<8x8xbf16>
    %124 = vector.extract_strided_slice %38 {offsets = [16, 0], sizes = [8, 32], strides = [1, 1]} : vector<32x32xbf16> to vector<8x32xbf16>
    %cst_44 = arith.constant dense<0.000000e+00> : vector<8x32xf32>
    %125 = tpu.matmul %123, %124, %cst_44 {dimension_numbers = #tpu.dot_dimension_numbers<[1], [0], [0], [1], [0, 0, 1, 1], [], []>} : vector<8x8xbf16>, vector<8x32xbf16>, vector<8x32xf32> -> vector<8x32xf32>
    %126 = arith.addf %97, %125 : vector<8x32xf32>
    %127 = vector.extract_strided_slice %33 {offsets = [0, 24], sizes = [8, 8], strides = [1, 1]} : vector<8x32xf32> to vector<8x8xf32>
    %128 = arith.truncf %127 : vector<8x8xf32> to vector<8x8xbf16>
    %129 = vector.extract_strided_slice %34 {offsets = [0, 24], sizes = [8, 8], strides = [1, 1]} : vector<8x32xf32> to vector<8x8xf32>
    %130 = arith.truncf %129 : vector<8x8xf32> to vector<8x8xbf16>
    %131 = vector.extract_strided_slice %35 {offsets = [0, 24], sizes = [8, 8], strides = [1, 1]} : vector<8x32xf32> to vector<8x8xf32>
    %132 = arith.truncf %131 : vector<8x8xf32> to vector<8x8xbf16>
    %cst_45 = arith.constant dense<0.000000e+00> : vector<8x8xf32>
    %133 = tpu.matmul %128, %130, %cst_45 {dimension_numbers = #tpu.dot_dimension_numbers<[1], [1], [0], [0], [0, 0, 1, 0], [], []>} : vector<8x8xbf16>, vector<8x8xbf16>, vector<8x8xf32> -> vector<8x8xf32>
    %cst_46 = arith.constant 0.353553385 : f32
    %134 = vector.broadcast %cst_46 : f32 to vector<8x8xf32>
    %135 = arith.mulf %133, %134 : vector<8x8xf32>
    %cst_47 = arith.constant 0.000000e+00 : f32
    %136 = vector.broadcast %cst_47 : f32 to vector<8x8xf32>
    %137 = arith.cmpf ogt, %37, %136 : vector<8x8xf32>
    %cst_48 = arith.constant -1.000000e+09 : f32
    %138 = vector.broadcast %cst_48 : f32 to vector<8x8xf32>
    %139 = arith.select %137, %135, %138 : vector<8x8xi1>, vector<8x8xf32>
    %cst_49 = arith.constant dense<0xFF800000> : vector<8xf32>
    %140 = vector.multi_reduction <maximumf>, %139, %cst_49 [1] : vector<8x8xf32> to vector<8xf32>
    %141 = vector.shape_cast %140 : vector<8xf32> to vector<8x1xf32>
    %142 = vector.broadcast %141 : vector<8x1xf32> to vector<8x8xf32>
    %143 = arith.subf %139, %142 : vector<8x8xf32>
    %144 = math.exp %143 : vector<8x8xf32>
    %cst_50 = arith.constant dense<0.000000e+00> : vector<8xf32>
    %145 = vector.multi_reduction <add>, %144, %cst_50 [1] : vector<8x8xf32> to vector<8xf32>
    %146 = vector.shape_cast %145 : vector<8xf32> to vector<8x1xf32>
    %147 = tpu.reciprocal %146 : vector<8x1xf32> -> vector<8x1xf32>
    %148 = vector.broadcast %147 : vector<8x1xf32> to vector<8x8xf32>
    %149 = arith.mulf %144, %148 : vector<8x8xf32>
    %150 = arith.truncf %149 : vector<8x8xf32> to vector<8x8xbf16>
    %cst_51 = arith.constant dense<0.000000e+00> : vector<8x8xf32>
    %151 = tpu.matmul %150, %132, %cst_51 {dimension_numbers = #tpu.dot_dimension_numbers<[1], [0], [0], [1], [0, 0, 1, 1], [], []>} : vector<8x8xbf16>, vector<8x8xbf16>, vector<8x8xf32> -> vector<8x8xf32>
    %152 = arith.truncf %151 : vector<8x8xf32> to vector<8x8xbf16>
    %153 = vector.extract_strided_slice %38 {offsets = [24, 0], sizes = [8, 32], strides = [1, 1]} : vector<32x32xbf16> to vector<8x32xbf16>
    %cst_52 = arith.constant dense<0.000000e+00> : vector<8x32xf32>
    %154 = tpu.matmul %152, %153, %cst_52 {dimension_numbers = #tpu.dot_dimension_numbers<[1], [0], [0], [1], [0, 0, 1, 1], [], []>} : vector<8x8xbf16>, vector<8x32xbf16>, vector<8x32xf32> -> vector<8x32xf32>
    %155 = arith.addf %126, %154 : vector<8x32xf32>
    %c0_53 = arith.constant 0 : index
    %c0_54 = arith.constant 0 : index
    %156 = vector.load %arg8[%c0_53, %c0_54] : memref<1x32xf32, #tpu.memory_space<vmem>>, vector<1x32xf32>
    %157 = vector.broadcast %156 : vector<1x32xf32> to vector<8x32xf32>
    %158 = arith.addf %155, %157 : vector<8x32xf32>
    %159 = arith.addf %1, %158 : vector<8x32xf32>
    %c0_55 = arith.constant 0 : index
    %c0_56 = arith.constant 0 : index
    %c0_57 = arith.constant 0 : index
    %160 = vector.load %arg10[%c0_55, %c0_56, %c0_57] : memref<1x8x32xf32, #tpu.memory_space<vmem>>, vector<1x8x32xf32>
    %161 = vector.shape_cast %160 : vector<1x8x32xf32> to vector<8x32xf32>
    %162 = vector.shape_cast %159 : vector<8x32xf32> to vector<1x8x32xf32>
    tpu.vector_store %arg10[%c0_55, %c0_56, %c0_57], %162 {strides = array<i32>} : memref<1x8x32xf32, #tpu.memory_space<vmem>>, vector<1x8x32xf32>,
    return
  }
  func.func @transform_0(%arg0: i32) -> (i32, i32, i32) {
    %c0_i32 = arith.constant 0 : i32
    %c0_i32_0 = arith.constant 0 : i32
    %c0_i32_1 = arith.constant 0 : i32
    return %arg0, %c0_i32, %c0_i32_0 : i32, i32, i32
  }
  func.func @transform_1(%arg0: i32) -> (i32, i32, i32) {
    %c0_i32 = arith.constant 0 : i32
    %c0_i32_0 = arith.constant 0 : i32
    %c0_i32_1 = arith.constant 0 : i32
    return %arg0, %c0_i32, %c0_i32_0 : i32, i32, i32
  }
  func.func @transform_2(%arg0: i32) -> (i32, i32) {
    %c0_i32 = arith.constant 0 : i32
    %c0_i32_0 = arith.constant 0 : i32
    %c0_i32_1 = arith.constant 0 : i32
    return %c0_i32, %c0_i32_0 : i32, i32
  }
  func.func @transform_3(%arg0: i32) -> (i32, i32) {
    %c0_i32 = arith.constant 0 : i32
    %c0_i32_0 = arith.constant 0 : i32
    %c0_i32_1 = arith.constant 0 : i32
    return %c0_i32, %c0_i32_0 : i32, i32
  }
  func.func @transform_4(%arg0: i32) -> (i32, i32) {
    %c0_i32 = arith.constant 0 : i32
    %c0_i32_0 = arith.constant 0 : i32
    %c0_i32_1 = arith.constant 0 : i32
    return %c0_i32, %c0_i32_0 : i32, i32
  }
  func.func @transform_5(%arg0: i32) -> (i32, i32) {
    %c0_i32 = arith.constant 0 : i32
    %c0_i32_0 = arith.constant 0 : i32
    %c0_i32_1 = arith.constant 0 : i32
    return %c0_i32, %c0_i32_0 : i32, i32
  }
  func.func @transform_6(%arg0: i32) -> (i32, i32) {
    %c0_i32 = arith.constant 0 : i32
    %c0_i32_0 = arith.constant 0 : i32
    %c0_i32_1 = arith.constant 0 : i32
    return %c0_i32, %c0_i32_0 : i32, i32
  }
  func.func @transform_7(%arg0: i32) -> (i32, i32) {
    %c0_i32 = arith.constant 0 : i32
    %c0_i32_0 = arith.constant 0 : i32
    %c0_i32_1 = arith.constant 0 : i32
    return %c0_i32, %c0_i32_0 : i32, i32
  }
  func.func @transform_8(%arg0: i32) -> (i32, i32, i32) {
    %c0_i32 = arith.constant 0 : i32
    %c0_i32_0 = arith.constant 0 : i32
    %c0_i32_1 = arith.constant 0 : i32
    return %arg0, %c0_i32, %c0_i32_0 : i32, i32, i32
  }
  func.func @transform_9(%arg0: i32) -> (i32, i32, i32) {
    %c0_i32 = arith.constant 0 : i32
    %c0_i32_0 = arith.constant 0 : i32
    %c0_i32_1 = arith.constant 0 : i32
    return %arg0, %c0_i32, %c0_i32_0 : i32, i32, i32
  }
}

module attributes {stable_mosaic.version = 11 : i64} {
  func.func @_ln_kernel(%arg0: i32, %arg1: memref<8x32xf32, #tpu.memory_space<vmem>>, %arg2: memref<1x32xf32, #tpu.memory_space<vmem>>, %arg3: memref<1x32xf32, #tpu.memory_space<vmem>>, %arg4: memref<8x32xf32, #tpu.memory_space<vmem>>) attributes {dimension_semantics = [#tpu.dimension_semantics<parallel>], iteration_bounds = array<i64: 2>, scalar_prefetch = 0 : i64, scratch_operands = 0 : i64, tpu.core_type = #tpu.core_type<tc>, window_params = [{transform_indices = @transform_0, window_bounds = array<i64: 8, 32>}, {pipeline_mode = #tpu.pipeline_mode<synchronous>, transform_indices = @transform_1, window_bounds = array<i64: 1, 32>}, {pipeline_mode = #tpu.pipeline_mode<synchronous>, transform_indices = @transform_2, window_bounds = array<i64: 1, 32>}, {transform_indices = @transform_3, window_bounds = array<i64: 8, 32>}]} {
    %c0 = arith.constant 0 : index
    %c0_0 = arith.constant 0 : index
    %0 = vector.load %arg1[%c0, %c0_0] : memref<8x32xf32, #tpu.memory_space<vmem>>, vector<8x32xf32>
    %c0_1 = arith.constant 0 : index
    %c0_2 = arith.constant 0 : index
    %1 = vector.load %arg2[%c0_1, %c0_2] : memref<1x32xf32, #tpu.memory_space<vmem>>, vector<1x32xf32>
    %c0_3 = arith.constant 0 : index
    %c0_4 = arith.constant 0 : index
    %2 = vector.load %arg3[%c0_3, %c0_4] : memref<1x32xf32, #tpu.memory_space<vmem>>, vector<1x32xf32>
    %cst = arith.constant dense<0.000000e+00> : vector<8xf32>
    %3 = vector.multi_reduction <add>, %0, %cst [1] : vector<8x32xf32> to vector<8xf32>
    %4 = vector.shape_cast %3 : vector<8xf32> to vector<8x1xf32>
    %cst_5 = arith.constant 3.200000e+01 : f32
    %5 = vector.broadcast %cst_5 : f32 to vector<8x1xf32>
    %6 = arith.divf %4, %5 : vector<8x1xf32>
    %7 = vector.broadcast %6 : vector<8x1xf32> to vector<8x32xf32>
    %8 = arith.subf %0, %7 : vector<8x32xf32>
    %9 = arith.mulf %8, %8 : vector<8x32xf32>
    %cst_6 = arith.constant dense<0.000000e+00> : vector<8xf32>
    %10 = vector.multi_reduction <add>, %9, %cst_6 [1] : vector<8x32xf32> to vector<8xf32>
    %11 = vector.shape_cast %10 : vector<8xf32> to vector<8x1xf32>
    %cst_7 = arith.constant 0.0322580636 : f32
    %12 = vector.broadcast %cst_7 : f32 to vector<8x1xf32>
    %13 = arith.mulf %11, %12 : vector<8x1xf32>
    %14 = math.sqrt %13 : vector<8x1xf32>
    %cst_8 = arith.constant 9.99999997E-7 : f32
    %15 = vector.broadcast %cst_8 : f32 to vector<8x1xf32>
    %16 = arith.addf %14, %15 : vector<8x1xf32>
    %17 = tpu.reciprocal %16 : vector<8x1xf32> -> vector<8x1xf32>
    %18 = vector.broadcast %6 : vector<8x1xf32> to vector<8x32xf32>
    %19 = arith.subf %0, %18 : vector<8x32xf32>
    %20 = vector.broadcast %1 : vector<1x32xf32> to vector<8x32xf32>
    %21 = arith.mulf %20, %19 : vector<8x32xf32>
    %22 = vector.broadcast %17 : vector<8x1xf32> to vector<8x32xf32>
    %23 = arith.mulf %21, %22 : vector<8x32xf32>
    %24 = vector.broadcast %2 : vector<1x32xf32> to vector<8x32xf32>
    %25 = arith.addf %23, %24 : vector<8x32xf32>
    %c0_9 = arith.constant 0 : index
    %c0_10 = arith.constant 0 : index
    %26 = vector.load %arg4[%c0_9, %c0_10] : memref<8x32xf32, #tpu.memory_space<vmem>>, vector<8x32xf32>
    tpu.vector_store %arg4[%c0_9, %c0_10], %25 {strides = array<i32>} : memref<8x32xf32, #tpu.memory_space<vmem>>, vector<8x32xf32>,
    return
  }
  func.func @transform_0(%arg0: i32) -> (i32, i32) {
    %c0_i32 = arith.constant 0 : i32
    %c0_i32_0 = arith.constant 0 : i32
    return %arg0, %c0_i32 : i32, i32
  }
  func.func @transform_1(%arg0: i32) -> (i32, i32) {
    %c0_i32 = arith.constant 0 : i32
    %c0_i32_0 = arith.constant 0 : i32
    %c0_i32_1 = arith.constant 0 : i32
    return %c0_i32, %c0_i32_0 : i32, i32
  }
  func.func @transform_2(%arg0: i32) -> (i32, i32) {
    %c0_i32 = arith.constant 0 : i32
    %c0_i32_0 = arith.constant 0 : i32
    %c0_i32_1 = arith.constant 0 : i32
    return %c0_i32, %c0_i32_0 : i32, i32
  }
  func.func @transform_3(%arg0: i32) -> (i32, i32) {
    %c0_i32 = arith.constant 0 : i32
    %c0_i32_0 = arith.constant 0 : i32
    return %arg0, %c0_i32 : i32, i32
  }
}

module attributes {stable_mosaic.version = 11 : i64} {
  func.func @_ln_kernel(%arg0: i32, %arg1: memref<8x32xf32, #tpu.memory_space<vmem>>, %arg2: memref<1x32xf32, #tpu.memory_space<vmem>>, %arg3: memref<1x32xf32, #tpu.memory_space<vmem>>, %arg4: memref<8x32xf32, #tpu.memory_space<vmem>>) attributes {dimension_semantics = [#tpu.dimension_semantics<parallel>], iteration_bounds = array<i64: 2>, scalar_prefetch = 0 : i64, scratch_operands = 0 : i64, tpu.core_type = #tpu.core_type<tc>, window_params = [{transform_indices = @transform_0, window_bounds = array<i64: 8, 32>}, {pipeline_mode = #tpu.pipeline_mode<synchronous>, transform_indices = @transform_1, window_bounds = array<i64: 1, 32>}, {pipeline_mode = #tpu.pipeline_mode<synchronous>, transform_indices = @transform_2, window_bounds = array<i64: 1, 32>}, {transform_indices = @transform_3, window_bounds = array<i64: 8, 32>}]} {
    %c0 = arith.constant 0 : index
    %c0_0 = arith.constant 0 : index
    %0 = vector.load %arg1[%c0, %c0_0] : memref<8x32xf32, #tpu.memory_space<vmem>>, vector<8x32xf32>
    %c0_1 = arith.constant 0 : index
    %c0_2 = arith.constant 0 : index
    %1 = vector.load %arg2[%c0_1, %c0_2] : memref<1x32xf32, #tpu.memory_space<vmem>>, vector<1x32xf32>
    %c0_3 = arith.constant 0 : index
    %c0_4 = arith.constant 0 : index
    %2 = vector.load %arg3[%c0_3, %c0_4] : memref<1x32xf32, #tpu.memory_space<vmem>>, vector<1x32xf32>
    %cst = arith.constant dense<0.000000e+00> : vector<8xf32>
    %3 = vector.multi_reduction <add>, %0, %cst [1] : vector<8x32xf32> to vector<8xf32>
    %4 = vector.shape_cast %3 : vector<8xf32> to vector<8x1xf32>
    %cst_5 = arith.constant 3.200000e+01 : f32
    %5 = vector.broadcast %cst_5 : f32 to vector<8x1xf32>
    %6 = arith.divf %4, %5 : vector<8x1xf32>
    %7 = vector.broadcast %6 : vector<8x1xf32> to vector<8x32xf32>
    %8 = arith.subf %0, %7 : vector<8x32xf32>
    %9 = arith.mulf %8, %8 : vector<8x32xf32>
    %cst_6 = arith.constant dense<0.000000e+00> : vector<8xf32>
    %10 = vector.multi_reduction <add>, %9, %cst_6 [1] : vector<8x32xf32> to vector<8xf32>
    %11 = vector.shape_cast %10 : vector<8xf32> to vector<8x1xf32>
    %cst_7 = arith.constant 0.0322580636 : f32
    %12 = vector.broadcast %cst_7 : f32 to vector<8x1xf32>
    %13 = arith.mulf %11, %12 : vector<8x1xf32>
    %14 = math.sqrt %13 : vector<8x1xf32>
    %cst_8 = arith.constant 9.99999997E-7 : f32
    %15 = vector.broadcast %cst_8 : f32 to vector<8x1xf32>
    %16 = arith.addf %14, %15 : vector<8x1xf32>
    %17 = tpu.reciprocal %16 : vector<8x1xf32> -> vector<8x1xf32>
    %18 = vector.broadcast %6 : vector<8x1xf32> to vector<8x32xf32>
    %19 = arith.subf %0, %18 : vector<8x32xf32>
    %20 = vector.broadcast %1 : vector<1x32xf32> to vector<8x32xf32>
    %21 = arith.mulf %20, %19 : vector<8x32xf32>
    %22 = vector.broadcast %17 : vector<8x1xf32> to vector<8x32xf32>
    %23 = arith.mulf %21, %22 : vector<8x32xf32>
    %24 = vector.broadcast %2 : vector<1x32xf32> to vector<8x32xf32>
    %25 = arith.addf %23, %24 : vector<8x32xf32>
    %c0_9 = arith.constant 0 : index
    %c0_10 = arith.constant 0 : index
    %26 = vector.load %arg4[%c0_9, %c0_10] : memref<8x32xf32, #tpu.memory_space<vmem>>, vector<8x32xf32>
    tpu.vector_store %arg4[%c0_9, %c0_10], %25 {strides = array<i32>} : memref<8x32xf32, #tpu.memory_space<vmem>>, vector<8x32xf32>,
    return
  }
  func.func @transform_0(%arg0: i32) -> (i32, i32) {
    %c0_i32 = arith.constant 0 : i32
    %c0_i32_0 = arith.constant 0 : i32
    return %arg0, %c0_i32 : i32, i32
  }
  func.func @transform_1(%arg0: i32) -> (i32, i32) {
    %c0_i32 = arith.constant 0 : i32
    %c0_i32_0 = arith.constant 0 : i32
    %c0_i32_1 = arith.constant 0 : i32
    return %c0_i32, %c0_i32_0 : i32, i32
  }
  func.func @transform_2(%arg0: i32) -> (i32, i32) {
    %c0_i32 = arith.constant 0 : i32
    %c0_i32_0 = arith.constant 0 : i32
    %c0_i32_1 = arith.constant 0 : i32
    return %c0_i32, %c0_i32_0 : i32, i32
  }
  func.func @transform_3(%arg0: i32) -> (i32, i32) {
    %c0_i32 = arith.constant 0 : i32
    %c0_i32_0 = arith.constant 0 : i32
    return %arg0, %c0_i32 : i32, i32
  }
}

module attributes {stable_mosaic.version = 11 : i64} {
  func.func @_attn_sublayer_kernel(%arg0: i32, %arg1: memref<1x8x32xf32, #tpu.memory_space<vmem>>, %arg2: memref<1x8x32xf32, #tpu.memory_space<vmem>>, %arg3: memref<1x32xf32, #tpu.memory_space<vmem>>, %arg4: memref<1x32xf32, #tpu.memory_space<vmem>>, %arg5: memref<32x96xbf16, #tpu.memory_space<vmem>>, %arg6: memref<1x96xf32, #tpu.memory_space<vmem>>, %arg7: memref<32x32xbf16, #tpu.memory_space<vmem>>, %arg8: memref<1x32xf32, #tpu.memory_space<vmem>>, %arg9: memref<1x1x8xf32, #tpu.memory_space<vmem>>, %arg10: memref<1x8x32xf32, #tpu.memory_space<vmem>>) attributes {dimension_semantics = [#tpu.dimension_semantics<parallel>], iteration_bounds = array<i64: 2>, scalar_prefetch = 0 : i64, scratch_operands = 0 : i64, tpu.core_type = #tpu.core_type<tc>, window_params = [{transform_indices = @transform_0, window_bounds = array<i64: 1, 8, 32>}, {transform_indices = @transform_1, window_bounds = array<i64: 1, 8, 32>}, {pipeline_mode = #tpu.pipeline_mode<synchronous>, transform_indices = @transform_2, window_bounds = array<i64: 1, 32>}, {pipeline_mode = #tpu.pipeline_mode<synchronous>, transform_indices = @transform_3, window_bounds = array<i64: 1, 32>}, {pipeline_mode = #tpu.pipeline_mode<synchronous>, transform_indices = @transform_4, window_bounds = array<i64: 32, 96>}, {pipeline_mode = #tpu.pipeline_mode<synchronous>, transform_indices = @transform_5, window_bounds = array<i64: 1, 96>}, {pipeline_mode = #tpu.pipeline_mode<synchronous>, transform_indices = @transform_6, window_bounds = array<i64: 32, 32>}, {pipeline_mode = #tpu.pipeline_mode<synchronous>, transform_indices = @transform_7, window_bounds = array<i64: 1, 32>}, {transform_indices = @transform_8, window_bounds = array<i64: 1, 1, 8>}, {transform_indices = @transform_9, window_bounds = array<i64: 1, 8, 32>}]} {
    %c0 = arith.constant 0 : index
    %c0_0 = arith.constant 0 : index
    %c0_1 = arith.constant 0 : index
    %0 = vector.load %arg1[%c0, %c0_0, %c0_1] : memref<1x8x32xf32, #tpu.memory_space<vmem>>, vector<1x8x32xf32>
    %1 = vector.shape_cast %0 : vector<1x8x32xf32> to vector<8x32xf32>
    %c0_2 = arith.constant 0 : index
    %c0_3 = arith.constant 0 : index
    %2 = vector.load %arg3[%c0_2, %c0_3] : memref<1x32xf32, #tpu.memory_space<vmem>>, vector<1x32xf32>
    %c0_4 = arith.constant 0 : index
    %c0_5 = arith.constant 0 : index
    %3 = vector.load %arg4[%c0_4, %c0_5] : memref<1x32xf32, #tpu.memory_space<vmem>>, vector<1x32xf32>
    %cst = arith.constant dense<0.000000e+00> : vector<8xf32>
    %4 = vector.multi_reduction <add>, %1, %cst [1] : vector<8x32xf32> to vector<8xf32>
    %5 = vector.shape_cast %4 : vector<8xf32> to vector<8x1xf32>
    %cst_6 = arith.constant 3.200000e+01 : f32
    %6 = vector.broadcast %cst_6 : f32 to vector<8x1xf32>
    %7 = arith.divf %5, %6 : vector<8x1xf32>
    %8 = vector.broadcast %7 : vector<8x1xf32> to vector<8x32xf32>
    %9 = arith.subf %1, %8 : vector<8x32xf32>
    %10 = arith.mulf %9, %9 : vector<8x32xf32>
    %cst_7 = arith.constant dense<0.000000e+00> : vector<8xf32>
    %11 = vector.multi_reduction <add>, %10, %cst_7 [1] : vector<8x32xf32> to vector<8xf32>
    %12 = vector.shape_cast %11 : vector<8xf32> to vector<8x1xf32>
    %cst_8 = arith.constant 0.0322580636 : f32
    %13 = vector.broadcast %cst_8 : f32 to vector<8x1xf32>
    %14 = arith.mulf %12, %13 : vector<8x1xf32>
    %15 = math.sqrt %14 : vector<8x1xf32>
    %cst_9 = arith.constant 9.99999997E-7 : f32
    %16 = vector.broadcast %cst_9 : f32 to vector<8x1xf32>
    %17 = arith.addf %15, %16 : vector<8x1xf32>
    %18 = tpu.reciprocal %17 : vector<8x1xf32> -> vector<8x1xf32>
    %19 = vector.broadcast %7 : vector<8x1xf32> to vector<8x32xf32>
    %20 = arith.subf %1, %19 : vector<8x32xf32>
    %21 = vector.broadcast %2 : vector<1x32xf32> to vector<8x32xf32>
    %22 = arith.mulf %21, %20 : vector<8x32xf32>
    %23 = vector.broadcast %18 : vector<8x1xf32> to vector<8x32xf32>
    %24 = arith.mulf %22, %23 : vector<8x32xf32>
    %25 = vector.broadcast %3 : vector<1x32xf32> to vector<8x32xf32>
    %26 = arith.addf %24, %25 : vector<8x32xf32>
    %c0_10 = arith.constant 0 : index
    %c0_11 = arith.constant 0 : index
    %27 = vector.load %arg5[%c0_10, %c0_11] : memref<32x96xbf16, #tpu.memory_space<vmem>>, vector<32x96xbf16>
    %c0_12 = arith.constant 0 : index
    %c0_13 = arith.constant 0 : index
    %28 = vector.load %arg6[%c0_12, %c0_13] : memref<1x96xf32, #tpu.memory_space<vmem>>, vector<1x96xf32>
    %c0_14 = arith.constant 0 : index
    %c0_15 = arith.constant 0 : index
    %c0_16 = arith.constant 0 : index
    %29 = vector.load %arg2[%c0_14, %c0_15, %c0_16] : memref<1x8x32xf32, #tpu.memory_space<vmem>>, vector<1x8x32xf32>
    %30 = vector.shape_cast %29 : vector<1x8x32xf32> to vector<8x32xf32>
    %31 = arith.truncf %30 : vector<8x32xf32> to vector<8x32xbf16>
    %32 = arith.truncf %26 : vector<8x32xf32> to vector<8x32xbf16>
    %33 = vector.extract_strided_slice %27 {offsets = [0, 0], sizes = [32, 32], strides = [1, 1]} : vector<32x96xbf16> to vector<32x32xbf16>
    %cst_17 = arith.constant dense<0.000000e+00> : vector<8x32xf32>
    %34 = tpu.matmul %32, %33, %cst_17 {dimension_numbers = #tpu.dot_dimension_numbers<[1], [0], [0], [1], [0, 0, 1, 1], [], []>} : vector<8x32xbf16>, vector<32x32xbf16>, vector<8x32xf32> -> vector<8x32xf32>
    %35 = vector.extract_strided_slice %28 {offsets = [0, 0], sizes = [1, 32], strides = [1, 1]} : vector<1x96xf32> to vector<1x32xf32>
    %36 = vector.broadcast %35 : vector<1x32xf32> to vector<8x32xf32>
    %37 = arith.addf %34, %36 : vector<8x32xf32>
    %38 = vector.extract_strided_slice %27 {offsets = [0, 32], sizes = [32, 64], strides = [1, 1]} : vector<32x96xbf16> to vector<32x64xbf16>
    %cst_18 = arith.constant dense<0.000000e+00> : vector<8x64xf32>
    %39 = tpu.matmul %31, %38, %cst_18 {dimension_numbers = #tpu.dot_dimension_numbers<[1], [0], [0], [1], [0, 0, 1, 1], [], []>} : vector<8x32xbf16>, vector<32x64xbf16>, vector<8x64xf32> -> vector<8x64xf32>
    %40 = vector.extract_strided_slice %28 {offsets = [0, 32], sizes = [1, 64], strides = [1, 1]} : vector<1x96xf32> to vector<1x64xf32>
    %41 = vector.broadcast %40 : vector<1x64xf32> to vector<8x64xf32>
    %42 = arith.addf %39, %41 : vector<8x64xf32>
    %43 = vector.extract_strided_slice %42 {offsets = [0, 0], sizes = [8, 32], strides = [1, 1]} : vector<8x64xf32> to vector<8x32xf32>
    %44 = vector.extract_strided_slice %42 {offsets = [0, 32], sizes = [8, 32], strides = [1, 1]} : vector<8x64xf32> to vector<8x32xf32>
    %c0_19 = arith.constant 0 : index
    %c0_20 = arith.constant 0 : index
    %c0_21 = arith.constant 0 : index
    %45 = vector.load %arg9[%c0_19, %c0_20, %c0_21] : memref<1x1x8xf32, #tpu.memory_space<vmem>>, vector<1x1x8xf32>
    %46 = vector.shape_cast %45 : vector<1x1x8xf32> to vector<1x8xf32>
    %c0_22 = arith.constant 0 : index
    %c0_23 = arith.constant 0 : index
    %47 = vector.load %arg7[%c0_22, %c0_23] : memref<32x32xbf16, #tpu.memory_space<vmem>>, vector<32x32xbf16>
    %cst_24 = arith.constant 0.000000e+00 : f32
    %48 = vector.broadcast %cst_24 : f32 to vector<8x32xf32>
    %49 = vector.extract_strided_slice %37 {offsets = [0, 0], sizes = [8, 8], strides = [1, 1]} : vector<8x32xf32> to vector<8x8xf32>
    %50 = arith.truncf %49 : vector<8x8xf32> to vector<8x8xbf16>
    %51 = vector.extract_strided_slice %43 {offsets = [0, 0], sizes = [8, 8], strides = [1, 1]} : vector<8x32xf32> to vector<8x8xf32>
    %52 = arith.truncf %51 : vector<8x8xf32> to vector<8x8xbf16>
    %53 = vector.extract_strided_slice %44 {offsets = [0, 0], sizes = [8, 8], strides = [1, 1]} : vector<8x32xf32> to vector<8x8xf32>
    %54 = arith.truncf %53 : vector<8x8xf32> to vector<8x8xbf16>
    %cst_25 = arith.constant dense<0.000000e+00> : vector<8x8xf32>
    %55 = tpu.matmul %50, %52, %cst_25 {dimension_numbers = #tpu.dot_dimension_numbers<[1], [1], [0], [0], [0, 0, 1, 0], [], []>} : vector<8x8xbf16>, vector<8x8xbf16>, vector<8x8xf32> -> vector<8x8xf32>
    %cst_26 = arith.constant 0.353553385 : f32
    %56 = vector.broadcast %cst_26 : f32 to vector<8x8xf32>
    %57 = arith.mulf %55, %56 : vector<8x8xf32>
    %cst_27 = arith.constant 0.000000e+00 : f32
    %58 = vector.broadcast %cst_27 : f32 to vector<1x8xf32>
    %59 = arith.cmpf ogt, %46, %58 : vector<1x8xf32>
    %cst_28 = arith.constant -1.000000e+09 : f32
    %60 = vector.shape_cast %59 : vector<1x8xi1> to vector<1x8xi1>
    %61 = vector.broadcast %60 : vector<1x8xi1> to vector<8x8xi1>
    %62 = vector.broadcast %cst_28 : f32 to vector<8x8xf32>
    %63 = arith.select %61, %57, %62 : vector<8x8xi1>, vector<8x8xf32>
    %cst_29 = arith.constant dense<0xFF800000> : vector<8xf32>
    %64 = vector.multi_reduction <maximumf>, %63, %cst_29 [1] : vector<8x8xf32> to vector<8xf32>
    %65 = vector.shape_cast %64 : vector<8xf32> to vector<8x1xf32>
    %66 = vector.broadcast %65 : vector<8x1xf32> to vector<8x8xf32>
    %67 = arith.subf %63, %66 : vector<8x8xf32>
    %68 = math.exp %67 : vector<8x8xf32>
    %cst_30 = arith.constant dense<0.000000e+00> : vector<8xf32>
    %69 = vector.multi_reduction <add>, %68, %cst_30 [1] : vector<8x8xf32> to vector<8xf32>
    %70 = vector.shape_cast %69 : vector<8xf32> to vector<8x1xf32>
    %71 = tpu.reciprocal %70 : vector<8x1xf32> -> vector<8x1xf32>
    %72 = vector.broadcast %71 : vector<8x1xf32> to vector<8x8xf32>
    %73 = arith.mulf %68, %72 : vector<8x8xf32>
    %74 = arith.truncf %73 : vector<8x8xf32> to vector<8x8xbf16>
    %cst_31 = arith.constant dense<0.000000e+00> : vector<8x8xf32>
    %75 = tpu.matmul %74, %54, %cst_31 {dimension_numbers = #tpu.dot_dimension_numbers<[1], [0], [0], [1], [0, 0, 1, 1], [], []>} : vector<8x8xbf16>, vector<8x8xbf16>, vector<8x8xf32> -> vector<8x8xf32>
    %76 = arith.truncf %75 : vector<8x8xf32> to vector<8x8xbf16>
    %77 = vector.extract_strided_slice %47 {offsets = [0, 0], sizes = [8, 32], strides = [1, 1]} : vector<32x32xbf16> to vector<8x32xbf16>
    %cst_32 = arith.constant dense<0.000000e+00> : vector<8x32xf32>
    %78 = tpu.matmul %76, %77, %cst_32 {dimension_numbers = #tpu.dot_dimension_numbers<[1], [0], [0], [1], [0, 0, 1, 1], [], []>} : vector<8x8xbf16>, vector<8x32xbf16>, vector<8x32xf32> -> vector<8x32xf32>
    %79 = arith.addf %48, %78 : vector<8x32xf32>
    %80 = vector.extract_strided_slice %37 {offsets = [0, 8], sizes = [8, 8], strides = [1, 1]} : vector<8x32xf32> to vector<8x8xf32>
    %81 = arith.truncf %80 : vector<8x8xf32> to vector<8x8xbf16>
    %82 = vector.extract_strided_slice %43 {offsets = [0, 8], sizes = [8, 8], strides = [1, 1]} : vector<8x32xf32> to vector<8x8xf32>
    %83 = arith.truncf %82 : vector<8x8xf32> to vector<8x8xbf16>
    %84 = vector.extract_strided_slice %44 {offsets = [0, 8], sizes = [8, 8], strides = [1, 1]} : vector<8x32xf32> to vector<8x8xf32>
    %85 = arith.truncf %84 : vector<8x8xf32> to vector<8x8xbf16>
    %cst_33 = arith.constant dense<0.000000e+00> : vector<8x8xf32>
    %86 = tpu.matmul %81, %83, %cst_33 {dimension_numbers = #tpu.dot_dimension_numbers<[1], [1], [0], [0], [0, 0, 1, 0], [], []>} : vector<8x8xbf16>, vector<8x8xbf16>, vector<8x8xf32> -> vector<8x8xf32>
    %cst_34 = arith.constant 0.353553385 : f32
    %87 = vector.broadcast %cst_34 : f32 to vector<8x8xf32>
    %88 = arith.mulf %86, %87 : vector<8x8xf32>
    %cst_35 = arith.constant 0.000000e+00 : f32
    %89 = vector.broadcast %cst_35 : f32 to vector<1x8xf32>
    %90 = arith.cmpf ogt, %46, %89 : vector<1x8xf32>
    %cst_36 = arith.constant -1.000000e+09 : f32
    %91 = vector.shape_cast %90 : vector<1x8xi1> to vector<1x8xi1>
    %92 = vector.broadcast %91 : vector<1x8xi1> to vector<8x8xi1>
    %93 = vector.broadcast %cst_36 : f32 to vector<8x8xf32>
    %94 = arith.select %92, %88, %93 : vector<8x8xi1>, vector<8x8xf32>
    %cst_37 = arith.constant dense<0xFF800000> : vector<8xf32>
    %95 = vector.multi_reduction <maximumf>, %94, %cst_37 [1] : vector<8x8xf32> to vector<8xf32>
    %96 = vector.shape_cast %95 : vector<8xf32> to vector<8x1xf32>
    %97 = vector.broadcast %96 : vector<8x1xf32> to vector<8x8xf32>
    %98 = arith.subf %94, %97 : vector<8x8xf32>
    %99 = math.exp %98 : vector<8x8xf32>
    %cst_38 = arith.constant dense<0.000000e+00> : vector<8xf32>
    %100 = vector.multi_reduction <add>, %99, %cst_38 [1] : vector<8x8xf32> to vector<8xf32>
    %101 = vector.shape_cast %100 : vector<8xf32> to vector<8x1xf32>
    %102 = tpu.reciprocal %101 : vector<8x1xf32> -> vector<8x1xf32>
    %103 = vector.broadcast %102 : vector<8x1xf32> to vector<8x8xf32>
    %104 = arith.mulf %99, %103 : vector<8x8xf32>
    %105 = arith.truncf %104 : vector<8x8xf32> to vector<8x8xbf16>
    %cst_39 = arith.constant dense<0.000000e+00> : vector<8x8xf32>
    %106 = tpu.matmul %105, %85, %cst_39 {dimension_numbers = #tpu.dot_dimension_numbers<[1], [0], [0], [1], [0, 0, 1, 1], [], []>} : vector<8x8xbf16>, vector<8x8xbf16>, vector<8x8xf32> -> vector<8x8xf32>
    %107 = arith.truncf %106 : vector<8x8xf32> to vector<8x8xbf16>
    %108 = vector.extract_strided_slice %47 {offsets = [8, 0], sizes = [8, 32], strides = [1, 1]} : vector<32x32xbf16> to vector<8x32xbf16>
    %cst_40 = arith.constant dense<0.000000e+00> : vector<8x32xf32>
    %109 = tpu.matmul %107, %108, %cst_40 {dimension_numbers = #tpu.dot_dimension_numbers<[1], [0], [0], [1], [0, 0, 1, 1], [], []>} : vector<8x8xbf16>, vector<8x32xbf16>, vector<8x32xf32> -> vector<8x32xf32>
    %110 = arith.addf %79, %109 : vector<8x32xf32>
    %111 = vector.extract_strided_slice %37 {offsets = [0, 16], sizes = [8, 8], strides = [1, 1]} : vector<8x32xf32> to vector<8x8xf32>
    %112 = arith.truncf %111 : vector<8x8xf32> to vector<8x8xbf16>
    %113 = vector.extract_strided_slice %43 {offsets = [0, 16], sizes = [8, 8], strides = [1, 1]} : vector<8x32xf32> to vector<8x8xf32>
    %114 = arith.truncf %113 : vector<8x8xf32> to vector<8x8xbf16>
    %115 = vector.extract_strided_slice %44 {offsets = [0, 16], sizes = [8, 8], strides = [1, 1]} : vector<8x32xf32> to vector<8x8xf32>
    %116 = arith.truncf %115 : vector<8x8xf32> to vector<8x8xbf16>
    %cst_41 = arith.constant dense<0.000000e+00> : vector<8x8xf32>
    %117 = tpu.matmul %112, %114, %cst_41 {dimension_numbers = #tpu.dot_dimension_numbers<[1], [1], [0], [0], [0, 0, 1, 0], [], []>} : vector<8x8xbf16>, vector<8x8xbf16>, vector<8x8xf32> -> vector<8x8xf32>
    %cst_42 = arith.constant 0.353553385 : f32
    %118 = vector.broadcast %cst_42 : f32 to vector<8x8xf32>
    %119 = arith.mulf %117, %118 : vector<8x8xf32>
    %cst_43 = arith.constant 0.000000e+00 : f32
    %120 = vector.broadcast %cst_43 : f32 to vector<1x8xf32>
    %121 = arith.cmpf ogt, %46, %120 : vector<1x8xf32>
    %cst_44 = arith.constant -1.000000e+09 : f32
    %122 = vector.shape_cast %121 : vector<1x8xi1> to vector<1x8xi1>
    %123 = vector.broadcast %122 : vector<1x8xi1> to vector<8x8xi1>
    %124 = vector.broadcast %cst_44 : f32 to vector<8x8xf32>
    %125 = arith.select %123, %119, %124 : vector<8x8xi1>, vector<8x8xf32>
    %cst_45 = arith.constant dense<0xFF800000> : vector<8xf32>
    %126 = vector.multi_reduction <maximumf>, %125, %cst_45 [1] : vector<8x8xf32> to vector<8xf32>
    %127 = vector.shape_cast %126 : vector<8xf32> to vector<8x1xf32>
    %128 = vector.broadcast %127 : vector<8x1xf32> to vector<8x8xf32>
    %129 = arith.subf %125, %128 : vector<8x8xf32>
    %130 = math.exp %129 : vector<8x8xf32>
    %cst_46 = arith.constant dense<0.000000e+00> : vector<8xf32>
    %131 = vector.multi_reduction <add>, %130, %cst_46 [1] : vector<8x8xf32> to vector<8xf32>
    %132 = vector.shape_cast %131 : vector<8xf32> to vector<8x1xf32>
    %133 = tpu.reciprocal %132 : vector<8x1xf32> -> vector<8x1xf32>
    %134 = vector.broadcast %133 : vector<8x1xf32> to vector<8x8xf32>
    %135 = arith.mulf %130, %134 : vector<8x8xf32>
    %136 = arith.truncf %135 : vector<8x8xf32> to vector<8x8xbf16>
    %cst_47 = arith.constant dense<0.000000e+00> : vector<8x8xf32>
    %137 = tpu.matmul %136, %116, %cst_47 {dimension_numbers = #tpu.dot_dimension_numbers<[1], [0], [0], [1], [0, 0, 1, 1], [], []>} : vector<8x8xbf16>, vector<8x8xbf16>, vector<8x8xf32> -> vector<8x8xf32>
    %138 = arith.truncf %137 : vector<8x8xf32> to vector<8x8xbf16>
    %139 = vector.extract_strided_slice %47 {offsets = [16, 0], sizes = [8, 32], strides = [1, 1]} : vector<32x32xbf16> to vector<8x32xbf16>
    %cst_48 = arith.constant dense<0.000000e+00> : vector<8x32xf32>
    %140 = tpu.matmul %138, %139, %cst_48 {dimension_numbers = #tpu.dot_dimension_numbers<[1], [0], [0], [1], [0, 0, 1, 1], [], []>} : vector<8x8xbf16>, vector<8x32xbf16>, vector<8x32xf32> -> vector<8x32xf32>
    %141 = arith.addf %110, %140 : vector<8x32xf32>
    %142 = vector.extract_strided_slice %37 {offsets = [0, 24], sizes = [8, 8], strides = [1, 1]} : vector<8x32xf32> to vector<8x8xf32>
    %143 = arith.truncf %142 : vector<8x8xf32> to vector<8x8xbf16>
    %144 = vector.extract_strided_slice %43 {offsets = [0, 24], sizes = [8, 8], strides = [1, 1]} : vector<8x32xf32> to vector<8x8xf32>
    %145 = arith.truncf %144 : vector<8x8xf32> to vector<8x8xbf16>
    %146 = vector.extract_strided_slice %44 {offsets = [0, 24], sizes = [8, 8], strides = [1, 1]} : vector<8x32xf32> to vector<8x8xf32>
    %147 = arith.truncf %146 : vector<8x8xf32> to vector<8x8xbf16>
    %cst_49 = arith.constant dense<0.000000e+00> : vector<8x8xf32>
    %148 = tpu.matmul %143, %145, %cst_49 {dimension_numbers = #tpu.dot_dimension_numbers<[1], [1], [0], [0], [0, 0, 1, 0], [], []>} : vector<8x8xbf16>, vector<8x8xbf16>, vector<8x8xf32> -> vector<8x8xf32>
    %cst_50 = arith.constant 0.353553385 : f32
    %149 = vector.broadcast %cst_50 : f32 to vector<8x8xf32>
    %150 = arith.mulf %148, %149 : vector<8x8xf32>
    %cst_51 = arith.constant 0.000000e+00 : f32
    %151 = vector.broadcast %cst_51 : f32 to vector<1x8xf32>
    %152 = arith.cmpf ogt, %46, %151 : vector<1x8xf32>
    %cst_52 = arith.constant -1.000000e+09 : f32
    %153 = vector.shape_cast %152 : vector<1x8xi1> to vector<1x8xi1>
    %154 = vector.broadcast %153 : vector<1x8xi1> to vector<8x8xi1>
    %155 = vector.broadcast %cst_52 : f32 to vector<8x8xf32>
    %156 = arith.select %154, %150, %155 : vector<8x8xi1>, vector<8x8xf32>
    %cst_53 = arith.constant dense<0xFF800000> : vector<8xf32>
    %157 = vector.multi_reduction <maximumf>, %156, %cst_53 [1] : vector<8x8xf32> to vector<8xf32>
    %158 = vector.shape_cast %157 : vector<8xf32> to vector<8x1xf32>
    %159 = vector.broadcast %158 : vector<8x1xf32> to vector<8x8xf32>
    %160 = arith.subf %156, %159 : vector<8x8xf32>
    %161 = math.exp %160 : vector<8x8xf32>
    %cst_54 = arith.constant dense<0.000000e+00> : vector<8xf32>
    %162 = vector.multi_reduction <add>, %161, %cst_54 [1] : vector<8x8xf32> to vector<8xf32>
    %163 = vector.shape_cast %162 : vector<8xf32> to vector<8x1xf32>
    %164 = tpu.reciprocal %163 : vector<8x1xf32> -> vector<8x1xf32>
    %165 = vector.broadcast %164 : vector<8x1xf32> to vector<8x8xf32>
    %166 = arith.mulf %161, %165 : vector<8x8xf32>
    %167 = arith.truncf %166 : vector<8x8xf32> to vector<8x8xbf16>
    %cst_55 = arith.constant dense<0.000000e+00> : vector<8x8xf32>
    %168 = tpu.matmul %167, %147, %cst_55 {dimension_numbers = #tpu.dot_dimension_numbers<[1], [0], [0], [1], [0, 0, 1, 1], [], []>} : vector<8x8xbf16>, vector<8x8xbf16>, vector<8x8xf32> -> vector<8x8xf32>
    %169 = arith.truncf %168 : vector<8x8xf32> to vector<8x8xbf16>
    %170 = vector.extract_strided_slice %47 {offsets = [24, 0], sizes = [8, 32], strides = [1, 1]} : vector<32x32xbf16> to vector<8x32xbf16>
    %cst_56 = arith.constant dense<0.000000e+00> : vector<8x32xf32>
    %171 = tpu.matmul %169, %170, %cst_56 {dimension_numbers = #tpu.dot_dimension_numbers<[1], [0], [0], [1], [0, 0, 1, 1], [], []>} : vector<8x8xbf16>, vector<8x32xbf16>, vector<8x32xf32> -> vector<8x32xf32>
    %172 = arith.addf %141, %171 : vector<8x32xf32>
    %c0_57 = arith.constant 0 : index
    %c0_58 = arith.constant 0 : index
    %173 = vector.load %arg8[%c0_57, %c0_58] : memref<1x32xf32, #tpu.memory_space<vmem>>, vector<1x32xf32>
    %174 = vector.broadcast %173 : vector<1x32xf32> to vector<8x32xf32>
    %175 = arith.addf %172, %174 : vector<8x32xf32>
    %176 = arith.addf %1, %175 : vector<8x32xf32>
    %c0_59 = arith.constant 0 : index
    %c0_60 = arith.constant 0 : index
    %c0_61 = arith.constant 0 : index
    %177 = vector.load %arg10[%c0_59, %c0_60, %c0_61] : memref<1x8x32xf32, #tpu.memory_space<vmem>>, vector<1x8x32xf32>
    %178 = vector.shape_cast %177 : vector<1x8x32xf32> to vector<8x32xf32>
    %179 = vector.shape_cast %176 : vector<8x32xf32> to vector<1x8x32xf32>
    tpu.vector_store %arg10[%c0_59, %c0_60, %c0_61], %179 {strides = array<i32>} : memref<1x8x32xf32, #tpu.memory_space<vmem>>, vector<1x8x32xf32>,
    return
  }
  func.func @transform_0(%arg0: i32) -> (i32, i32, i32) {
    %c0_i32 = arith.constant 0 : i32
    %c0_i32_0 = arith.constant 0 : i32
    %c0_i32_1 = arith.constant 0 : i32
    return %arg0, %c0_i32, %c0_i32_0 : i32, i32, i32
  }
  func.func @transform_1(%arg0: i32) -> (i32, i32, i32) {
    %c0_i32 = arith.constant 0 : i32
    %c0_i32_0 = arith.constant 0 : i32
    %c0_i32_1 = arith.constant 0 : i32
    return %arg0, %c0_i32, %c0_i32_0 : i32, i32, i32
  }
  func.func @transform_2(%arg0: i32) -> (i32, i32) {
    %c0_i32 = arith.constant 0 : i32
    %c0_i32_0 = arith.constant 0 : i32
    %c0_i32_1 = arith.constant 0 : i32
    return %c0_i32, %c0_i32_0 : i32, i32
  }
  func.func @transform_3(%arg0: i32) -> (i32, i32) {
    %c0_i32 = arith.constant 0 : i32
    %c0_i32_0 = arith.constant 0 : i32
    %c0_i32_1 = arith.constant 0 : i32
    return %c0_i32, %c0_i32_0 : i32, i32
  }
  func.func @transform_4(%arg0: i32) -> (i32, i32) {
    %c0_i32 = arith.constant 0 : i32
    %c0_i32_0 = arith.constant 0 : i32
    %c0_i32_1 = arith.constant 0 : i32
    return %c0_i32, %c0_i32_0 : i32, i32
  }
  func.func @transform_5(%arg0: i32) -> (i32, i32) {
    %c0_i32 = arith.constant 0 : i32
    %c0_i32_0 = arith.constant 0 : i32
    %c0_i32_1 = arith.constant 0 : i32
    return %c0_i32, %c0_i32_0 : i32, i32
  }
  func.func @transform_6(%arg0: i32) -> (i32, i32) {
    %c0_i32 = arith.constant 0 : i32
    %c0_i32_0 = arith.constant 0 : i32
    %c0_i32_1 = arith.constant 0 : i32
    return %c0_i32, %c0_i32_0 : i32, i32
  }
  func.func @transform_7(%arg0: i32) -> (i32, i32) {
    %c0_i32 = arith.constant 0 : i32
    %c0_i32_0 = arith.constant 0 : i32
    %c0_i32_1 = arith.constant 0 : i32
    return %c0_i32, %c0_i32_0 : i32, i32
  }
  func.func @transform_8(%arg0: i32) -> (i32, i32, i32) {
    %c0_i32 = arith.constant 0 : i32
    %c0_i32_0 = arith.constant 0 : i32
    %c0_i32_1 = arith.constant 0 : i32
    return %arg0, %c0_i32, %c0_i32_0 : i32, i32, i32
  }
  func.func @transform_9(%arg0: i32) -> (i32, i32, i32) {
    %c0_i32 = arith.constant 0 : i32
    %c0_i32_0 = arith.constant 0 : i32
    %c0_i32_1 = arith.constant 0 : i32
    return %arg0, %c0_i32, %c0_i32_0 : i32, i32, i32
  }
}

</mosaic_0001>

<bundles_post_ra>
// kernel: _lambda_.13
= control target key start
LH: loop header
LB: loop body
LE: loop exit
PB: predicated region body
PF: predicated region fallthrough
CT: control target
= control target key end

     0   :  { %s588_s24 = smov 0   ;;  %s651_s0 = inlined_call_operand.vmem [shape: f32[16,32], index: 0, kind: input, shape index: {}]   ;;  %s652_s1 = inlined_call_operand.vmem [shape: f32[1,32], index: 1, kind: input, shape index: {}]   ;;  %s653_s2 = inlined_call_operand.vmem [shape: f32[1,32], index: 2, kind: input, shape index: {}, may-alias: {2,6}]   ;;  %s654_s3 = inlined_call_operand.vmem [shape: bf16[32,64], index: 3, kind: input, shape index: {}]   ;;  %s655_s4 = inlined_call_operand.vmem [shape: f32[1,64], index: 4, kind: input, shape index: {}]   ;;  %s656_s5 = inlined_call_operand.vmem [shape: bf16[64,32], index: 5, kind: input, shape index: {}]   ;;  %s657_s6 = inlined_call_operand.vmem [shape: f32[1,32], index: 6, kind: input, shape index: {}, may-alias: {2,6}]   ;;  %s658_s7 = inlined_call_operand.vmem [shape: f32[16,32], index: 7, kind: output, shape index: {}]  }
   0x1 LB: > { %s479_s25 = sadd.s32 4294967295, %s545_s24   ;;  %p483_p0 = scmp.ge.s32.totalorder %s545_s24, 1  ;;  %s545_s24 = sphi %s588_s24, %s17_s24  }
   0x2   : > { %p236_p1 = scmp.lt.s32.totalorder %s545_s24, 3 }
   0x4   : > { %p237_p2 = pnand %p483_p0, %p236_p1 }
   0x5   : > { %p266_p3 = scmp.lt.s32.totalorder (!%p237_p2), %s479_s25, 1 }
   0x6   : > { %240 = sbr.rel (%p237_p2) target bundleno = 569 (0x239), region = 48 }
   0xb   : > { %s660_s25 = smov (!%p266_p3, %s479_s25), 1  ;;  %vm278_vm0 = vcmask 261120   ;;  %v547_v2 = vmov 32.0   ;;  %v515_v14 = vld [vmem:[%s654_s3 + $0x8] sm:$0xff]  ;;  %v514_v15 = vld [vmem:[%s654_s3] sm:$0xff]  ;;  %v519_v23 = vld [vmem:[%s656_s5 + $0x18] sm:$0xff] }
   0xc   : > { %s484_s26 = sshll.u32 %s660_s25, 3  ;;  %533 = vrcp.f32 %v547_v2  ;;  %362 = vmatpush.bf16.msra.mxu0 %v515_v14  ;;  %415 = vmatpush.bf16.msra.mxu1 %v519_v23  ;;  %v518_v25 = vld [vmem:[%s656_s5 + $0x10] sm:$0xff]  ;;  %v529_v35 = vld [vmem:[%s652_s1] ss:$0 sm:$0xff]  ;;  %v517_v47 = vld [vmem:[%s656_s5 + $0x8] sm:$0xff]  ;;  %vm407_vm8 = vcmask 523264  }
   0xd   : > { %s269_s29 = scalar_lea.vmem %s651_s0, %s484_s26  ;;  %v530_v42 = vld [vmem:[%s653_s2] ss:$0 sm:$0xff]  ;;  %s273_s9 = scalar_lea.vmem %s658_s7, %s484_s26 }
   0xe   : > { %v604_v0 = vld [vmem:[%s269_s29] sm:$0xff] }
   0xf   : > { %v279_v1 = vsel %vm278_vm0, %v604_v0, 0.0  ;;  %v516_v48 = vld [vmem:[%s656_s5] sm:$0xff] }
  0x10   : > { %280 = vadd.xlane.f32.xlu0 %v279_v1  ;;  %363 = vmatpush.bf16.msra.mxu0 %v514_v15  ;;  %v531_v49 = vld [vmem:[%s655_s4] ss:$0 sm:$0xff] }
  0x11   : > { %416 = vmatpush.bf16.msra.mxu1 %v518_v25  ;;  %v532_v55 = vld [vmem:[%s657_s6] ss:$0 sm:$0xff] }
  0x12   : > { %v534_v3 = vpop.eup %533 }
  0x13   : > { %v283_v4 = vmul.f32 32.0, %v534_v3  ;;  %vm287_vm1 = vweird.f32 %v534_v3 }
  0x15   : > { %v284_v5 = vsub.f32 1.0, %v283_v4  ;;  %417 = vmatpush.bf16.msra.mxu1 %v517_v47 }
  0x17   : > { %v285_v6 = vmul.f32 %v534_v3, %v284_v5 }
  0x19   : > { %v286_v7 = vadd.f32 %v534_v3, %v285_v6  ;;  %418 = vmatpush.bf16.msra.mxu1 %v516_v48 }
  0x1b   : > { %v288_v8 = vsel %vm287_vm1, %v534_v3, %v286_v7 }
  0x83   : > { %v281_v9 = vpop.xlane.xlu0 %280 }
  0x84   : > { %v289_v10 = vmul.f32 %v288_v8, %v281_v9 }
  0x86   : > { %v290_v11 = vsub.f32 %v604_v0, %v289_v10 }
  0x88   : > { %v291_v12 = vmul.f32 %v290_v11, %v290_v11  ;;  %v326_v40 = vmul.f32 %v529_v35, %v290_v11 }
  0x8a   : > { %v292_v13 = vsel %vm278_vm0, %v291_v12, 0.0 }
  0x8b   : > { %293 = vadd.xlane.f32.xlu0 %v292_v13 }
  0xfe   : > { %v294_v16 = vpop.xlane.xlu0 %293 }
  0xff   : > { %v295_v17 = vmul.f32 0.032258064, %v294_v16 }
 0x101   : > { %535 = vrsqrt.f32 %v295_v17  ;;  %vm303_vm2 = vcmp.eq.f32.partialorder %v295_v17, inf  ;;  %v306_v27 = vand.u32 2147483648, %v295_v17  ;;  %vm305_vm3 = vcmp.eq.f32.partialorder %v295_v17, 0.0 }
 0x107   : > { %v536_v18 = vpop.eup %535 }
 0x108   : > { %v297_v19 = vmul.f32 %v536_v18, %v295_v17 }
 0x10a   : > { %v298_v20 = vmul.f32 %v536_v18, %v297_v19 }
 0x10c   : > { %v299_v21 = vmul.f32 0.5, %v298_v20 }
 0x10e   : > { %v300_v22 = vsub.f32 1.5, %v299_v21 }
 0x110   : > { %v301_v24 = vmul.f32 %v536_v18, %v300_v22 }
 0x112   : > { %v302_v26 = vmul.f32 %v301_v24, %v295_v17 }
 0x114   : > { %v304_v28 = vsel %vm303_vm2, %v295_v17, %v302_v26 }
 0x115   : > { %v307_v29 = vsel %vm305_vm3, %v306_v27, %v304_v28 }
 0x116   : > { %v308_v30 = vadd.f32 1e-06, %v307_v29 }
 0x118   : > { %537 = vrcp.f32 %v308_v30  ;;  %v320_v34 = vand.u32 2147483648, %v308_v30  ;;  %v318_v37 = vand.u32 2147483647, %v308_v30  ;;  %vm314_vm5 = vweird.f32 %v308_v30 }
 0x11a   : > { %v321_v39 = vor.u32 1.1754944e-38, %v320_v34  ;;  %vm319_vm7 = vcmp.eq.f32.partialorder %v318_v37, 8.507059e+37 }
 0x11e   : > { %v538_v31 = vpop.eup %537 }
 0x11f   : > { %v310_v32 = vmul.f32 %v538_v31, %v308_v30  ;;  %vm315_vm4 = vweird.f32 %v538_v31 }
 0x120   : > { %vm316_vm6 = vmor %vm314_vm5, %vm315_vm4 }
 0x121   : > { %v311_v33 = vsub.f32 1.0, %v310_v32 }
 0x123   : > { %v312_v36 = vmul.f32 %v538_v31, %v311_v33 }
 0x125   : > { %v313_v38 = vadd.f32 %v538_v31, %v312_v36 }
 0x127   : > { %v317_v41 = vsel %vm316_vm6, %v538_v31, %v313_v38 }
 0x128   : > { %v322_v43 = vsel %vm319_vm7, %v321_v39, %v317_v41 }
 0x129   : > { %v327_v44 = vmul.f32 %v326_v40, %v322_v43 }
 0x12b   : > { %v331_v45 = vadd.f32 %v530_v42, %v327_v44 }
 0x12d   : > { %v332_v46 = vpack.c.bf16 %v331_v45, %v331_v45 }
 0x12f   : > { %494 = vmatmul.msk.bf16.vlgmr.msra.gmra.mxu0 %vm278_vm0, %v332_v46 }
 0x1ac   : > { %v365_v50 = vpop.f32.mrf.mxu0 }
 0x1ad   : > { %v366_v51 = vadd.f32 %v531_v49, %v365_v50 }
 0x1af   : > { %v369_v52 = vmax.f32 %v366_v51, 0.0 }
 0x1b1   : > { %v370_v53 = vpack.c.bf16 %v369_v52, %v369_v52 }
 0x1b3   : > { %511 = vmatmul.msk.bf16.vlgmr.msra.gmra.mxu1 %vm407_vm8, %v370_v53 }
 0x1b4   : > { %v367_v54 = vpop.f32.mrf.mxu0 }
 0x230   : > { %v420_v56 = vpop.f32.mrf.mxu1 }
 0x231   : > { %v421_v57 = vadd.f32 %v532_v55, %v420_v56 }
 0x233   : > { %v424_v58 = vadd.f32 %v421_v57, %v604_v0 }
 0x235   : > { %425 = vst.msk [vmem:[%s273_s9] sm:$0xff] %vm278_vm0, %v424_v58 }
 0x238   : > { %v422_v59 = vpop.f32.mrf.mxu1 }
 0x239 PF: > { %s17_s24 = sadd.s32 1, %s545_s24  }
 0x23a   : > { %p14_p4 = scmp.ge.s32.totalorder %s17_s24, 4  }
 0x23c   :  { %16 = sbr.rel (!%p14_p4) target bundleno = 1 (0x1), region = 78 }

// kernel: _lambda_.16
= control target key start
LH: loop header
LB: loop body
LE: loop exit
PB: predicated region body
PF: predicated region fallthrough
CT: control target
= control target key end

     0   :  { %s332_s12 = smov 0   ;;  %s365_s0 = inlined_call_operand.vmem [shape: f32[16,32], index: 0, kind: input, shape index: {}]   ;;  %s366_s1 = inlined_call_operand.vmem [shape: f32[1,32], index: 1, kind: input, shape index: {}]   ;;  %s367_s2 = inlined_call_operand.vmem [shape: f32[1,32], index: 2, kind: input, shape index: {}]   ;;  %s368_s3 = inlined_call_operand.vmem [shape: f32[16,32], index: 3, kind: output, shape index: {}]  }
   0x1 LB: > { %s277_s13 = sadd.s32 4294967295, %s309_s12   ;;  %p281_p0 = scmp.ge.s32.totalorder %s309_s12, 1  ;;  %s309_s12 = sphi %s332_s12, %s13_s12  }
   0x2   : > { %p136_p1 = scmp.lt.s32.totalorder %s309_s12, 3 }
   0x4   : > { %p137_p2 = pnand %p281_p0, %p136_p1 }
   0x5   : > { %p158_p3 = scmp.lt.s32.totalorder (!%p137_p2), %s277_s13, 1 }
   0x6   : > { %140 = sbr.rel (%p137_p2) target bundleno = 302 (0x12e), region = 32 }
   0xb   : > { %s370_s13 = smov (!%p158_p3, %s277_s13), 1  ;;  %vm169_vm0 = vcmask 261120   ;;  %v311_v2 = vmov 32.0   ;;  %v295_v31 = vld [vmem:[%s366_s1] ss:$0 sm:$0xff] }
   0xc   : > { %s282_s14 = sshll.u32 %s370_s13, 3  ;;  %297 = vrcp.f32 %v311_v2  ;;  %v296_v37 = vld [vmem:[%s367_s2] ss:$0 sm:$0xff] }
   0xd   : > { %s161_s17 = scalar_lea.vmem %s365_s0, %s282_s14  ;;  %s165_s24 = scalar_lea.vmem %s368_s3, %s282_s14 }
   0xe   : > { %v166_v0 = vld [vmem:[%s161_s17] sm:$0xff] }
   0xf   : > { %v170_v1 = vsel %vm169_vm0, %v166_v0, 0.0 }
  0x10   : > { %171 = vadd.xlane.f32.xlu0 %v170_v1 }
  0x12   : > { %v298_v3 = vpop.eup %297 }
  0x13   : > { %v174_v4 = vmul.f32 32.0, %v298_v3  ;;  %vm178_vm1 = vweird.f32 %v298_v3 }
  0x15   : > { %v175_v5 = vsub.f32 1.0, %v174_v4 }
  0x17   : > { %v176_v6 = vmul.f32 %v298_v3, %v175_v5 }
  0x19   : > { %v177_v7 = vadd.f32 %v298_v3, %v176_v6 }
  0x1b   : > { %v179_v8 = vsel %vm178_vm1, %v298_v3, %v177_v7 }
  0x83   : > { %v172_v9 = vpop.xlane.xlu0 %171 }
  0x84   : > { %v180_v10 = vmul.f32 %v179_v8, %v172_v9 }
  0x86   : > { %v181_v11 = vsub.f32 %v166_v0, %v180_v10 }
  0x88   : > { %v182_v12 = vmul.f32 %v181_v11, %v181_v11  ;;  %v217_v36 = vmul.f32 %v295_v31, %v181_v11 }
  0x8a   : > { %v183_v13 = vsel %vm169_vm0, %v182_v12, 0.0 }
  0x8b   : > { %184 = vadd.xlane.f32.xlu0 %v183_v13 }
  0xfe   : > { %v185_v14 = vpop.xlane.xlu0 %184 }
  0xff   : > { %v186_v15 = vmul.f32 0.032258064, %v185_v14 }
 0x101   : > { %299 = vrsqrt.f32 %v186_v15  ;;  %vm194_vm2 = vcmp.eq.f32.partialorder %v186_v15, inf  ;;  %v197_v23 = vand.u32 2147483648, %v186_v15  ;;  %vm196_vm3 = vcmp.eq.f32.partialorder %v186_v15, 0.0 }
 0x107   : > { %v300_v16 = vpop.eup %299 }
 0x108   : > { %v188_v17 = vmul.f32 %v300_v16, %v186_v15 }
 0x10a   : > { %v189_v18 = vmul.f32 %v300_v16, %v188_v17 }
 0x10c   : > { %v190_v19 = vmul.f32 0.5, %v189_v18 }
 0x10e   : > { %v191_v20 = vsub.f32 1.5, %v190_v19 }
 0x110   : > { %v192_v21 = vmul.f32 %v300_v16, %v191_v20 }
 0x112   : > { %v193_v22 = vmul.f32 %v192_v21, %v186_v15 }
 0x114   : > { %v195_v24 = vsel %vm194_vm2, %v186_v15, %v193_v22 }
 0x115   : > { %v198_v25 = vsel %vm196_vm3, %v197_v23, %v195_v24 }
 0x116   : > { %v199_v26 = vadd.f32 1e-06, %v198_v25 }
 0x118   : > { %301 = vrcp.f32 %v199_v26  ;;  %v211_v30 = vand.u32 2147483648, %v199_v26  ;;  %v209_v33 = vand.u32 2147483647, %v199_v26  ;;  %vm205_vm5 = vweird.f32 %v199_v26 }
 0x11a   : > { %v212_v35 = vor.u32 1.1754944e-38, %v211_v30  ;;  %vm210_vm7 = vcmp.eq.f32.partialorder %v209_v33, 8.507059e+37 }
 0x11e   : > { %v302_v27 = vpop.eup %301 }
 0x11f   : > { %v201_v28 = vmul.f32 %v302_v27, %v199_v26  ;;  %vm206_vm4 = vweird.f32 %v302_v27 }
 0x120   : > { %vm207_vm6 = vmor %vm205_vm5, %vm206_vm4 }
 0x121   : > { %v202_v29 = vsub.f32 1.0, %v201_v28 }
 0x123   : > { %v203_v32 = vmul.f32 %v302_v27, %v202_v29 }
 0x125   : > { %v204_v34 = vadd.f32 %v302_v27, %v203_v32 }
 0x127   : > { %v208_v38 = vsel %vm207_vm6, %v302_v27, %v204_v34 }
 0x128   : > { %v213_v39 = vsel %vm210_vm7, %v212_v35, %v208_v38 }
 0x129   : > { %v218_v40 = vmul.f32 %v217_v36, %v213_v39 }
 0x12b   : > { %v222_v41 = vadd.f32 %v296_v37, %v218_v40 }
 0x12d   : > { %223 = vst.msk [vmem:[%s165_s24] sm:$0xff] %vm169_vm0, %v222_v41 }
 0x12e PF: > { %s13_s12 = sadd.s32 1, %s309_s12  }
 0x12f   : > { %p10_p4 = scmp.ge.s32.totalorder %s13_s12, 4  }
 0x131   :  { %12 = sbr.rel (!%p10_p4) target bundleno = 1 (0x1), region = 62 }

// kernel: _lambda_.17
= control target key start
LH: loop header
LB: loop body
LE: loop exit
PB: predicated region body
PF: predicated region fallthrough
CT: control target
= control target key end

     0   :  { %s1064_s29 = smov 0   ;;  %s1196_s0 = inlined_call_operand.vmem [shape: f32[2,8,32], index: 0, kind: input, shape index: {}, may-alias: {0,1}]   ;;  %s1197_s1 = inlined_call_operand.vmem [shape: f32[2,8,32], index: 1, kind: input, shape index: {}, may-alias: {0,1}]   ;;  %s1198_s2 = inlined_call_operand.vmem [shape: f32[1,32], index: 2, kind: input, shape index: {}]   ;;  %s1199_s3 = inlined_call_operand.vmem [shape: f32[1,32], index: 3, kind: input, shape index: {}, may-alias: {3,7}]   ;;  %s1200_s4 = inlined_call_operand.vmem [shape: bf16[32,96], index: 4, kind: input, shape index: {}]   ;;  %s1201_s5 = inlined_call_operand.vmem [shape: f32[1,96], index: 5, kind: input, shape index: {}]   ;;  %s1202_s6 = inlined_call_operand.vmem [shape: bf16[32,32], index: 6, kind: input, shape index: {}]   ;;  %s1203_s7 = inlined_call_operand.vmem [shape: f32[1,32], index: 7, kind: input, shape index: {}, may-alias: {3,7}]   ;;  %s1204_s8 = inlined_call_operand.vmem [shape: f32[2,8,8], index: 8, kind: input, shape index: {}]   ;;  %s1205_s9 = inlined_call_operand.vmem [shape: f32[2,8,32], index: 9, kind: output, shape index: {}]  }
   0x1 LB: > { %s915_s30 = sadd.s32 4294967295, %s1000_s29   ;;  %p919_p0 = scmp.ge.s32.totalorder %s1000_s29, 1  ;;  %s1000_s29 = sphi %s1064_s29, %s19_s29  }
   0x2   : > { %p304_p1 = scmp.lt.s32.totalorder %s1000_s29, 3 }
   0x4   : > { %p305_p2 = pnand %p919_p0, %p304_p1 }
   0x5   : > { %p346_p3 = scmp.lt.s32.totalorder (!%p305_p2), %s915_s30, 1  ;;  %s1003_s24 = smov (!%p305_p2), 88  }
   0x6   : > { %308 = sbr.rel (%p305_p2) target bundleno = 1788 (0x6fc), region = 56  ;;  %s1004_s25 = smov (!%p305_p2), 96  }
   0x7   : > { %s1005_s26 = smov (!%p305_p2), 80   ;;  %s1006_s1 = smov (!%p305_p2), 112  }
   0x8   : > { %s1007_s11 = smov (!%p305_p2), 64   ;;  %s1008_s12 = smov (!%p305_p2), 120  }
   0x9   : > { %s1010_s14 = smov (!%p305_p2), 104   ;;  %s1011_s17 = smov (!%p305_p2), 48  }
   0xa   : > { %s1012_s18 = smov (!%p305_p2), 40   ;;  %s1013_s19 = smov (!%p305_p2), 56  }
   0xb   : > { %s1207_s30 = smov (!%p346_p3, %s915_s30), 1  ;;  %vm366_vm0 = vcmask 261120   ;;  %v1002_v2 = vmov 32.0   ;;  %v947_v14 = vld [vmem:[%s1200_s4 + $0x8] sm:$0xff]  ;;  %v946_v15 = vld [vmem:[%s1200_s4] sm:$0xff]  ;;  %vm466_vm8 = vcmask 64512  }
   0xc   : > { %s1072_s10 = sshll.u32 %s1207_s30, 3  ;;  %972 = vrcp.f32 %v1002_v2  ;;  %450 = vmatpush.bf16.msra.mxu0 %v947_v14  ;;  %v968_v33 = vld [vmem:[%s1198_s2] ss:$0 sm:$0xff]  ;;  %vm519_vm10 = vcmask 1043456  }
   0xd   : > { %s349_s13 = scalar_lea.vmem %s1196_s0, %s1072_s10  ;;  %v969_v40 = vld [vmem:[%s1199_s3] ss:$0 sm:$0xff]  ;;  %s357_s30 = scalar_lea.vmem %s1204_s8, %s1072_s10 }
   0xe   : > { %v1078_v0 = vld [vmem:[%s349_s13] sm:$0xff]  ;;  %s1009_s13 = smov 72  }
   0xf   : > { %v367_v1 = vsel %vm366_vm0, %v1078_v0, 0.0  ;;  %v970_v45 = vld [vmem:[%s1201_s5] ss:$0 sm:$0xff] }
  0x10   : > { %368 = vadd.xlane.f32.xlu0 %v367_v1  ;;  %451 = vmatpush.bf16.msra.mxu0 %v946_v15  ;;  %v1115_v56 = vld [vmem:[%s357_s30] sm:$0xff]  ;;  %s361_s30 = scalar_lea.vmem %s1205_s9, %s1072_s10 }
  0x11   : > { %vm487_vm9 = vcmp.gt.f32.partialorder %v1115_v56, 0.0 }
  0x12   : > { %v973_v3 = vpop.eup %972 }
  0x13   : > { %v371_v4 = vmul.f32 32.0, %v973_v3  ;;  %vm375_vm1 = vweird.f32 %v973_v3 }
  0x15   : > { %v372_v5 = vsub.f32 1.0, %v371_v4  ;;  %v458_v4 = vld [vmem:[%s1202_s6] sm:$0xf] }
  0x17   : > { %v373_v6 = vmul.f32 %v973_v3, %v372_v5  ;;  %v632_v5 = vsel %vm519_vm10, %v458_v4, 0 }
  0x19   : > { %v374_v7 = vadd.f32 %v973_v3, %v373_v6 }
  0x1b   : > { %v376_v8 = vsel %vm375_vm1, %v973_v3, %v374_v7 }
  0x83   : > { %v369_v9 = vpop.xlane.xlu0 %368 }
  0x84   : > { %v377_v10 = vmul.f32 %v376_v8, %v369_v9 }
  0x86   : > { %v378_v11 = vsub.f32 %v1078_v0, %v377_v10 }
  0x88   : > { %v379_v12 = vmul.f32 %v378_v11, %v378_v11  ;;  %v414_v38 = vmul.f32 %v968_v33, %v378_v11 }
  0x8a   : > { %v380_v13 = vsel %vm366_vm0, %v379_v12, 0.0 }
  0x8b   : > { %381 = vadd.xlane.f32.xlu0 %v380_v13 }
  0xfe   : > { %v382_v16 = vpop.xlane.xlu0 %381 }
  0xff   : > { %v383_v17 = vmul.f32 0.032258064, %v382_v16 }
 0x101   : > { %974 = vrsqrt.f32 %v383_v17  ;;  %vm391_vm2 = vcmp.eq.f32.partialorder %v383_v17, inf  ;;  %v394_v25 = vand.u32 2147483648, %v383_v17  ;;  %vm393_vm3 = vcmp.eq.f32.partialorder %v383_v17, 0.0 }
 0x107   : > { %v975_v18 = vpop.eup %974 }
 0x108   : > { %v385_v19 = vmul.f32 %v975_v18, %v383_v17 }
 0x10a   : > { %v386_v20 = vmul.f32 %v975_v18, %v385_v19 }
 0x10c   : > { %v387_v21 = vmul.f32 0.5, %v386_v20 }
 0x10e   : > { %v388_v22 = vsub.f32 1.5, %v387_v21 }
 0x110   : > { %v389_v23 = vmul.f32 %v975_v18, %v388_v22 }
 0x112   : > { %v390_v24 = vmul.f32 %v389_v23, %v383_v17 }
 0x114   : > { %v392_v26 = vsel %vm391_vm2, %v383_v17, %v390_v24 }
 0x115   : > { %v395_v27 = vsel %vm393_vm3, %v394_v25, %v392_v26 }
 0x116   : > { %v396_v28 = vadd.f32 1e-06, %v395_v27 }
 0x118   : > { %976 = vrcp.f32 %v396_v28  ;;  %v408_v32 = vand.u32 2147483648, %v396_v28  ;;  %v406_v35 = vand.u32 2147483647, %v396_v28  ;;  %vm402_vm5 = vweird.f32 %v396_v28 }
 0x11a   : > { %v409_v37 = vor.u32 1.1754944e-38, %v408_v32  ;;  %vm407_vm7 = vcmp.eq.f32.partialorder %v406_v35, 8.507059e+37 }
 0x11e   : > { %v977_v29 = vpop.eup %976 }
 0x11f   : > { %v398_v30 = vmul.f32 %v977_v29, %v396_v28  ;;  %vm403_vm4 = vweird.f32 %v977_v29 }
 0x120   : > { %vm404_vm6 = vmor %vm402_vm5, %vm403_vm4 }
 0x121   : > { %v399_v31 = vsub.f32 1.0, %v398_v30 }
 0x123   : > { %v400_v34 = vmul.f32 %v977_v29, %v399_v31 }
 0x125   : > { %v401_v36 = vadd.f32 %v977_v29, %v400_v34 }
 0x127   : > { %v405_v39 = vsel %vm404_vm6, %v977_v29, %v401_v36 }
 0x128   : > { %v410_v41 = vsel %vm407_vm7, %v409_v37, %v405_v39 }
 0x129   : > { %v415_v42 = vmul.f32 %v414_v38, %v410_v41 }
 0x12b   : > { %v419_v43 = vadd.f32 %v969_v40, %v415_v42 }
 0x12d   : > { %v425_v44 = vpack.c.bf16 %v419_v43, %v419_v43 }
 0x12f   : > { %931 = vmatmul.msk.bf16.vlgmr.msra.gmra.mxu0 %vm366_vm0, %v425_v44 }
 0x1ac   : > { %v453_v46 = vpop.f32.mrf.mxu0 }
 0x1ad   : > { %v454_v47 = vadd.f32 %v970_v45, %v453_v46 }
 0x1af   : > { %v1100_v48 = vpack.c.bf16 %v454_v47, %v454_v47 }
 0x1b1   : > { %539 = vrot.lane.b32.xlu0 %v1100_v48, %s1003_s24  ;;  %464 = vrot.lane.b32.xlu1 %v1100_v48, %s1004_s25 }
 0x1b4   : > { %v455_v49 = vpop.f32.mrf.mxu0 }
 0x1b9   : > { %649 = vrot.lane.b32.xlu0 %v1100_v48, %s1005_s26 }
 0x1c1   : > { %647 = vrot.lane.b32.xlu0 %v1100_v48, %s1006_s1 }
 0x223   : > { %v540_v50 = vpop.permute.xlu0 %539  ;;  %v465_v51 = vpop.permute.xlu1 %464 }
 0x224   : > { %v471_v52 = vsel %vm466_vm8, %v465_v51, 0  ;;  %v545_v53 = vsel %vm466_vm8, %v540_v50, 0 }
 0x225   : > { %480 = vmatpush.bf16.xpose.msra.mxu1 %v471_v52  ;;  %554 = vmatpush.bf16.xpose.msra.mxu3 %v545_v53 }
 0x22b   : > { %v650_v54 = vpop.permute.xlu0 %649 }
 0x22c   : > { %932 = vmatmul.msk.bf16.vlgmr.msra.gmra.mxu1 %vm466_vm8, %v1100_v48  ;;  %v655_v55 = vsel %vm466_vm8, %v650_v54, 0 }
 0x22d   : > { %664 = vmatpush.bf16.xpose.msrb.mxu3 %v655_v55  ;;  %641 = vmatpush.bf16.msrb.mxu1 %v632_v5 }
 0x233   : > { %v648_v24 = vpop.permute.xlu0 %647 }
 0x2a9   : > { %v482_v57 = vpop.f32.mrf.mxu1 }
 0x2aa   : > { %v486_v58 = vmul.f32 0.35355338, %v482_v57 }
 0x2ac   : > { %v488_v59 = vsel %vm487_vm9, %v486_v58, -1e+09 }
 0x2ad   : > { %v489_v60 = vsel %vm466_vm8, %v488_v59, -inf }
 0x2ae   : > { %490 = vmax.xlane.f32.xlu1 %v489_v60 }
 0x2b1   : > { %v484_v61 = vpop.f32.mrf.mxu1 }
 0x321   : > { %v491_v62 = vpop.xlane.xlu1 %490 }
 0x322   : > { %v492_v63 = vsub.f32 %v488_v59, %v491_v62 }
 0x324   : > { %v493_v1 = vmul.f32 1.442695, %v492_v63 }
 0x326   : > { %978 = vpow2.f32 %v493_v1 }
 0x32c   : > { %v979_v2 = vpop.eup %978 }
 0x32d   : > { %v495_v3 = vsel %vm466_vm8, %v979_v2, 0.0 }
 0x32e   : > { %496 = vadd.xlane.f32.xlu2 %v495_v3 }
 0x346   : > { %514 = vrot.lane.b32.xlu2 %v1100_v48, %s1007_s11 }
 0x34e   : > { %537 = vrot.lane.b32.xlu2 %v1100_v48, %s1008_s12 }
 0x356   : > { %741 = vrot.lane.b32.xlu2 %v1100_v48, %s1009_s13 }
 0x35e   : > { %739 = vrot.lane.b32.xlu2 %v1100_v48, %s1010_s14 }
 0x3a1   : > { %v497_v6 = vpop.xlane.xlu2 %496 }
 0x3a2   : > { %980 = vrcp.f32 %v497_v6  ;;  %v509_v12 = vand.u32 2147483648, %v497_v6  ;;  %v507_v14 = vand.u32 2147483647, %v497_v6  ;;  %vm503_vm12 = vweird.f32 %v497_v6 }
 0x3a4   : > { %v510_v16 = vor.u32 1.1754944e-38, %v509_v12  ;;  %vm508_vm14 = vcmp.eq.f32.partialorder %v507_v14, 8.507059e+37 }
 0x3a8   : > { %v981_v7 = vpop.eup %980 }
 0x3a9   : > { %v499_v8 = vmul.f32 %v981_v7, %v497_v6  ;;  %v515_v9 = vpop.permute.xlu2 %514  ;;  %vm504_vm11 = vweird.f32 %v981_v7 }
 0x3aa   : > { %v521_v10 = vsel %vm519_vm10, %v515_v9, 0  ;;  %vm505_vm13 = vmor %vm503_vm12, %vm504_vm11 }
 0x3ab   : > { %v500_v11 = vsub.f32 1.0, %v499_v8  ;;  %530 = vmatpush.bf16.msra.mxu2 %v521_v10 }
 0x3ad   : > { %v501_v13 = vmul.f32 %v981_v7, %v500_v11 }
 0x3af   : > { %v502_v15 = vadd.f32 %v981_v7, %v501_v13 }
 0x3b1   : > { %v538_v17 = vpop.permute.xlu2 %537  ;;  %v506_v18 = vsel %vm505_vm13, %v981_v7, %v502_v15 }
 0x3b2   : > { %934 = vmatmul.msk.bf16.vlgmr.msra.gmra.mxu3 %vm466_vm8, %v538_v17  ;;  %v511_v19 = vsel %vm508_vm14, %v510_v16, %v506_v18 }
 0x3b3   : > { %v512_v20 = vmul.f32 %v979_v2, %v511_v19 }
 0x3b5   : > { %v513_v21 = vpack.c.bf16 %v512_v20, %v512_v20 }
 0x3b7   : > { %933 = vmatmul.msk.bf16.vlgmr.msra.gmra.mxu2 %vm466_vm8, %v513_v21 }
 0x3b9   : > { %v742_v22 = vpop.permute.xlu2 %741 }
 0x3ba   : > { %v747_v23 = vsel %vm466_vm8, %v742_v22, 0 }
 0x3bb   : > { %756 = vmatpush.bf16.xpose.msra.mxu1 %v747_v23 }
 0x3c1   : > { %v740_v37 = vpop.permute.xlu2 %739 }
 0x3c2   : > { %938 = vmatmul.msk.bf16.vlgmr.msrb.gmra.mxu3 %vm466_vm8, %v648_v24 }
 0x435   : > { %v556_v25 = vpop.f32.mrf.mxu3 }
 0x436   : > { %v560_v26 = vmul.f32 0.35355338, %v556_v25 }
 0x438   : > { %v561_v27 = vsel %vm487_vm9, %v560_v26, -1e+09 }
 0x439   : > { %v562_v28 = vsel %vm466_vm8, %v561_v27, -inf }
 0x43a   : > { %v532_v29 = vpop.f32.mrf.mxu2  ;;  %563 = vmax.xlane.f32.xlu1 %v562_v28 }
 0x43b   : > { %v536_v30 = vpack.c.bf16 %v532_v29, %v532_v29 }
 0x43d   : > { %v558_v31 = vpop.f32.mrf.mxu3  ;;  %937 = vmatmul.msk.bf16.vlgmr.msrb.gmra.mxu1 %vm466_vm8, %v536_v30 }
 0x442   : > { %v534_v32 = vpop.f32.mrf.mxu2 }
 0x445   : > { %v666_v33 = vpop.f32.mrf.mxu3 }
 0x446   : > { %v670_v34 = vmul.f32 0.35355338, %v666_v33 }
 0x448   : > { %v671_v35 = vsel %vm487_vm9, %v670_v34, -1e+09 }
 0x449   : > { %v672_v36 = vsel %vm466_vm8, %v671_v35, -inf }
 0x44a   : > { %673 = vmax.xlane.f32.xlu2 %v672_v36 }
 0x44d   : > { %v668_v38 = vpop.f32.mrf.mxu3  ;;  %941 = vmatmul.msk.bf16.vlgmr.msra.gmra.mxu1 %vm466_vm8, %v740_v37 }
 0x462   : > { %697 = vrot.lane.b32.xlu2 %v1100_v48, %s1011_s17 }
 0x4ad   : > { %v564_v39 = vpop.xlane.xlu1 %563 }
 0x4ae   : > { %v565_v40 = vsub.f32 %v561_v27, %v564_v39 }
 0x4b0   : > { %v566_v41 = vmul.f32 1.442695, %v565_v40 }
 0x4b2   : > { %982 = vpow2.f32 %v566_v41 }
 0x4b8   : > { %v1144_v42 = vpop.eup %982 }
 0x4b9   : > { %v568_v43 = vsel %vm466_vm8, %v1144_v42, 0.0 }
 0x4ba   : > { %569 = vadd.xlane.f32.xlu1 %v568_v43  ;;  %v1148_v44 = vpop.f32.mrf.mxu1  ;;  %v461_v43 = vld [vmem:[%s1202_s6 + $0xc] sm:$0xf] }
 0x4bd   : > { %v674_v45 = vpop.xlane.xlu2 %673 }
 0x4be   : > { %v675_v46 = vsub.f32 %v671_v35, %v674_v45  ;;  %v815_v45 = vsel %vm519_vm10, %v461_v43, 0 }
 0x4c0   : > { %v676_v47 = vmul.f32 1.442695, %v675_v46  ;;  %v459_v46 = vld [vmem:[%s1202_s6 + $0x4] sm:$0xf] }
 0x4c2   : > { %984 = vpow2.f32 %v676_v47  ;;  %v645_v49 = vpop.f32.mrf.mxu1  ;;  %v613_v47 = vsel %vm519_vm10, %v459_v46, 0 }
 0x4c3   : > { %622 = vmatpush.bf16.msrb.mxu0 %v613_v47  ;;  %v460_v49 = vld [vmem:[%s1202_s6 + $0x8] sm:$0xf] }
 0x4c5   : > { %v698_v28 = vpop.permute.xlu2 %697 }
 0x4c6   : > { %v703_v33 = vsel %vm519_vm10, %v698_v28, 0 }
 0x4c8   : > { %v1150_v50 = vpop.eup %984 }
 0x4c9   : > { %v678_v51 = vsel %vm466_vm8, %v1150_v50, 0.0 }
 0x4ca   : > { %679 = vadd.xlane.f32.xlu1 %v678_v51  ;;  %v758_v52 = vpop.f32.mrf.mxu1 }
 0x4cb   : > { %v762_v53 = vmul.f32 0.35355338, %v758_v52 }
 0x4cd   : > { %v763_v54 = vsel %vm487_vm9, %v762_v53, -1e+09 }
 0x4ce   : > { %v764_v55 = vsel %vm466_vm8, %v763_v54, -inf }
 0x4cf   : > { %765 = vmax.xlane.f32.xlu0 %v764_v55 }
 0x4d2   : > { %v760_v57 = vpop.f32.mrf.mxu1 }
 0x4e3   : > { %789 = vrot.lane.b32.xlu0 %v1100_v48, %s1012_s18 }
 0x52d   : > { %v570_v56 = vpop.xlane.xlu1 %569 }
 0x52e   : > { %v582_v15 = vand.u32 2147483648, %v570_v56  ;;  %vm576_vm3 = vweird.f32 %v570_v56  ;;  %v580_v17 = vand.u32 2147483647, %v570_v56 }
 0x530   : > { %v583_v23 = vor.u32 1.1754944e-38, %v582_v15  ;;  %vm581_vm7 = vcmp.eq.f32.partialorder %v580_v17, 8.507059e+37 }
 0x53d   : > { %v680_v2 = vpop.xlane.xlu1 %679 }
 0x53e   : > { %v692_v36 = vand.u32 2147483648, %v680_v2  ;;  %vm686_vm11 = vweird.f32 %v680_v2  ;;  %v690_v37 = vand.u32 2147483647, %v680_v2 }
 0x540   : > { %v693_v39 = vor.u32 1.1754944e-38, %v692_v36  ;;  %vm691_vm13 = vcmp.eq.f32.partialorder %v690_v37, 8.507059e+37 }
 0x542   : > { %v766_v58 = vpop.xlane.xlu0 %765 }
 0x543   : > { %v767_v59 = vsub.f32 %v763_v54, %v766_v58 }
 0x545   : > { %v768_v60 = vmul.f32 1.442695, %v767_v59 }
 0x547   : > { %986 = vpow2.f32 %v768_v60 }
 0x548   : > { %988 = vrcp.f32 %v570_v56 }
 0x54d   : > { %v987_v61 = vpop.eup %986 }
 0x54e   : > { %v770_v62 = vsel %vm466_vm8, %v987_v61, 0.0  ;;  %v989_v3 = vpop.eup %988 }
 0x54f   : > { %771 = vadd.xlane.f32.xlu1 %v770_v62  ;;  %v572_v5 = vmul.f32 %v989_v3, %v570_v56  ;;  %vm577_vm1 = vweird.f32 %v989_v3 }
 0x550   : > { %vm578_vm5 = vmor %vm576_vm3, %vm577_vm1 }
 0x551   : > { %v573_v6 = vsub.f32 1.0, %v572_v5 }
 0x553   : > { %v574_v9 = vmul.f32 %v989_v3, %v573_v6 }
 0x555   : > { %v790_v63 = vpop.permute.xlu0 %789  ;;  %v575_v14 = vadd.f32 %v989_v3, %v574_v9 }
 0x556   : > { %v795_v1 = vsel %vm519_vm10, %v790_v63, 0 }
 0x557   : > { %804 = vmatpush.bf16.msra.mxu3 %v795_v1  ;;  %v579_v22 = vsel %vm578_vm5, %v989_v3, %v575_v14 }
 0x558   : > { %v584_v26 = vsel %vm581_vm7, %v583_v23, %v579_v22 }
 0x559   : > { %v585_v29 = vmul.f32 %v1144_v42, %v584_v26 }
 0x55b   : > { %v586_v34 = vpack.c.bf16 %v585_v29, %v585_v29 }
 0x568   : > { %587 = vrot.lane.b32.xlu1 %v1100_v48, %s1013_s19 }
 0x5c2   : > { %v772_v4 = vpop.xlane.xlu1 %771 }
 0x5c3   : > { %990 = vrcp.f32 %v772_v4  ;;  %v784_v11 = vand.u32 2147483648, %v772_v4  ;;  %v782_v13 = vand.u32 2147483647, %v772_v4  ;;  %vm778_vm2 = vweird.f32 %v772_v4 }
 0x5c4   : > { %992 = vrcp.f32 %v680_v2 }
 0x5c5   : > { %v785_v18 = vor.u32 1.1754944e-38, %v784_v11  ;;  %vm783_vm6 = vcmp.eq.f32.partialorder %v782_v13, 8.507059e+37 }
 0x5c9   : > { %v991_v7 = vpop.eup %990 }
 0x5ca   : > { %v774_v8 = vmul.f32 %v991_v7, %v772_v4  ;;  %vm779_vm15 = vweird.f32 %v991_v7  ;;  %v993_v48 = vpop.eup %992  ;;  %v971_v4 = vld [vmem:[%s1203_s7] ss:$0 sm:$0xff] }
 0x5cb   : > { %vm780_vm4 = vmor %vm778_vm2, %vm779_vm15  ;;  %v682_v20 = vmul.f32 %v993_v48, %v680_v2  ;;  %vm687_vm9 = vweird.f32 %v993_v48 }
 0x5cc   : > { %v775_v10 = vsub.f32 1.0, %v774_v8  ;;  %vm688_vm12 = vmor %vm686_vm11, %vm687_vm9 }
 0x5cd   : > { %v683_v27 = vsub.f32 1.0, %v682_v20 }
 0x5ce   : > { %v776_v12 = vmul.f32 %v991_v7, %v775_v10 }
 0x5cf   : > { %v684_v31 = vmul.f32 %v993_v48, %v683_v27 }
 0x5d0   : > { %v777_v16 = vadd.f32 %v991_v7, %v776_v12 }
 0x5d1   : > { %v685_v35 = vadd.f32 %v993_v48, %v684_v31 }
 0x5d2   : > { %v781_v19 = vsel %vm780_vm4, %v991_v7, %v777_v16 }
 0x5d3   : > { %v786_v21 = vsel %vm783_vm6, %v785_v18, %v781_v19  ;;  %v689_v38 = vsel %vm688_vm12, %v993_v48, %v685_v35 }
 0x5d4   : > { %v787_v24 = vmul.f32 %v987_v61, %v786_v21  ;;  %v694_v40 = vsel %vm691_vm13, %v693_v39, %v689_v38 }
 0x5d5   : > { %v695_v41 = vmul.f32 %v1150_v50, %v694_v40  ;;  %v723_v50 = vsel %vm519_vm10, %v460_v49, 0 }
 0x5d6   : > { %v788_v25 = vpack.c.bf16 %v787_v24, %v787_v24  ;;  %732 = vmatpush.bf16.msra.mxu0 %v723_v50 }
 0x5d7   : > { %v696_v42 = vpack.c.bf16 %v695_v41, %v695_v41 }
 0x5d8   : > { %942 = vmatmul.msk.bf16.vlgmr.msra.gmra.mxu3 %vm466_vm8, %v788_v25 }
 0x5da   : > { %v588_v30 = vpop.permute.xlu1 %587 }
 0x5db   : > { %v593_v32 = vsel %vm519_vm10, %v588_v30, 0 }
 0x5dc   : > { %602 = vmatpush.bf16.msrb.mxu2 %v593_v32 }
 0x5df   : > { %935 = vmatmul.msk.bf16.vlgmr.msrb.gmra.mxu2 %vm466_vm8, %v586_v34 }
 0x5e0   : > { %712 = vmatpush.bf16.msra.mxu2 %v703_v33 }
 0x5e4   : > { %824 = vmatpush.bf16.msrb.mxu2 %v815_v45 }
 0x5ef   : > { %939 = vmatmul.msk.bf16.vlgmr.msra.gmra.mxu2 %vm466_vm8, %v696_v42 }
 0x65b   : > { %v806_v51 = vpop.f32.mrf.mxu3 }
 0x65c   : > { %v810_v52 = vpack.c.bf16 %v806_v51, %v806_v51 }
 0x65e   : > { %943 = vmatmul.msk.bf16.vlgmr.msrb.gmra.mxu2 %vm466_vm8, %v810_v52 }
 0x662   : > { %v604_v53 = vpop.f32.mrf.mxu2 }
 0x663   : > { %v608_v54 = vpack.c.bf16 %v604_v53, %v604_v53  ;;  %v808_v55 = vpop.f32.mrf.mxu3 }
 0x665   : > { %936 = vmatmul.msk.bf16.vlgmr.msrb.gmra.mxu0 %vm466_vm8, %v608_v54 }
 0x66a   : > { %v606_v57 = vpop.f32.mrf.mxu2 }
 0x672   : > { %v714_v58 = vpop.f32.mrf.mxu2 }
 0x673   : > { %v718_v59 = vpack.c.bf16 %v714_v58, %v714_v58 }
 0x675   : > { %940 = vmatmul.msk.bf16.vlgmr.msra.gmra.mxu0 %vm466_vm8, %v718_v59 }
 0x67a   : > { %v716_v60 = vpop.f32.mrf.mxu2 }
 0x6e1   : > { %v826_v61 = vpop.f32.mrf.mxu2 }
 0x6e2   : > { %v624_v62 = vpop.f32.mrf.mxu0 }
 0x6e3   : > { %v644_v56 = vadd.f32 %v1148_v44, %v624_v62 }
 0x6e9   : > { %v828_v63 = vpop.f32.mrf.mxu2 }
 0x6ea   : > { %v626_v1 = vpop.f32.mrf.mxu0 }
 0x6f2   : > { %v734_v2 = vpop.f32.mrf.mxu0 }
 0x6f3   : > { %v738_v3 = vadd.f32 %v734_v2, %v644_v56 }
 0x6f5   : > { %v830_v5 = vadd.f32 %v826_v61, %v738_v3 }
 0x6f7   : > { %v835_v6 = vadd.f32 %v971_v4, %v830_v5 }
 0x6f9   : > { %v836_v7 = vadd.f32 %v835_v6, %v1078_v0 }
 0x6fa   : > { %v736_v8 = vpop.f32.mrf.mxu0 }
 0x6fb   : > { %837 = vst.msk [vmem:[%s361_s30] sm:$0xff] %vm366_vm0, %v836_v7 }
 0x6fc PF: > { %s19_s29 = sadd.s32 1, %s1000_s29  }
 0x6fd   : > { %p16_p4 = scmp.ge.s32.totalorder %s19_s29, 4  }
 0x6ff   :  { %18 = sbr.rel (!%p16_p4) target bundleno = 1 (0x1), region = 92 }

// kernel: _lambda_.12
= control target key start
LH: loop header
LB: loop body
LE: loop exit
PB: predicated region body
PF: predicated region fallthrough
CT: control target
= control target key end

     0   :  { %s1062_s29 = smov 0   ;;  %s1198_s0 = inlined_call_operand.vmem [shape: f32[2,8,32], index: 0, kind: input, shape index: {}, may-alias: {0,1}]   ;;  %s1199_s1 = inlined_call_operand.vmem [shape: f32[2,8,32], index: 1, kind: input, shape index: {}, may-alias: {0,1}]   ;;  %s1200_s2 = inlined_call_operand.vmem [shape: f32[1,32], index: 2, kind: input, shape index: {}]   ;;  %s1201_s3 = inlined_call_operand.vmem [shape: f32[1,32], index: 3, kind: input, shape index: {}, may-alias: {3,7}]   ;;  %s1202_s4 = inlined_call_operand.vmem [shape: bf16[32,96], index: 4, kind: input, shape index: {}]   ;;  %s1203_s5 = inlined_call_operand.vmem [shape: f32[1,96], index: 5, kind: input, shape index: {}]   ;;  %s1204_s6 = inlined_call_operand.vmem [shape: bf16[32,32], index: 6, kind: input, shape index: {}]   ;;  %s1205_s7 = inlined_call_operand.vmem [shape: f32[1,32], index: 7, kind: input, shape index: {}, may-alias: {3,7}]   ;;  %s1206_s8 = inlined_call_operand.vmem [shape: f32[2,1,8], index: 8, kind: input, shape index: {}]   ;;  %s1207_s9 = inlined_call_operand.vmem [shape: f32[2,8,32], index: 9, kind: output, shape index: {}]  }
   0x1 LB: > { %s912_s30 = sadd.s32 4294967295, %s997_s29   ;;  %p916_p0 = scmp.ge.s32.totalorder %s997_s29, 1  ;;  %s997_s29 = sphi %s1062_s29, %s19_s29  }
   0x2   : > { %p303_p1 = scmp.lt.s32.totalorder %s997_s29, 3 }
   0x4   : > { %p304_p2 = pnand %p916_p0, %p303_p1 }
   0x5   : > { %p344_p3 = scmp.lt.s32.totalorder (!%p304_p2), %s912_s30, 1  ;;  %s1000_s24 = smov (!%p304_p2), 88  }
   0x6   : > { %307 = sbr.rel (%p304_p2) target bundleno = 1788 (0x6fc), region = 56  ;;  %s1001_s25 = smov (!%p304_p2), 96  }
   0x7   : > { %s1002_s26 = smov (!%p304_p2), 80   ;;  %s1003_s1 = smov (!%p304_p2), 112  }
   0x8   : > { %s1005_s12 = smov (!%p304_p2), 64   ;;  %s1007_s14 = smov (!%p304_p2), 72  }
   0x9   : > { %s1008_s15 = smov (!%p304_p2), 104   ;;  %s1009_s18 = smov (!%p304_p2), 48  }
   0xa   : > { %s1010_s19 = smov (!%p304_p2), 40   ;;  %s1011_s20 = smov (!%p304_p2), 56  }
   0xb   : > { %s1211_s30 = smov (!%p344_p3, %s912_s30), 1  ;;  %vm363_vm0 = vcmask 261120   ;;  %v999_v2 = vmov 32.0   ;;  %v943_v14 = vld [vmem:[%s1202_s4 + $0x8] sm:$0xff]  ;;  %v942_v15 = vld [vmem:[%s1202_s4] sm:$0xff]  ;;  %vm463_vm8 = vcmask 64512  }
   0xc   : > { %s917_s10 = sshll.u32 %s1211_s30, 3  ;;  %969 = vrcp.f32 %v999_v2  ;;  %447 = vmatpush.bf16.msra.mxu0 %v943_v14  ;;  %v965_v33 = vld [vmem:[%s1200_s2] ss:$0 sm:$0xff]  ;;  %s354_s11 = scalar_lea.vmem %s1206_s8, %s1211_s30  ;;  %v1004_v57 = vmov 0   ;;  %vm519_vm11 = vcmask 1043456  }
   0xd   : > { %s347_s13 = scalar_lea.vmem %s1198_s0, %s917_s10  ;;  %v966_v40 = vld [vmem:[%s1201_s3] ss:$0 sm:$0xff] }
   0xe   : > { %v1078_v0 = vld [vmem:[%s347_s13] sm:$0xff]  ;;  %s1006_s13 = smov 120  }
   0xf   : > { %v364_v1 = vsel %vm363_vm0, %v1078_v0, 0.0  ;;  %v967_v45 = vld [vmem:[%s1203_s5] ss:$0 sm:$0xff] }
  0x10   : > { %365 = vadd.xlane.f32.xlu0 %v364_v1  ;;  %448 = vmatpush.bf16.msra.mxu0 %v942_v15  ;;  %v454_v56 = vld [vmem:[%s354_s11] sm:$0x1] }
  0x11   : > { %vm484_vm9 = vcmp.gt.f32.partialorder %v454_v56, 0.0 }
  0x12   : > { %v970_v3 = vpop.eup %969  ;;  %v485_v58 = vsel %vm484_vm9, 1, %v1004_v57 }
  0x13   : > { %v368_v4 = vmul.f32 32.0, %v970_v3  ;;  %vm372_vm1 = vweird.f32 %v970_v3  ;;  %v486_v59 = vperm.slane %v485_v58, 0 }
  0x15   : > { %v369_v5 = vsub.f32 1.0, %v368_v4  ;;  %vm1115_vm10 = vcmp.eq.s32.totalorder %v486_v59, 1 }
  0x17   : > { %v370_v6 = vmul.f32 %v970_v3, %v369_v5 }
  0x19   : > { %v371_v7 = vadd.f32 %v970_v3, %v370_v6 }
  0x1b   : > { %v373_v8 = vsel %vm372_vm1, %v970_v3, %v371_v7 }
  0x83   : > { %v366_v9 = vpop.xlane.xlu0 %365 }
  0x84   : > { %v374_v10 = vmul.f32 %v373_v8, %v366_v9  ;;  %v455_v8 = vld [vmem:[%s1204_s6] sm:$0xf] }
  0x85   : > { %v632_v9 = vsel %vm519_vm11, %v455_v8, 0 }
  0x86   : > { %v375_v11 = vsub.f32 %v1078_v0, %v374_v10 }
  0x88   : > { %v376_v12 = vmul.f32 %v375_v11, %v375_v11  ;;  %v411_v38 = vmul.f32 %v965_v33, %v375_v11 }
  0x8a   : > { %v377_v13 = vsel %vm363_vm0, %v376_v12, 0.0 }
  0x8b   : > { %378 = vadd.xlane.f32.xlu0 %v377_v13 }
  0xfe   : > { %v379_v16 = vpop.xlane.xlu0 %378 }
  0xff   : > { %v380_v17 = vmul.f32 0.032258064, %v379_v16 }
 0x101   : > { %971 = vrsqrt.f32 %v380_v17  ;;  %vm388_vm2 = vcmp.eq.f32.partialorder %v380_v17, inf  ;;  %v391_v25 = vand.u32 2147483648, %v380_v17  ;;  %vm390_vm3 = vcmp.eq.f32.partialorder %v380_v17, 0.0 }
 0x107   : > { %v972_v18 = vpop.eup %971 }
 0x108   : > { %v382_v19 = vmul.f32 %v972_v18, %v380_v17 }
 0x10a   : > { %v383_v20 = vmul.f32 %v972_v18, %v382_v19 }
 0x10c   : > { %v384_v21 = vmul.f32 0.5, %v383_v20 }
 0x10e   : > { %v385_v22 = vsub.f32 1.5, %v384_v21 }
 0x110   : > { %v386_v23 = vmul.f32 %v972_v18, %v385_v22 }
 0x112   : > { %v387_v24 = vmul.f32 %v386_v23, %v380_v17 }
 0x114   : > { %v389_v26 = vsel %vm388_vm2, %v380_v17, %v387_v24 }
 0x115   : > { %v392_v27 = vsel %vm390_vm3, %v391_v25, %v389_v26 }
 0x116   : > { %v393_v28 = vadd.f32 1e-06, %v392_v27 }
 0x118   : > { %973 = vrcp.f32 %v393_v28  ;;  %v405_v32 = vand.u32 2147483648, %v393_v28  ;;  %v403_v35 = vand.u32 2147483647, %v393_v28  ;;  %vm399_vm5 = vweird.f32 %v393_v28 }
 0x11a   : > { %v406_v37 = vor.u32 1.1754944e-38, %v405_v32  ;;  %vm404_vm7 = vcmp.eq.f32.partialorder %v403_v35, 8.507059e+37 }
 0x11e   : > { %v974_v29 = vpop.eup %973 }
 0x11f   : > { %v395_v30 = vmul.f32 %v974_v29, %v393_v28  ;;  %vm400_vm4 = vweird.f32 %v974_v29 }
 0x120   : > { %vm401_vm6 = vmor %vm399_vm5, %vm400_vm4 }
 0x121   : > { %v396_v31 = vsub.f32 1.0, %v395_v30 }
 0x123   : > { %v397_v34 = vmul.f32 %v974_v29, %v396_v31 }
 0x125   : > { %v398_v36 = vadd.f32 %v974_v29, %v397_v34 }
 0x127   : > { %v402_v39 = vsel %vm401_vm6, %v974_v29, %v398_v36 }
 0x128   : > { %v407_v41 = vsel %vm404_vm7, %v406_v37, %v402_v39 }
 0x129   : > { %v412_v42 = vmul.f32 %v411_v38, %v407_v41 }
 0x12b   : > { %v416_v43 = vadd.f32 %v966_v40, %v412_v42 }
 0x12d   : > { %v422_v44 = vpack.c.bf16 %v416_v43, %v416_v43 }
 0x12f   : > { %927 = vmatmul.msk.bf16.vlgmr.msra.gmra.mxu0 %vm363_vm0, %v422_v44 }
 0x1ac   : > { %v450_v46 = vpop.f32.mrf.mxu0 }
 0x1ad   : > { %v451_v47 = vadd.f32 %v967_v45, %v450_v46 }
 0x1af   : > { %v1100_v48 = vpack.c.bf16 %v451_v47, %v451_v47 }
 0x1b1   : > { %539 = vrot.lane.b32.xlu0 %v1100_v48, %s1000_s24  ;;  %461 = vrot.lane.b32.xlu1 %v1100_v48, %s1001_s25 }
 0x1b4   : > { %v452_v49 = vpop.f32.mrf.mxu0 }
 0x1b9   : > { %649 = vrot.lane.b32.xlu0 %v1100_v48, %s1002_s26 }
 0x1c1   : > { %647 = vrot.lane.b32.xlu0 %v1100_v48, %s1003_s1 }
 0x223   : > { %v540_v50 = vpop.permute.xlu0 %539  ;;  %v462_v51 = vpop.permute.xlu1 %461 }
 0x224   : > { %v468_v52 = vsel %vm463_vm8, %v462_v51, 0  ;;  %v545_v53 = vsel %vm463_vm8, %v540_v50, 0 }
 0x225   : > { %477 = vmatpush.bf16.xpose.msra.mxu1 %v468_v52  ;;  %554 = vmatpush.bf16.xpose.msra.mxu3 %v545_v53 }
 0x22b   : > { %v650_v54 = vpop.permute.xlu0 %649 }
 0x22c   : > { %928 = vmatmul.msk.bf16.vlgmr.msra.gmra.mxu1 %vm463_vm8, %v1100_v48  ;;  %v655_v55 = vsel %vm463_vm8, %v650_v54, 0 }
 0x22d   : > { %664 = vmatpush.bf16.xpose.msrb.mxu3 %v655_v55  ;;  %641 = vmatpush.bf16.msrb.mxu1 %v632_v9 }
 0x233   : > { %v648_v28 = vpop.permute.xlu0 %647 }
 0x2a9   : > { %v479_v60 = vpop.f32.mrf.mxu1 }
 0x2aa   : > { %v483_v62 = vmul.f32 0.35355338, %v479_v60 }
 0x2ac   : > { %v488_v63 = vsel %vm1115_vm10, %v483_v62, -1e+09 }
 0x2ad   : > { %v489_v1 = vsel %vm463_vm8, %v488_v63, -inf }
 0x2ae   : > { %490 = vmax.xlane.f32.xlu1 %v489_v1 }
 0x2b1   : > { %v481_v2 = vpop.f32.mrf.mxu1 }
 0x321   : > { %v491_v3 = vpop.xlane.xlu1 %490 }
 0x322   : > { %v492_v4 = vsub.f32 %v488_v63, %v491_v3 }
 0x324   : > { %v493_v5 = vmul.f32 1.442695, %v492_v4 }
 0x326   : > { %975 = vpow2.f32 %v493_v5 }
 0x32c   : > { %v976_v6 = vpop.eup %975 }
 0x32d   : > { %v495_v7 = vsel %vm463_vm8, %v976_v6, 0.0 }
 0x32e   : > { %496 = vadd.xlane.f32.xlu2 %v495_v7 }
 0x346   : > { %514 = vrot.lane.b32.xlu2 %v1100_v48, %s1005_s12  ;;  %s358_s12 = scalar_lea.vmem %s1207_s9, %s917_s10 }
 0x34e   : > { %537 = vrot.lane.b32.xlu2 %v1100_v48, %s1006_s13 }
 0x356   : > { %741 = vrot.lane.b32.xlu2 %v1100_v48, %s1007_s14 }
 0x35e   : > { %739 = vrot.lane.b32.xlu2 %v1100_v48, %s1008_s15 }
 0x3a1   : > { %v497_v10 = vpop.xlane.xlu2 %496 }
 0x3a2   : > { %977 = vrcp.f32 %v497_v10  ;;  %v509_v16 = vand.u32 2147483648, %v497_v10  ;;  %v507_v18 = vand.u32 2147483647, %v497_v10  ;;  %vm503_vm13 = vweird.f32 %v497_v10 }
 0x3a4   : > { %v510_v20 = vor.u32 1.1754944e-38, %v509_v16  ;;  %vm508_vm15 = vcmp.eq.f32.partialorder %v507_v18, 8.507059e+37 }
 0x3a8   : > { %v978_v11 = vpop.eup %977 }
 0x3a9   : > { %v499_v12 = vmul.f32 %v978_v11, %v497_v10  ;;  %v515_v13 = vpop.permute.xlu2 %514  ;;  %vm504_vm12 = vweird.f32 %v978_v11 }
 0x3aa   : > { %v521_v14 = vsel %vm519_vm11, %v515_v13, 0  ;;  %vm505_vm14 = vmor %vm503_vm13, %vm504_vm12 }
 0x3ab   : > { %v500_v15 = vsub.f32 1.0, %v499_v12  ;;  %530 = vmatpush.bf16.msra.mxu2 %v521_v14 }
 0x3ad   : > { %v501_v17 = vmul.f32 %v978_v11, %v500_v15 }
 0x3af   : > { %v502_v19 = vadd.f32 %v978_v11, %v501_v17 }
 0x3b1   : > { %v538_v21 = vpop.permute.xlu2 %537  ;;  %v506_v22 = vsel %vm505_vm14, %v978_v11, %v502_v19 }
 0x3b2   : > { %930 = vmatmul.msk.bf16.vlgmr.msra.gmra.mxu3 %vm463_vm8, %v538_v21  ;;  %v511_v23 = vsel %vm508_vm15, %v510_v20, %v506_v22 }
 0x3b3   : > { %v512_v24 = vmul.f32 %v976_v6, %v511_v23 }
 0x3b5   : > { %v513_v25 = vpack.c.bf16 %v512_v24, %v512_v24 }
 0x3b7   : > { %929 = vmatmul.msk.bf16.vlgmr.msra.gmra.mxu2 %vm463_vm8, %v513_v25 }
 0x3b9   : > { %v742_v26 = vpop.permute.xlu2 %741 }
 0x3ba   : > { %v747_v27 = vsel %vm463_vm8, %v742_v26, 0 }
 0x3bb   : > { %756 = vmatpush.bf16.xpose.msra.mxu1 %v747_v27 }
 0x3c1   : > { %v740_v41 = vpop.permute.xlu2 %739 }
 0x3c2   : > { %934 = vmatmul.msk.bf16.vlgmr.msrb.gmra.mxu3 %vm463_vm8, %v648_v28 }
 0x435   : > { %v556_v29 = vpop.f32.mrf.mxu3 }
 0x436   : > { %v560_v30 = vmul.f32 0.35355338, %v556_v29 }
 0x438   : > { %v561_v31 = vsel %vm1115_vm10, %v560_v30, -1e+09 }
 0x439   : > { %v562_v32 = vsel %vm463_vm8, %v561_v31, -inf }
 0x43a   : > { %v532_v33 = vpop.f32.mrf.mxu2  ;;  %563 = vmax.xlane.f32.xlu1 %v562_v32 }
 0x43b   : > { %v536_v34 = vpack.c.bf16 %v532_v33, %v532_v33 }
 0x43d   : > { %v558_v35 = vpop.f32.mrf.mxu3  ;;  %933 = vmatmul.msk.bf16.vlgmr.msrb.gmra.mxu1 %vm463_vm8, %v536_v34 }
 0x442   : > { %v534_v36 = vpop.f32.mrf.mxu2 }
 0x445   : > { %v666_v37 = vpop.f32.mrf.mxu3 }
 0x446   : > { %v670_v38 = vmul.f32 0.35355338, %v666_v37 }
 0x448   : > { %v671_v39 = vsel %vm1115_vm10, %v670_v38, -1e+09 }
 0x449   : > { %v672_v40 = vsel %vm463_vm8, %v671_v39, -inf }
 0x44a   : > { %673 = vmax.xlane.f32.xlu2 %v672_v40 }
 0x44d   : > { %v668_v42 = vpop.f32.mrf.mxu3  ;;  %937 = vmatmul.msk.bf16.vlgmr.msra.gmra.mxu1 %vm463_vm8, %v740_v41 }
 0x462   : > { %697 = vrot.lane.b32.xlu2 %v1100_v48, %s1009_s18 }
 0x4ad   : > { %v564_v43 = vpop.xlane.xlu1 %563 }
 0x4ae   : > { %v565_v44 = vsub.f32 %v561_v31, %v564_v43 }
 0x4b0   : > { %v566_v45 = vmul.f32 1.442695, %v565_v44 }
 0x4b2   : > { %979 = vpow2.f32 %v566_v45 }
 0x4b8   : > { %v1145_v46 = vpop.eup %979 }
 0x4b9   : > { %v568_v47 = vsel %vm463_vm8, %v1145_v46, 0.0 }
 0x4ba   : > { %569 = vadd.xlane.f32.xlu1 %v568_v47  ;;  %v1149_v49 = vpop.f32.mrf.mxu1  ;;  %v458_v47 = vld [vmem:[%s1204_s6 + $0xc] sm:$0xf] }
 0x4bd   : > { %v674_v50 = vpop.xlane.xlu2 %673 }
 0x4be   : > { %v675_v51 = vsub.f32 %v671_v39, %v674_v50  ;;  %v815_v50 = vsel %vm519_vm11, %v458_v47, 0 }
 0x4c0   : > { %v676_v52 = vmul.f32 1.442695, %v675_v51  ;;  %v456_v51 = vld [vmem:[%s1204_s6 + $0x4] sm:$0xf] }
 0x4c2   : > { %981 = vpow2.f32 %v676_v52  ;;  %v645_v53 = vpop.f32.mrf.mxu1  ;;  %v613_v52 = vsel %vm519_vm11, %v456_v51, 0 }
 0x4c3   : > { %622 = vmatpush.bf16.msrb.mxu0 %v613_v52  ;;  %v457_v53 = vld [vmem:[%s1204_s6 + $0x8] sm:$0xf] }
 0x4c5   : > { %v698_v32 = vpop.permute.xlu2 %697 }
 0x4c6   : > { %v703_v37 = vsel %vm519_vm11, %v698_v32, 0 }
 0x4c8   : > { %v1151_v54 = vpop.eup %981 }
 0x4c9   : > { %v678_v55 = vsel %vm463_vm8, %v1151_v54, 0.0 }
 0x4ca   : > { %679 = vadd.xlane.f32.xlu1 %v678_v55  ;;  %v758_v56 = vpop.f32.mrf.mxu1 }
 0x4cb   : > { %v762_v57 = vmul.f32 0.35355338, %v758_v56 }
 0x4cd   : > { %v763_v58 = vsel %vm1115_vm10, %v762_v57, -1e+09 }
 0x4ce   : > { %v764_v59 = vsel %vm463_vm8, %v763_v58, -inf }
 0x4cf   : > { %765 = vmax.xlane.f32.xlu0 %v764_v59 }
 0x4d2   : > { %v760_v60 = vpop.f32.mrf.mxu1 }
 0x4e3   : > { %789 = vrot.lane.b32.xlu0 %v1100_v48, %s1010_s19 }
 0x52d   : > { %v570_v61 = vpop.xlane.xlu1 %569 }
 0x52e   : > { %v582_v19 = vand.u32 2147483648, %v570_v61  ;;  %vm576_vm4 = vweird.f32 %v570_v61  ;;  %v580_v21 = vand.u32 2147483647, %v570_v61 }
 0x530   : > { %v583_v27 = vor.u32 1.1754944e-38, %v582_v19  ;;  %vm581_vm9 = vcmp.eq.f32.partialorder %v580_v21, 8.507059e+37 }
 0x53d   : > { %v680_v6 = vpop.xlane.xlu1 %679 }
 0x53e   : > { %v692_v40 = vand.u32 2147483648, %v680_v6  ;;  %vm686_vm12 = vweird.f32 %v680_v6  ;;  %v690_v41 = vand.u32 2147483647, %v680_v6 }
 0x540   : > { %v693_v43 = vor.u32 1.1754944e-38, %v692_v40  ;;  %vm691_vm14 = vcmp.eq.f32.partialorder %v690_v41, 8.507059e+37 }
 0x542   : > { %v766_v62 = vpop.xlane.xlu0 %765 }
 0x543   : > { %v767_v63 = vsub.f32 %v763_v58, %v766_v62 }
 0x545   : > { %v768_v1 = vmul.f32 1.442695, %v767_v63 }
 0x547   : > { %983 = vpow2.f32 %v768_v1 }
 0x548   : > { %985 = vrcp.f32 %v570_v61 }
 0x54d   : > { %v984_v2 = vpop.eup %983 }
 0x54e   : > { %v770_v3 = vsel %vm463_vm8, %v984_v2, 0.0  ;;  %v986_v7 = vpop.eup %985 }
 0x54f   : > { %771 = vadd.xlane.f32.xlu1 %v770_v3  ;;  %v572_v9 = vmul.f32 %v986_v7, %v570_v61  ;;  %vm577_vm2 = vweird.f32 %v986_v7 }
 0x550   : > { %vm578_vm6 = vmor %vm576_vm4, %vm577_vm2 }
 0x551   : > { %v573_v10 = vsub.f32 1.0, %v572_v9 }
 0x553   : > { %v574_v13 = vmul.f32 %v986_v7, %v573_v10 }
 0x555   : > { %v790_v4 = vpop.permute.xlu0 %789  ;;  %v575_v18 = vadd.f32 %v986_v7, %v574_v13 }
 0x556   : > { %v795_v5 = vsel %vm519_vm11, %v790_v4, 0 }
 0x557   : > { %804 = vmatpush.bf16.msra.mxu3 %v795_v5  ;;  %v579_v26 = vsel %vm578_vm6, %v986_v7, %v575_v18 }
 0x558   : > { %v584_v30 = vsel %vm581_vm9, %v583_v27, %v579_v26 }
 0x559   : > { %v585_v33 = vmul.f32 %v1145_v46, %v584_v30 }
 0x55b   : > { %v586_v38 = vpack.c.bf16 %v585_v33, %v585_v33 }
 0x568   : > { %587 = vrot.lane.b32.xlu1 %v1100_v48, %s1011_s20 }
 0x5c2   : > { %v772_v8 = vpop.xlane.xlu1 %771 }
 0x5c3   : > { %987 = vrcp.f32 %v772_v8  ;;  %v784_v15 = vand.u32 2147483648, %v772_v8  ;;  %v782_v17 = vand.u32 2147483647, %v772_v8  ;;  %vm778_vm3 = vweird.f32 %v772_v8 }
 0x5c4   : > { %989 = vrcp.f32 %v680_v6 }
 0x5c5   : > { %v785_v22 = vor.u32 1.1754944e-38, %v784_v15  ;;  %vm783_vm7 = vcmp.eq.f32.partialorder %v782_v17, 8.507059e+37 }
 0x5c9   : > { %v988_v11 = vpop.eup %987 }
 0x5ca   : > { %v774_v12 = vmul.f32 %v988_v11, %v772_v8  ;;  %vm779_vm1 = vweird.f32 %v988_v11  ;;  %v990_v48 = vpop.eup %989  ;;  %v968_v8 = vld [vmem:[%s1205_s7] ss:$0 sm:$0xff] }
 0x5cb   : > { %vm780_vm5 = vmor %vm778_vm3, %vm779_vm1  ;;  %v682_v24 = vmul.f32 %v990_v48, %v680_v6  ;;  %vm687_vm10 = vweird.f32 %v990_v48 }
 0x5cc   : > { %v775_v14 = vsub.f32 1.0, %v774_v12  ;;  %vm688_vm13 = vmor %vm686_vm12, %vm687_vm10 }
 0x5cd   : > { %v683_v31 = vsub.f32 1.0, %v682_v24 }
 0x5ce   : > { %v776_v16 = vmul.f32 %v988_v11, %v775_v14 }
 0x5cf   : > { %v684_v35 = vmul.f32 %v990_v48, %v683_v31 }
 0x5d0   : > { %v777_v20 = vadd.f32 %v988_v11, %v776_v16 }
 0x5d1   : > { %v685_v39 = vadd.f32 %v990_v48, %v684_v35 }
 0x5d2   : > { %v781_v23 = vsel %vm780_vm5, %v988_v11, %v777_v20 }
 0x5d3   : > { %v786_v25 = vsel %vm783_vm7, %v785_v22, %v781_v23  ;;  %v689_v42 = vsel %vm688_vm13, %v990_v48, %v685_v39 }
 0x5d4   : > { %v787_v28 = vmul.f32 %v984_v2, %v786_v25  ;;  %v694_v44 = vsel %vm691_vm14, %v693_v43, %v689_v42 }
 0x5d5   : > { %v695_v45 = vmul.f32 %v1151_v54, %v694_v44  ;;  %v723_v54 = vsel %vm519_vm11, %v457_v53, 0 }
 0x5d6   : > { %v788_v29 = vpack.c.bf16 %v787_v28, %v787_v28  ;;  %732 = vmatpush.bf16.msra.mxu0 %v723_v54 }
 0x5d7   : > { %v696_v46 = vpack.c.bf16 %v695_v45, %v695_v45 }
 0x5d8   : > { %938 = vmatmul.msk.bf16.vlgmr.msra.gmra.mxu3 %vm463_vm8, %v788_v29 }
 0x5da   : > { %v588_v34 = vpop.permute.xlu1 %587 }
 0x5db   : > { %v593_v36 = vsel %vm519_vm11, %v588_v34, 0 }
 0x5dc   : > { %602 = vmatpush.bf16.msrb.mxu2 %v593_v36 }
 0x5df   : > { %931 = vmatmul.msk.bf16.vlgmr.msrb.gmra.mxu2 %vm463_vm8, %v586_v38 }
 0x5e0   : > { %712 = vmatpush.bf16.msra.mxu2 %v703_v37 }
 0x5e4   : > { %824 = vmatpush.bf16.msrb.mxu2 %v815_v50 }
 0x5ef   : > { %935 = vmatmul.msk.bf16.vlgmr.msra.gmra.mxu2 %vm463_vm8, %v696_v46 }
 0x65b   : > { %v806_v55 = vpop.f32.mrf.mxu3 }
 0x65c   : > { %v810_v56 = vpack.c.bf16 %v806_v55, %v806_v55 }
 0x65e   : > { %939 = vmatmul.msk.bf16.vlgmr.msrb.gmra.mxu2 %vm463_vm8, %v810_v56 }
 0x662   : > { %v604_v57 = vpop.f32.mrf.mxu2 }
 0x663   : > { %v608_v58 = vpack.c.bf16 %v604_v57, %v604_v57  ;;  %v808_v59 = vpop.f32.mrf.mxu3 }
 0x665   : > { %932 = vmatmul.msk.bf16.vlgmr.msrb.gmra.mxu0 %vm463_vm8, %v608_v58 }
 0x66a   : > { %v606_v60 = vpop.f32.mrf.mxu2 }
 0x672   : > { %v714_v62 = vpop.f32.mrf.mxu2 }
 0x673   : > { %v718_v63 = vpack.c.bf16 %v714_v62, %v714_v62 }
 0x675   : > { %936 = vmatmul.msk.bf16.vlgmr.msra.gmra.mxu0 %vm463_vm8, %v718_v63 }
 0x67a   : > { %v716_v1 = vpop.f32.mrf.mxu2 }
 0x6e1   : > { %v826_v2 = vpop.f32.mrf.mxu2 }
 0x6e2   : > { %v624_v3 = vpop.f32.mrf.mxu0 }
 0x6e3   : > { %v644_v61 = vadd.f32 %v1149_v49, %v624_v3 }
 0x6e9   : > { %v828_v4 = vpop.f32.mrf.mxu2 }
 0x6ea   : > { %v626_v5 = vpop.f32.mrf.mxu0 }
 0x6f2   : > { %v734_v6 = vpop.f32.mrf.mxu0 }
 0x6f3   : > { %v738_v7 = vadd.f32 %v734_v6, %v644_v61 }
 0x6f5   : > { %v830_v9 = vadd.f32 %v826_v2, %v738_v7 }
 0x6f7   : > { %v835_v10 = vadd.f32 %v968_v8, %v830_v9 }
 0x6f9   : > { %v836_v11 = vadd.f32 %v835_v10, %v1078_v0 }
 0x6fa   : > { %v736_v12 = vpop.f32.mrf.mxu0 }
 0x6fb   : > { %837 = vst.msk [vmem:[%s358_s12] sm:$0xff] %vm363_vm0, %v836_v11 }
 0x6fc PF: > { %s19_s29 = sadd.s32 1, %s997_s29  }
 0x6fd   : > { %p16_p4 = scmp.ge.s32.totalorder %s19_s29, 4  }
 0x6ff   :  { %18 = sbr.rel (!%p16_p4) target bundleno = 1 (0x1), region = 92 }

// kernel: _lambda_.23
= control target key start
LH: loop header
LB: loop body
LE: loop exit
PB: predicated region body
PF: predicated region fallthrough
CT: control target
= control target key end

     0   :  { %8 = vsyncpa [#allocation3], 0  ;;  %s536_s0 = inlined_call_operand.vmem [shape: f32[16,32], index: 0, kind: input, shape index: {}]   ;;  %s537_s1 = inlined_call_operand.vmem [shape: f32[1,32], index: 1, kind: input, shape index: {}]   ;;  %s538_s2 = inlined_call_operand.vmem [shape: f32[1,32], index: 2, kind: input, shape index: {}]   ;;  %s539_s3 = inlined_call_operand.hbm [shape: f32[16,32], index: 3, kind: output, shape index: {}]  }
   0x1   :  { %10 = vsyncpa [#allocation3 + $0x1], 0  ;;  %s442_s12 = smov 0   ;;  %s444_s13 = smov 0  }
   0x2   :  { %s446_s14 = smov 0   ;;  %s448_s15 = smov 0  }
   0x3 LB: > { %s463_s16 = sadd.s32 4294967295, %s419_s15   ;;  %s299_s17 = sadd.s32 4294967294, %s419_s15   ;;  %s419_s15 = sphi %s448_s15, %s545_s15   ;;  %s415_s14 = sphi %s446_s14, %s544_s14   ;;  %s411_s13 = sphi %s444_s13, %s543_s13   ;;  %s407_s12 = sphi %s442_s12, %s542_s12  }
   0x4   : > { %s467_s18 = sadd.s32 1, %s419_s15   ;;  %s91_s19 = sadd.s32 1, %s415_s14 }
   0x5   : > { %s88_s20 = ssub.s32 %s419_s15, %s467_s18  ;;  %p101_p0 = scmp.ne.s32.totalorder %s415_s14, %s411_s13 }
   0x6   : > { %p89_p1 = scmp.eq.s32.totalorder %s88_s20, 0  ;;  %p102_p2 = scmp.eq.s32.totalorder %s463_s16, 1 }
   0x7   : > { %p107_p3 = scmp.ne.s32.totalorder %s411_s13, %s407_s12  ;;  %p108_p4 = scmp.eq.s32.totalorder %s299_s17, 1 }
   0x8   : > { %s478_s21 = scalar_select %p89_p1, %s415_s14, %s91_s19  }
   0x9   : > { %p480_p5 = por %p102_p2, %p101_p0  ;;  %p484_p6 = por %p108_p4, %p107_p3 }
   0xa   : > { %p302_p7 = scmp.ge.s32.totalorder %s419_s15, 1  ;;  %p139_p8 = scmp.lt.s32.totalorder %s419_s15, 3 }
   0xc   : > { %p140_p9 = pnand %p302_p7, %p139_p8 }
   0xd   : > { %p162_p10 = scmp.lt.s32.totalorder (!%p140_p9), %s463_s16, 1  ;;  %s159_s29 = sand.u32 (!%p140_p9), 1, %s411_s13  }
   0xe   : > { %143 = sbr.rel (%p140_p9) target bundleno = 313 (0x139), region = 32  ;;  %s303_s30 = sshll.u32 (!%p140_p9), %s159_s29, 3 }
   0xf   : > { %s306_s4 = sshll.u32 (!%p140_p9), %s463_s16, 3  ;;  %s225_s20 = scalar_lea.sflag (!%p140_p9), [#allocation3], %s159_s29 }
  0x10   : > { %s235_s9 = scalar_lea.hbm (!%p140_p9), %s539_s3, %s306_s4 }
  0x11   : > { %s239_s19 = sshll.u32 (!%p140_p9), %s235_s9, 4  ;;  %s240_s19 = int_to_ptr.hbm [resolvable:$true] %s239_s19 }
  0x13   : > { %s163_s24 = scalar_select %p162_p10, %s463_s16, 1  ;;  %vm169_vm0 = vcmask 261120   ;;  %v421_v2 = vmov 32.0   ;;  %v349_v31 = vld [vmem:[%s537_s1] ss:$0 sm:$0xff] }
  0x14   : > { %351 = vrcp.f32 %v421_v2  ;;  %v350_v38 = vld [vmem:[%s538_s2] ss:$0 sm:$0xff]  ;;  %s161_s16 = scalar_lea.vmem [#allocation2], %s303_s30 }
  0x15   : > { %s304_s25 = sshll.u32 %s163_s24, 3  ;;  %s237_s17 = sshll.u32 %s161_s16, 4  ;;  %s238_s17 = int_to_ptr.vmem [resolvable:$true] %s237_s17 }
  0x16   : > { %s165_s28 = scalar_lea.vmem %s536_s0, %s304_s25  ;;  %s371_s24 = sshra.s32 %s240_s19, 4  ;;  %s372_s24 = int_to_ptr.hbm [resolvable:$true] %s371_s24 }
  0x17   : > { %v166_v0 = vld [vmem:[%s165_s28] sm:$0xff]  ;;  %s373_s25 = scalar_lea.hbm %s372_s24, 8  ;;  %s377_s28 = scalar_lea.hbm %s539_s3, 16 }
  0x18   : > { %v170_v1 = vsel %vm169_vm0, %v166_v0, 0.0  ;;  %p374_p11 = scmp.ne.s32.totalorder %s372_s24, %s373_s25  ;;  %p378_p0 = scmp.lt.s32.totalorder %s372_s24, %s539_s3 }
  0x19   : > { %171 = vadd.xlane.f32.xlu0 %v170_v1  ;;  %p379_p1 = scmp.lt.s32.totalorder %s377_s28, %s373_s25 }
  0x1a   : > { %v352_v3 = vpop.eup %351  ;;  %p375_p12 = pnand %p374_p11, %p480_p5 }
  0x1b   : > { %v174_v4 = vmul.f32 32.0, %v352_v3  ;;  %vm178_vm1 = vweird.f32 %v352_v3  ;;  %p380_p2 = por %p379_p1, %p378_p0 }
  0x1c   : > { %p376_p13 = pneg %p375_p12 }
  0x1d   : > { %v175_v5 = vsub.f32 1.0, %v174_v4 }
  0x1e   : > { %p381_p3 = pnand %p380_p2, %p376_p13 }
  0x1f   : > { %v176_v6 = vmul.f32 %v352_v3, %v175_v5 }
  0x21   : > { %v177_v7 = vadd.f32 %v352_v3, %v176_v6 }
  0x23   : > { %v179_v8 = vsel %vm178_vm1, %v352_v3, %v177_v7 }
  0x8c   : > { %v172_v9 = vpop.xlane.xlu0 %171 }
  0x8d   : > { %v180_v10 = vmul.f32 %v179_v8, %v172_v9 }
  0x8f   : > { %v181_v11 = vsub.f32 %v166_v0, %v180_v10 }
  0x91   : > { %v182_v12 = vmul.f32 %v181_v11, %v181_v11  ;;  %v217_v36 = vmul.f32 %v349_v31, %v181_v11 }
  0x93   : > { %v183_v13 = vsel %vm169_vm0, %v182_v12, 0.0 }
  0x94   : > { %184 = vadd.xlane.f32.xlu0 %v183_v13 }
 0x107   : > { %v185_v14 = vpop.xlane.xlu0 %184 }
 0x108   : > { %v186_v15 = vmul.f32 0.032258064, %v185_v14 }
 0x10a   : > { %353 = vrsqrt.f32 %v186_v15  ;;  %vm194_vm2 = vcmp.eq.f32.partialorder %v186_v15, inf  ;;  %v197_v23 = vand.u32 2147483648, %v186_v15  ;;  %vm196_vm3 = vcmp.eq.f32.partialorder %v186_v15, 0.0 }
 0x110   : > { %v354_v16 = vpop.eup %353 }
 0x111   : > { %v188_v17 = vmul.f32 %v354_v16, %v186_v15 }
 0x113   : > { %v189_v18 = vmul.f32 %v354_v16, %v188_v17 }
 0x115   : > { %v190_v19 = vmul.f32 0.5, %v189_v18 }
 0x117   : > { %v191_v20 = vsub.f32 1.5, %v190_v19 }
 0x119   : > { %v192_v21 = vmul.f32 %v354_v16, %v191_v20 }
 0x11b   : > { %v193_v22 = vmul.f32 %v192_v21, %v186_v15 }
 0x11d   : > { %v195_v24 = vsel %vm194_vm2, %v186_v15, %v193_v22 }
 0x11e   : > { %v198_v25 = vsel %vm196_vm3, %v197_v23, %v195_v24 }
 0x11f   : > { %v199_v26 = vadd.f32 1e-06, %v198_v25 }
 0x121   : > { %355 = vrcp.f32 %v199_v26  ;;  %v211_v30 = vand.u32 2147483648, %v199_v26  ;;  %v209_v33 = vand.u32 2147483647, %v199_v26  ;;  %vm205_vm5 = vweird.f32 %v199_v26 }
 0x123   : > { %v212_v35 = vor.u32 1.1754944e-38, %v211_v30  ;;  %vm210_vm7 = vcmp.eq.f32.partialorder %v209_v33, 8.507059e+37 }
 0x127   : > { %v356_v27 = vpop.eup %355 }
 0x128   : > { %v201_v28 = vmul.f32 %v356_v27, %v199_v26  ;;  %vm206_vm4 = vweird.f32 %v356_v27 }
 0x129   : > { %vm207_vm6 = vmor %vm205_vm5, %vm206_vm4 }
 0x12a   : > { %v202_v29 = vsub.f32 1.0, %v201_v28 }
 0x12c   : > { %v203_v32 = vmul.f32 %v356_v27, %v202_v29 }
 0x12e   : > { %v204_v34 = vadd.f32 %v356_v27, %v203_v32 }
 0x130   : > { %v208_v37 = vsel %vm207_vm6, %v356_v27, %v204_v34 }
 0x131   : > { %v213_v39 = vsel %vm210_vm7, %v212_v35, %v208_v37 }
 0x132   : > { %v218_v40 = vmul.f32 %v217_v36, %v213_v39 }
 0x134   : > { %v222_v41 = vadd.f32 %v350_v38, %v218_v40 }
 0x136   : > { %223 = vst.msk [vmem:[%s161_s16] sm:$0xff] %vm169_vm0, %v222_v41 }
 0x137   : > { %384 = shalt.err (!%p381_p3)
}
 0x138   : > { %309 = dma.vmem_to_hbm [thread:$0]  (%p480_p5), %s238_s17, 128, %s240_s19, %s225_s20  }
 0x139 PF: > { %p315_p4 = scmp.ge.s32.totalorder %s419_s15, 2  ;;  %s251_s29 = sand.u32 1, %s407_s12  }
 0x13a   : > { %s252_s5 = scalar_lea.sflag [#allocation3], %s251_s29 }
 0x13b   : > { %p312_p7 = pnand %p315_p4, %p484_p6 }
 0x13d   : > { %p313_p8 = pneg %p312_p7 }
 0x13f   : > { %402 = dma.done.wait (%p313_p8), %s252_s5, 128  }
 0x140   : > { %404 = vsyncadd (%p313_p8), %s252_s5, 4294967168  ;;  %p13_p9 = scmp.ge.s32.totalorder %s467_s18, 4   ;;  %s542_s12 = smov %s411_s13 }
 0x141   : > { %s543_s13 = smov %s415_s14  ;;  %s544_s14 = smov %s478_s21 }
 0x142   : > { %s545_s15 = smov %s467_s18  ;;  %15 = sbr.rel (!%p13_p9) target bundleno = 3 (0x3), region = 67 }
 0x147   :  { %258 = vsyncpa [#allocation3], 1 }
 0x148   :  { %260 = vsyncpa [#allocation3 + $0x1], 1 }

// kernel: _lambda_.18
= control target key start
LH: loop header
LB: loop body
LE: loop exit
PB: predicated region body
PF: predicated region fallthrough
CT: control target
= control target key end

     0   :  { %s1083_s30 = smov 0   ;;  %s1228_s0 = inlined_call_operand.vmem [shape: f32[2,8,32], index: 0, kind: input, shape index: {}]   ;;  %s1229_s1 = inlined_call_operand.vmem [shape: f32[2,8,32], index: 1, kind: input, shape index: {}]   ;;  %s1230_s2 = inlined_call_operand.vmem [shape: f32[1,32], index: 2, kind: input, shape index: {}]   ;;  %s1231_s3 = inlined_call_operand.vmem [shape: f32[1,32], index: 3, kind: input, shape index: {}, may-alias: {3,7}]   ;;  %s1232_s4 = inlined_call_operand.vmem [shape: bf16[32,96], index: 4, kind: input, shape index: {}]   ;;  %s1233_s5 = inlined_call_operand.vmem [shape: f32[1,96], index: 5, kind: input, shape index: {}]   ;;  %s1234_s6 = inlined_call_operand.vmem [shape: bf16[32,32], index: 6, kind: input, shape index: {}]   ;;  %s1235_s7 = inlined_call_operand.vmem [shape: f32[1,32], index: 7, kind: input, shape index: {}, may-alias: {3,7}]   ;;  %s1236_s8 = inlined_call_operand.vmem [shape: f32[2,1,8], index: 8, kind: input, shape index: {}]   ;;  %s1237_s9 = inlined_call_operand.vmem [shape: f32[2,8,32], index: 9, kind: output, shape index: {}]  }
   0x1 LB: > { %s939_s10 = sadd.s32 4294967295, %s1022_s30   ;;  %p943_p0 = scmp.ge.s32.totalorder %s1022_s30, 1  ;;  %s1022_s30 = sphi %s1083_s30, %s19_s30  }
   0x2   : > { %p303_p1 = scmp.lt.s32.totalorder %s1022_s30, 3 }
   0x4   : > { %p304_p2 = pnand %p943_p0, %p303_p1 }
   0x5   : > { %p344_p3 = scmp.lt.s32.totalorder (!%p304_p2), %s939_s10, 1  ;;  %s1025_s17 = smov (!%p304_p2), 96  }
   0x6   : > { %307 = sbr.rel (%p304_p2) target bundleno = 1655 (0x677), region = 56  ;;  %s1026_s29 = smov (!%p304_p2), 120  }
   0x7   : > { %s1027_s12 = smov (!%p304_p2), 104   ;;  %s1028_s13 = smov (!%p304_p2), 112  }
   0x8   : > { %s1031_s19 = smov (!%p304_p2), 72   ;;  %s1032_s20 = smov (!%p304_p2), 88  }
   0xb   : > { %s1241_s10 = smov (!%p344_p3, %s939_s10), 1  ;;  %vm363_vm0 = vcmask 261120   ;;  %v1024_v2 = vmov 32.0   ;;  %v972_v3 = vld [vmem:[%s1232_s4 + $0x8] sm:$0xff]  ;;  %v971_v5 = vld [vmem:[%s1232_s4] sm:$0xff]  ;;  %vm488_vm8 = vcmask 64512  }
   0xc   : > { %s1094_s11 = sshll.u32 %s1241_s10, 3  ;;  %994 = vrcp.f32 %v1024_v2  ;;  %458 = vrot.lane.b32.xlu1 %v972_v3, %s1025_s17  ;;  %449 = vmatpush.bf16.msra.mxu0 %v972_v3  ;;  %v992_v27 = vld [vmem:[%s1233_s5] ss:$0 sm:$0xff]  ;;  %vm545_vm9 = vcmask 1043456   ;;  %s354_s18 = scalar_lea.vmem %s1236_s8, %s1241_s10 }
   0xd   : > { %s347_s14 = scalar_lea.vmem %s1228_s0, %s1094_s11  ;;  %s351_s22 = scalar_lea.vmem %s1229_s1, %s1094_s11  ;;  %462 = vrot.lane.b32.xlu2 %v992_v27, %s1025_s17  ;;  %v990_v38 = vld [vmem:[%s1230_s2] ss:$0 sm:$0xff] }
   0xe   : > { %v1100_v0 = vld [vmem:[%s347_s14] sm:$0xff]  ;;  %s1030_s10 = smov 80  }
   0xf   : > { %v364_v1 = vsel %vm363_vm0, %v1100_v0, 0.0  ;;  %v422_v17 = vld [vmem:[%s351_s22] sm:$0xff] }
  0x10   : > { %365 = vadd.xlane.f32.xlu0 %v364_v1  ;;  %450 = vmatpush.bf16.msra.mxu0 %v971_v5  ;;  %v423_v19 = vpack.c.bf16 %v422_v17, %v422_v17  ;;  %v991_v45 = vld [vmem:[%s1231_s3] ss:$0 sm:$0xff] }
  0x11   : > { %v482_v62 = vld [vmem:[%s1234_s6] sm:$0xf] }
  0x12   : > { %v995_v4 = vpop.eup %994  ;;  %v659_v63 = vsel %vm545_vm9, %v482_v62, 0  ;;  %v481_v2 = vld [vmem:[%s354_s18] sm:$0x1] }
  0x13   : > { %v368_v6 = vmul.f32 32.0, %v995_v4  ;;  %vm372_vm1 = vweird.f32 %v995_v4  ;;  %vm509_vm10 = vcmp.gt.f32.partialorder %v481_v2, 0.0 }
  0x14   : > { %456 = vrot.lane.b32.xlu1 %v971_v5, %s1025_s17  ;;  %v1029_v5 = vmov 0  }
  0x15   : > { %v369_v7 = vsub.f32 1.0, %v368_v6  ;;  %v510_v6 = vsel %vm509_vm10, 1, %v1029_v5 }
  0x17   : > { %v370_v8 = vmul.f32 %v995_v4, %v369_v7  ;;  %v511_v7 = vperm.slane %v510_v6, 0 }
  0x19   : > { %v371_v9 = vadd.f32 %v995_v4, %v370_v8  ;;  %vm1151_vm11 = vcmp.eq.s32.totalorder %v511_v7, 1 }
  0x1b   : > { %v373_v10 = vsel %vm372_vm1, %v995_v4, %v371_v9 }
  0x67   : > { %v463_v50 = vpop.permute.xlu2 %462 }
  0x7e   : > { %v459_v16 = vpop.permute.xlu1 %458 }
  0x7f   : > { %474 = vmatpush.bf16.msra.mxu1 %v459_v16 }
  0x83   : > { %v366_v11 = vpop.xlane.xlu0 %365 }
  0x84   : > { %v374_v12 = vmul.f32 %v373_v10, %v366_v11 }
  0x86   : > { %v375_v13 = vsub.f32 %v1100_v0, %v374_v12  ;;  %v457_v18 = vpop.permute.xlu1 %456 }
  0x87   : > { %475 = vmatpush.bf16.msra.mxu1 %v457_v18 }
  0x88   : > { %v376_v14 = vmul.f32 %v375_v13, %v375_v13  ;;  %v411_v43 = vmul.f32 %v990_v38, %v375_v13 }
  0x8a   : > { %v377_v15 = vsel %vm363_vm0, %v376_v14, 0.0  ;;  %956 = vmatmul.msk.bf16.vlgmr.msra.gmra.mxu1 %vm363_vm0, %v423_v19 }
  0x8b   : > { %378 = vadd.xlane.f32.xlu0 %v377_v15 }
  0xfe   : > { %v379_v20 = vpop.xlane.xlu0 %378 }
  0xff   : > { %v380_v21 = vmul.f32 0.032258064, %v379_v20 }
 0x101   : > { %996 = vrsqrt.f32 %v380_v21  ;;  %vm388_vm2 = vcmp.eq.f32.partialorder %v380_v21, inf  ;;  %v391_v30 = vand.u32 2147483648, %v380_v21  ;;  %vm390_vm3 = vcmp.eq.f32.partialorder %v380_v21, 0.0 }
 0x107   : > { %v997_v22 = vpop.eup %996  ;;  %v477_v51 = vpop.f32.mrf.mxu1 }
 0x108   : > { %v382_v23 = vmul.f32 %v997_v22, %v380_v21  ;;  %v478_v52 = vadd.f32 %v477_v51, %v463_v50 }
 0x10a   : > { %v383_v24 = vmul.f32 %v997_v22, %v382_v23  ;;  %v1130_v53 = vpack.c.bf16 %v478_v52, %v478_v52 }
 0x10c   : > { %v384_v25 = vmul.f32 0.5, %v383_v24  ;;  %540 = vrot.lane.b32.xlu1 %v1130_v53, %s1025_s17  ;;  %v493_v54 = vsel %vm488_vm8, %v1130_v53, 0 }
 0x10d   : > { %502 = vmatpush.bf16.xpose.msra.mxu2 %v493_v54 }
 0x10e   : > { %v385_v26 = vsub.f32 1.5, %v384_v25 }
 0x10f   : > { %v479_v55 = vpop.f32.mrf.mxu1 }
 0x110   : > { %v386_v28 = vmul.f32 %v997_v22, %v385_v26 }
 0x112   : > { %v387_v29 = vmul.f32 %v386_v28, %v380_v21 }
 0x114   : > { %v389_v31 = vsel %vm388_vm2, %v380_v21, %v387_v29 }
 0x115   : > { %v392_v32 = vsel %vm390_vm3, %v391_v30, %v389_v31  ;;  %668 = vmatpush.bf16.msrb.mxu2 %v659_v63 }
 0x116   : > { %v393_v33 = vadd.f32 1e-06, %v392_v32 }
 0x118   : > { %998 = vrcp.f32 %v393_v33  ;;  %v405_v37 = vand.u32 2147483648, %v393_v33  ;;  %v403_v40 = vand.u32 2147483647, %v393_v33  ;;  %vm399_vm5 = vweird.f32 %v393_v33 }
 0x11a   : > { %v406_v42 = vor.u32 1.1754944e-38, %v405_v37  ;;  %vm404_vm7 = vcmp.eq.f32.partialorder %v403_v40, 8.507059e+37 }
 0x11e   : > { %v999_v34 = vpop.eup %998 }
 0x11f   : > { %v395_v35 = vmul.f32 %v999_v34, %v393_v33  ;;  %vm400_vm4 = vweird.f32 %v999_v34 }
 0x120   : > { %vm401_vm6 = vmor %vm399_vm5, %vm400_vm4 }
 0x121   : > { %v396_v36 = vsub.f32 1.0, %v395_v35 }
 0x123   : > { %v397_v39 = vmul.f32 %v999_v34, %v396_v36 }
 0x125   : > { %v398_v41 = vadd.f32 %v999_v34, %v397_v39 }
 0x127   : > { %v402_v44 = vsel %vm401_vm6, %v999_v34, %v398_v41 }
 0x128   : > { %v407_v46 = vsel %vm404_vm7, %v406_v42, %v402_v44 }
 0x129   : > { %v412_v47 = vmul.f32 %v411_v43, %v407_v46 }
 0x12b   : > { %v416_v48 = vadd.f32 %v991_v45, %v412_v47 }
 0x12d   : > { %v424_v49 = vpack.c.bf16 %v416_v48, %v416_v48 }
 0x12f   : > { %955 = vmatmul.msk.bf16.vlgmr.msra.gmra.mxu0 %vm363_vm0, %v424_v49 }
 0x17e   : > { %v541_v60 = vpop.permute.xlu1 %540 }
 0x17f   : > { %v547_v61 = vsel %vm545_vm9, %v541_v60, 0 }
 0x180   : > { %556 = vmatpush.bf16.msra.mxu3 %v547_v61 }
 0x1ac   : > { %v452_v56 = vpop.f32.mrf.mxu0 }
 0x1ad   : > { %v453_v57 = vadd.f32 %v992_v27, %v452_v56 }
 0x1af   : > { %v486_v58 = vpack.c.bf16 %v453_v57, %v453_v57 }
 0x1b1   : > { %564 = vrot.lane.b32.xlu1 %v486_v58, %s1026_s29  ;;  %957 = vmatmul.msk.bf16.vlgmr.msra.gmra.mxu2 %vm488_vm8, %v486_v58 }
 0x1b4   : > { %v454_v59 = vpop.f32.mrf.mxu0 }
 0x1b9   : > { %768 = vrot.lane.b32.xlu1 %v1130_v53, %s1027_s12 }
 0x1c1   : > { %676 = vrot.lane.b32.xlu1 %v1130_v53, %s1028_s13 }
 0x1c9   : > { %674 = vrot.lane.b32.xlu1 %v486_v58, %s1028_s13  ;;  %s358_s13 = scalar_lea.vmem %s1237_s9, %s1094_s11 }
 0x223   : > { %v565_v1 = vpop.permute.xlu1 %564 }
 0x22b   : > { %v769_v3 = vpop.permute.xlu1 %768 }
 0x22c   : > { %v774_v4 = vsel %vm488_vm8, %v769_v3, 0 }
 0x22d   : > { %783 = vmatpush.bf16.xpose.msra.mxu2 %v774_v4 }
 0x233   : > { %v677_v31 = vpop.permute.xlu1 %676 }
 0x234   : > { %v504_v8 = vpop.f32.mrf.mxu2  ;;  %v682_v35 = vsel %vm488_vm8, %v677_v31, 0 }
 0x235   : > { %v508_v10 = vmul.f32 0.35355338, %v504_v8 }
 0x237   : > { %v513_v11 = vsel %vm1151_vm11, %v508_v10, -1e+09 }
 0x238   : > { %v514_v12 = vsel %vm488_vm8, %v513_v11, -inf }
 0x239   : > { %515 = vmax.xlane.f32.xlu2 %v514_v12 }
 0x23b   : > { %v675_v36 = vpop.permute.xlu1 %674 }
 0x23c   : > { %v506_v13 = vpop.f32.mrf.mxu2 }
 0x2ac   : > { %v516_v14 = vpop.xlane.xlu2 %515 }
 0x2ad   : > { %v517_v15 = vsub.f32 %v513_v11, %v516_v14 }
 0x2af   : > { %v518_v16 = vmul.f32 1.442695, %v517_v15 }
 0x2b1   : > { %1000 = vpow2.f32 %v518_v16 }
 0x2b7   : > { %v1001_v17 = vpop.eup %1000 }
 0x2b8   : > { %v520_v18 = vsel %vm488_vm8, %v1001_v17, 0.0 }
 0x2b9   : > { %521 = vadd.xlane.f32.xlu0 %v520_v18 }
 0x2cd   : > { %566 = vrot.lane.b32.xlu0 %v1130_v53, %s1026_s29 }
 0x2d5   : > { %766 = vrot.lane.b32.xlu0 %v486_v58, %s1027_s12 }
 0x32c   : > { %v522_v19 = vpop.xlane.xlu0 %521 }
 0x32d   : > { %1002 = vrcp.f32 %v522_v19  ;;  %v534_v23 = vand.u32 2147483648, %v522_v19  ;;  %v532_v25 = vand.u32 2147483647, %v522_v19  ;;  %vm528_vm13 = vweird.f32 %v522_v19 }
 0x32f   : > { %v535_v27 = vor.u32 1.1754944e-38, %v534_v23  ;;  %vm533_vm15 = vcmp.eq.f32.partialorder %v532_v25, 8.507059e+37 }
 0x333   : > { %v1003_v20 = vpop.eup %1002 }
 0x334   : > { %v524_v21 = vmul.f32 %v1003_v20, %v522_v19  ;;  %vm529_vm12 = vweird.f32 %v1003_v20 }
 0x335   : > { %vm530_vm14 = vmor %vm528_vm13, %vm529_vm12 }
 0x336   : > { %v525_v22 = vsub.f32 1.0, %v524_v21 }
 0x338   : > { %v526_v24 = vmul.f32 %v1003_v20, %v525_v22 }
 0x33a   : > { %v527_v26 = vadd.f32 %v1003_v20, %v526_v24 }
 0x33c   : > { %v531_v28 = vsel %vm530_vm14, %v1003_v20, %v527_v26 }
 0x33d   : > { %v536_v29 = vsel %vm533_vm15, %v535_v27, %v531_v28 }
 0x33e   : > { %v537_v30 = vmul.f32 %v1001_v17, %v536_v29 }
 0x33f   : > { %v567_v32 = vpop.permute.xlu0 %566 }
 0x340   : > { %v572_v33 = vsel %vm488_vm8, %v567_v32, 0  ;;  %v538_v34 = vpack.c.bf16 %v537_v30, %v537_v30 }
 0x341   : > { %581 = vmatpush.bf16.xpose.msrb.mxu3 %v572_v33 }
 0x342   : > { %958 = vmatmul.msk.bf16.vlgmr.msra.gmra.mxu3 %vm488_vm8, %v538_v34 }
 0x347   : > { %v767_v42 = vpop.permute.xlu0 %766 }
 0x349   : > { %691 = vmatpush.bf16.xpose.msra.mxu3 %v682_v35 }
 0x352   : > { %959 = vmatmul.msk.bf16.vlgmr.msrb.gmra.mxu3 %vm488_vm8, %v565_v1 }
 0x362   : > { %963 = vmatmul.msk.bf16.vlgmr.msra.gmra.mxu3 %vm488_vm8, %v675_v36 }
 0x3c5   : > { %v558_v37 = vpop.f32.mrf.mxu3 }
 0x3c6   : > { %v562_v38 = vpack.c.bf16 %v558_v37, %v558_v37 }
 0x3c8   : > { %962 = vmatmul.msk.bf16.vlgmr.msrb.gmra.mxu2 %vm488_vm8, %v562_v38 }
 0x3cd   : > { %v560_v39 = vpop.f32.mrf.mxu3 }
 0x3d5   : > { %v583_v40 = vpop.f32.mrf.mxu3 }
 0x3d6   : > { %v587_v41 = vmul.f32 0.35355338, %v583_v40 }
 0x3d8   : > { %966 = vmatmul.msk.bf16.vlgmr.msra.gmra.mxu2 %vm488_vm8, %v767_v42  ;;  %v588_v43 = vsel %vm1151_vm11, %v587_v41, -1e+09 }
 0x3d9   : > { %v589_v44 = vsel %vm488_vm8, %v588_v43, -inf }
 0x3da   : > { %590 = vmax.xlane.f32.xlu2 %v589_v44 }
 0x3dd   : > { %v585_v45 = vpop.f32.mrf.mxu3 }
 0x3e5   : > { %v693_v46 = vpop.f32.mrf.mxu3 }
 0x3e6   : > { %v697_v47 = vmul.f32 0.35355338, %v693_v46 }
 0x3e8   : > { %v698_v48 = vsel %vm1151_vm11, %v697_v47, -1e+09 }
 0x3e9   : > { %v699_v49 = vsel %vm488_vm8, %v698_v48, -inf }
 0x3ea   : > { %700 = vmax.xlane.f32.xlu1 %v699_v49 }
 0x3ed   : > { %v695_v50 = vpop.f32.mrf.mxu3 }
 0x403   : > { %724 = vrot.lane.b32.xlu1 %v1130_v53, %s1030_s10 }
 0x44b   : > { %v1176_v51 = vpop.f32.mrf.mxu2 }
 0x44d   : > { %v591_v52 = vpop.xlane.xlu2 %590 }
 0x44e   : > { %v592_v54 = vsub.f32 %v588_v43, %v591_v52 }
 0x450   : > { %v593_v55 = vmul.f32 1.442695, %v592_v54 }
 0x452   : > { %1004 = vpow2.f32 %v593_v55 }
 0x453   : > { %v672_v56 = vpop.f32.mrf.mxu2 }
 0x458   : > { %v1005_v57 = vpop.eup %1004 }
 0x459   : > { %v595_v58 = vsel %vm488_vm8, %v1005_v57, 0.0 }
 0x45a   : > { %596 = vadd.xlane.f32.xlu2 %v595_v58 }
 0x45b   : > { %v785_v59 = vpop.f32.mrf.mxu2 }
 0x45c   : > { %v789_v60 = vmul.f32 0.35355338, %v785_v59  ;;  %v485_v59 = vld [vmem:[%s1234_s6 + $0xc] sm:$0xf] }
 0x45d   : > { %v701_v61 = vpop.xlane.xlu1 %700 }
 0x45e   : > { %v702_v62 = vsub.f32 %v698_v48, %v701_v61  ;;  %v790_v63 = vsel %vm1151_vm11, %v789_v60, -1e+09  ;;  %v842_v60 = vsel %vm545_vm9, %v485_v59, 0  ;;  %v484_v61 = vld [vmem:[%s1234_s6 + $0x8] sm:$0xf] }
 0x45f   : > { %v791_v1 = vsel %vm488_vm8, %v790_v63, -inf }
 0x460   : > { %v703_v2 = vmul.f32 1.442695, %v702_v62  ;;  %792 = vmax.xlane.f32.xlu0 %v791_v1  ;;  %v750_v62 = vsel %vm545_vm9, %v484_v61, 0 }
 0x462   : > { %1006 = vpow2.f32 %v703_v2 }
 0x463   : > { %v787_v3 = vpop.f32.mrf.mxu2 }
 0x468   : > { %v1182_v4 = vpop.eup %1006 }
 0x469   : > { %v705_v5 = vsel %vm488_vm8, %v1182_v4, 0.0 }
 0x46a   : > { %706 = vadd.xlane.f32.xlu2 %v705_v5 }
 0x474   : > { %816 = vrot.lane.b32.xlu0 %v1130_v53, %s1031_s19 }
 0x475   : > { %v725_v29 = vpop.permute.xlu1 %724 }
 0x476   : > { %v730_v35 = vsel %vm545_vm9, %v725_v29, 0 }
 0x4cd   : > { %v597_v13 = vpop.xlane.xlu2 %596 }
 0x4ce   : > { %v609_v21 = vand.u32 2147483648, %v597_v13  ;;  %vm603_vm2 = vweird.f32 %v597_v13  ;;  %v607_v22 = vand.u32 2147483647, %v597_v13 }
 0x4d0   : > { %vm608_vm4 = vcmp.eq.f32.partialorder %v607_v22, 8.507059e+37 }
 0x4d3   : > { %v793_v6 = vpop.xlane.xlu0 %792 }
 0x4d4   : > { %v794_v7 = vsub.f32 %v790_v63, %v793_v6 }
 0x4d6   : > { %v795_v8 = vmul.f32 1.442695, %v794_v7 }
 0x4d8   : > { %1008 = vpow2.f32 %v795_v8 }
 0x4d9   : > { %1010 = vrcp.f32 %v597_v13 }
 0x4dd   : > { %v707_v17 = vpop.xlane.xlu2 %706 }
 0x4de   : > { %v1187_v9 = vpop.eup %1008  ;;  %1012 = vrcp.f32 %v707_v17  ;;  %v719_v42 = vand.u32 2147483648, %v707_v17  ;;  %vm713_vm10 = vweird.f32 %v707_v17  ;;  %v717_v44 = vand.u32 2147483647, %v707_v17 }
 0x4df   : > { %v797_v10 = vsel %vm488_vm8, %v1187_v9, 0.0  ;;  %v1011_v14 = vpop.eup %1010 }
 0x4e0   : > { %798 = vadd.xlane.f32.xlu2 %v797_v10  ;;  %v599_v15 = vmul.f32 %v1011_v14, %v597_v13  ;;  %vm604_vm1 = vweird.f32 %v1011_v14  ;;  %v720_v49 = vor.u32 1.1754944e-38, %v719_v42  ;;  %vm718_vm14 = vcmp.eq.f32.partialorder %v717_v44, 8.507059e+37 }
 0x4e1   : > { %vm605_vm3 = vmor %vm603_vm2, %vm604_vm1 }
 0x4e2   : > { %v600_v16 = vsub.f32 1.0, %v599_v15  ;;  %v993_v15 = vld [vmem:[%s1235_s7] ss:$0 sm:$0xff] }
 0x4e4   : > { %v601_v18 = vmul.f32 %v1011_v14, %v600_v16  ;;  %v1013_v20 = vpop.eup %1012 }
 0x4e5   : > { %v709_v24 = vmul.f32 %v1013_v20, %v707_v17  ;;  %vm714_vm6 = vweird.f32 %v1013_v20 }
 0x4e6   : > { %v817_v11 = vpop.permute.xlu0 %816  ;;  %v602_v19 = vadd.f32 %v1011_v14, %v601_v18  ;;  %vm715_vm12 = vmor %vm713_vm10, %vm714_vm6 }
 0x4e7   : > { %v822_v12 = vsel %vm545_vm9, %v817_v11, 0  ;;  %v710_v27 = vsub.f32 1.0, %v709_v24 }
 0x4e8   : > { %831 = vmatpush.bf16.msrb.mxu3 %v822_v12  ;;  %v606_v25 = vsel %vm605_vm3, %v1011_v14, %v602_v19 }
 0x4e9   : > { %v711_v33 = vmul.f32 %v1013_v20, %v710_v27 }
 0x4eb   : > { %v712_v41 = vadd.f32 %v1013_v20, %v711_v33 }
 0x4ed   : > { %v716_v47 = vsel %vm715_vm12, %v1013_v20, %v712_v41 }
 0x4ee   : > { %v721_v52 = vsel %vm718_vm14, %v720_v49, %v716_v47 }
 0x4ef   : > { %v722_v55 = vmul.f32 %v1182_v4, %v721_v52 }
 0x4f1   : > { %v723_v56 = vpack.c.bf16 %v722_v55, %v722_v55 }
 0x4f8   : > { %614 = vrot.lane.b32.xlu2 %v1130_v53, %s1032_s20  ;;  %v610_v53 = vor.u32 1.1754944e-38, %v609_v21 }
 0x4fa   : > { %v611_v26 = vsel %vm608_vm4, %v610_v53, %v606_v25 }
 0x4fb   : > { %v612_v30 = vmul.f32 %v1005_v57, %v611_v26  ;;  %v483_v57 = vld [vmem:[%s1234_s6 + $0x4] sm:$0xf] }
 0x4fc   : > { %v640_v58 = vsel %vm545_vm9, %v483_v57, 0 }
 0x4fd   : > { %v613_v38 = vpack.c.bf16 %v612_v30, %v612_v30  ;;  %649 = vmatpush.bf16.msrb.mxu1 %v640_v58 }
 0x501   : > { %759 = vmatpush.bf16.msra.mxu1 %v750_v62 }
 0x553   : > { %v799_v23 = vpop.xlane.xlu2 %798 }
 0x554   : > { %1014 = vrcp.f32 %v799_v23  ;;  %v811_v37 = vand.u32 2147483648, %v799_v23  ;;  %v809_v40 = vand.u32 2147483647, %v799_v23  ;;  %vm805_vm7 = vweird.f32 %v799_v23 }
 0x556   : > { %v812_v45 = vor.u32 1.1754944e-38, %v811_v37  ;;  %vm810_vm13 = vcmp.eq.f32.partialorder %v809_v40, 8.507059e+37 }
 0x55a   : > { %v1015_v28 = vpop.eup %1014 }
 0x55b   : > { %v801_v31 = vmul.f32 %v1015_v28, %v799_v23  ;;  %v615_v32 = vpop.permute.xlu2 %614  ;;  %vm806_vm5 = vweird.f32 %v1015_v28 }
 0x55c   : > { %v620_v34 = vsel %vm545_vm9, %v615_v32, 0  ;;  %vm807_vm11 = vmor %vm805_vm7, %vm806_vm5 }
 0x55d   : > { %v802_v36 = vsub.f32 1.0, %v801_v31  ;;  %629 = vmatpush.bf16.msrb.mxu0 %v620_v34 }
 0x55f   : > { %v803_v39 = vmul.f32 %v1015_v28, %v802_v36 }
 0x560   : > { %960 = vmatmul.msk.bf16.vlgmr.msrb.gmra.mxu0 %vm488_vm8, %v613_v38 }
 0x561   : > { %739 = vmatpush.bf16.msra.mxu0 %v730_v35  ;;  %v804_v43 = vadd.f32 %v1015_v28, %v803_v39 }
 0x563   : > { %v808_v46 = vsel %vm807_vm11, %v1015_v28, %v804_v43 }
 0x564   : > { %v813_v48 = vsel %vm810_vm13, %v812_v45, %v808_v46 }
 0x565   : > { %v814_v50 = vmul.f32 %v1187_v9, %v813_v48  ;;  %851 = vmatpush.bf16.msrb.mxu0 %v842_v60 }
 0x567   : > { %v815_v54 = vpack.c.bf16 %v814_v50, %v814_v50 }
 0x569   : > { %967 = vmatmul.msk.bf16.vlgmr.msrb.gmra.mxu3 %vm488_vm8, %v815_v54 }
 0x570   : > { %964 = vmatmul.msk.bf16.vlgmr.msra.gmra.mxu0 %vm488_vm8, %v723_v56 }
 0x5dd   : > { %v631_v63 = vpop.f32.mrf.mxu0 }
 0x5de   : > { %v635_v1 = vpack.c.bf16 %v631_v63, %v631_v63 }
 0x5e0   : > { %961 = vmatmul.msk.bf16.vlgmr.msrb.gmra.mxu1 %vm488_vm8, %v635_v1 }
 0x5e5   : > { %v633_v2 = vpop.f32.mrf.mxu0 }
 0x5ec   : > { %v833_v3 = vpop.f32.mrf.mxu3 }
 0x5ed   : > { %v837_v4 = vpack.c.bf16 %v833_v3, %v833_v3  ;;  %v741_v5 = vpop.f32.mrf.mxu0 }
 0x5ee   : > { %v745_v6 = vpack.c.bf16 %v741_v5, %v741_v5 }
 0x5ef   : > { %968 = vmatmul.msk.bf16.vlgmr.msrb.gmra.mxu0 %vm488_vm8, %v837_v4 }
 0x5f0   : > { %965 = vmatmul.msk.bf16.vlgmr.msra.gmra.mxu1 %vm488_vm8, %v745_v6 }
 0x5f4   : > { %v835_v7 = vpop.f32.mrf.mxu3 }
 0x5f5   : > { %v743_v8 = vpop.f32.mrf.mxu0 }
 0x65d   : > { %v651_v9 = vpop.f32.mrf.mxu1 }
 0x65e   : > { %v671_v11 = vadd.f32 %v1176_v51, %v651_v9 }
 0x665   : > { %v653_v10 = vpop.f32.mrf.mxu1 }
 0x66c   : > { %v853_v12 = vpop.f32.mrf.mxu0 }
 0x66d   : > { %v761_v13 = vpop.f32.mrf.mxu1 }
 0x66e   : > { %v765_v14 = vadd.f32 %v761_v13, %v671_v11 }
 0x670   : > { %v857_v16 = vadd.f32 %v853_v12, %v765_v14 }
 0x672   : > { %v862_v17 = vadd.f32 %v993_v15, %v857_v16 }
 0x674   : > { %v863_v18 = vadd.f32 %v862_v17, %v1100_v0  ;;  %v855_v19 = vpop.f32.mrf.mxu0 }
 0x675   : > { %v763_v20 = vpop.f32.mrf.mxu1 }
 0x676   : > { %864 = vst.msk [vmem:[%s358_s13] sm:$0xff] %vm363_vm0, %v863_v18 }
 0x677 PF: > { %s19_s30 = sadd.s32 1, %s1022_s30  }
 0x678   : > { %p16_p4 = scmp.ge.s32.totalorder %s19_s30, 4  }
 0x67a   :  { %18 = sbr.rel (!%p16_p4) target bundleno = 1 (0x1), region = 92 }

</bundles_post_ra>
